<compile_context>
chip_gen: v6e
topology: v6e:2x2x1
jax: 0.10.0
libtpu: 0.0.40
codegen_flags: <defaults>
</compile_context>

<pallas_src>
import functools

import jax
import jax.numpy as jnp
from jax.experimental import pallas as pl
from jax.experimental.pallas import tpu as pltpu

EPSILON = float(jnp.finfo(jnp.float32).eps)  # == torch.finfo(torch.float32).eps


def _round_up(x, m):
    return ((x + m - 1) // m) * m


def superlayer_kernel(qf_ref, kf_ref, vk_ref, vt_out_ref, a_out_ref, acc_ref,
                      *, l1, l2, n_real):
    """One (qi, ki) step: build an A tile, accumulate A @ [V.T | 1],
    finalize the multiplicative V update at the last ki.

    qf_ref : (TQ, 2+T+3K)  [xs, ys, I.T, fc_x, fc_v, V.T]   (q rows)
    kf_ref : (2+T, TK)     [xs; ys; I]                      (k cols)
    vk_ref : (TK, K+1)     [V.T | 1]                        (k rows)
    vt_out : (TQ, K+1)     [new V.T | rowsum(A)]            (written at last ki)
    a_out  : (TQ, TK)      A tile                           (written every step)
    acc    : (TQ, K+1)     VMEM scratch accumulator
    """
    f32 = jnp.float32
    ki = pl.program_id(1)
    nk = pl.num_programs(1)

    n_t = kf_ref.shape[0] - 2          # static: rows are [xs, ys, I_0..I_{T-1}]
    k = vk_ref.shape[1] - 1            # static: cols are [V.T_0..V.T_{K-1}, 1]

    @pl.when(ki == 0)
    def _init():
        acc_ref[...] = jnp.zeros_like(acc_ref)

    # ---- A tile: exp(-(dx^2+dy^2)/(s1^2+eps) - z^2/(s2^2+eps)) --------------
    # locs / I are pre-scaled by 1/sqrt(s^2+eps) in the wrapper, so the
    # exponent needs no extra multiplies here.
    xq = qf_ref[:, 0:1]                # (TQ, 1)
    yq = qf_ref[:, 1:2]
    xk = kf_ref[0:1, :]                # (1, TK)
    yk = kf_ref[1:2, :]
    dx = xq - xk
    dy = yq - yk
    t_dis = dx * dx + dy * dy          # |x|^2 == x*x, abs dropped

    iq = qf_ref[:, 2:2 + n_t]          # (TQ, T)
    ikb = kf_ref[2:2 + n_t, :]         # (T, TK)
    z = jnp.zeros(t_dis.shape, f32)
    for t in range(n_t):               # tiny static unroll over T; no (T,TQ,TK)
        z = z + jnp.abs(iq[:, t:t + 1] - ikb[t:t + 1, :])

    A = jnp.exp(-(t_dis + z * z))      # (TQ, TK)
    a_out_ref[...] = A

    # ---- fused A @ [V.T | 1]: cols[:K] = A@V.T, col K = rowsum(A) -----------
    # Padded k rows of vk are all-zero, so padded A columns contribute nothing.
    acc_ref[...] += jnp.dot(A, vk_ref[...],
                            preferred_element_type=f32,
                            precision=jax.lax.Precision.HIGHEST)

    # ---- multiplicative update, once per q tile ------------------------------
    @pl.when(ki == nk - 1)
    def _finalize():
        c0 = 2 + n_t
        acc = acc_ref[...]                              # (TQ, K+1)
        av = acc[:, :k]                                 # A @ V.T
        row_sum = acc[:, k:k + 1]                       # rowsum(A)  (== diag of D)
        fcx = qf_ref[:, c0:c0 + k]                      # fc(X.T)
        fcv = qf_ref[:, c0 + k:c0 + 2 * k]              # fc(V.T@b.T) == V.T@G + bias
        vtq = qf_ref[:, c0 + 2 * k:c0 + 3 * k]          # V.T (original)

        # numerator = fc(X.T) + l1*A@V.T + l2*(Jm@J.T);   Jm@J.T == N
        num = fcx + l1 * av + (l2 * n_real)
        # denominator = |fc(V.T@b.T) + l1*D@V.T + l2*(V.T@J)@J.T| + eps
        #   D@V.T == rowsum(A)*V.T ,  (V.T@J)@J.T == N * sum_k V.T
        ksum = jnp.sum(vtq, axis=1, keepdims=True)
        den = jnp.abs(fcv + l1 * row_sum * vtq
                      + (l2 * n_real) * ksum) + EPSILON

        vt_new = vtq * (num / den)
        csum = jnp.sum(vt_new, axis=1, keepdims=True)   # per-sample sum over K
        vt_out_ref[:, :k] = vt_new / (csum + EPSILON)
        vt_out_ref[:, k:k + 1] = row_sum


def superlayer_forward(X, V, I, iden, locs, W, bias, L1, L2, S1, S2, *, tile=512):
    """Same inputs/outputs (shapes & order) as SuperLayer.forward.

    tile: N-tile size (multiple of 128). 512-2048 on v5e/v6e (raise
    vmem_limit as needed); cap ~1024-1536 on v7x and keep nq >= 2 there.
    """
    f32 = jnp.float32
    M, N = X.shape
    K = W.shape[0]
    T = I.shape[0]
    K1 = K + 1

    tile = int(tile)
    assert tile % 128 == 0, "tile must be a multiple of 128"
    TQ = TK = min(tile, _round_up(N, 128))
    Np = _round_up(N, TQ)
    pad_n = Np - N
    nq, nk = Np // TQ, Np // TK

    # fold 1/(s^2+eps) into the data (O(N) wrapper work vs O(N^2) in-kernel)
    s1_scale = (1.0 / (float(S1) ** 2 + EPSILON)) ** 0.5
    s2_scale = (1.0 / (float(S2) ** 2 + EPSILON)) ** 0.5
    locs = locs.astype(f32)
    xs = locs[:, 0] * s1_scale                           # (N,)
    ys = locs[:, 1] * s1_scale
    I_s = I.astype(f32) * s2_scale                       # (T, N)

    # tiny O(N*K) precomputes hoisted out of the kernel (review feedback)
    WT = W.astype(f32).T                                 # (M, K)
    bias_row = bias.astype(f32).reshape(1, K)
    b = iden.astype(f32) @ WT + bias_row                 # (M, K) == B1_fc(iden)
    G = b.T @ WT                                         # (K, K): fc(V.T@b.T) == V.T@G + bias
    VT = V.astype(f32).T                                 # (N, K)
    fc_x = X.astype(f32).T @ WT + bias_row               # (N, K)
    fc_v = VT @ G + bias_row                             # (N, K)

    # q-side feature slab: [xs, ys, I.T, fc_x, fc_v, V.T]; padded rows zero.
    q_slab = jnp.concatenate(
        [xs[:, None], ys[:, None], I_s.T, fc_x, fc_v, VT], axis=1)
    q_slab = jnp.pad(q_slab, ((0, pad_n), (0, 0)))       # (Np, 2+T+3K)
    FQ = q_slab.shape[1]

    # k-side feature slab: [xs; ys; I]; padded cols zero.
    k_slab = jnp.concatenate([xs[None, :], ys[None, :], I_s], axis=0)
    k_slab = jnp.pad(k_slab, ((0, 0), (0, pad_n)))       # (2+T, Np)
    FK = k_slab.shape[0]

    # unpadded [V.T | 1] k-operand; zero pad rows -> padded A cols contribute 0.
    vk = jnp.concatenate([VT, jnp.ones((N, 1), f32)], axis=1)
    vk = jnp.pad(vk, ((0, pad_n), (0, 0)))               # (Np, K+1)

    kernel = functools.partial(
        superlayer_kernel, l1=float(L1), l2=float(L2), n_real=float(N))

    # rough double-buffered VMEM footprint (lane/sublane padded), explicit limit
    est = (2 * TQ * TK * 4                 # A out tile
           + 2 * TQ * _round_up(FQ, 128) * 4
           + 2 * _round_up(FK, 8) * TK * 4
           + 2 * TK * 128 * 4              # vk (lane-padded in VMEM)
           + 2 * TQ * 128 * 4              # vt_out
           + TQ * 128 * 4)                 # acc scratch
    vmem_limit = int(min(100 * 2 ** 20, max(32 * 2 ** 20, 2 * est)))

    vt_out_p, A_p = pl.pallas_call(
        kernel,
        grid=(nq, nk),
        out_shape=(
            jax.ShapeDtypeStruct((Np, K1), f32),         # [new V.T | rowsum(A)]
            jax.ShapeDtypeStruct((Np, Np), f32),         # A (padded)
        ),
        in_specs=[
            pl.BlockSpec((TQ, FQ), lambda qi, ki: (qi, 0)),   # q feature slab
            pl.BlockSpec((FK, TK), lambda qi, ki: (0, ki)),   # k feature slab
            pl.BlockSpec((TK, K1), lambda qi, ki: (ki, 0)),   # [V.T | 1], k ROWS
        ],
        out_specs=(
            pl.BlockSpec((TQ, K1), lambda qi, ki: (qi, 0)),
            pl.BlockSpec((TQ, TK), lambda qi, ki: (qi, ki)),
        ),
        scratch_shapes=[pltpu.VMEM((TQ, K1), jnp.float32)],
        compiler_params=pltpu.CompilerParams(
            dimension_semantics=("parallel", "arbitrary"),
            vmem_limit_bytes=vmem_limit),
    )(q_slab, k_slab, vk)

    V_new = vt_out_p[:N, :K].T                           # (K, N)
    row_sum = vt_out_p[:N, K]                            # (N,)
    A = A_p[:N, :N]
    # Dense D / Jm kept only to match the module's return signature; downstream
    # consumers should prefer row_sum / implicit ones to avoid N^2 HBM writes.
    D = jnp.diag(row_sum)
    J = jnp.ones((K, N), f32)
    Jm = jnp.ones((N, N), f32)
    return V_new, D, A, J, Jm, b


def superlayer_ref(X, V, I, iden, locs, W, bias, L1, L2, S1, S2):
    """Pure-JAX reference mirroring the PyTorch code line by line."""
    eps = EPSILON
    x = locs[:, 0]
    y = locs[:, 1]
    x_difs = x[:, None] - x[None, :]
    y_difs = y[:, None] - y[None, :]
    t_dis = jnp.abs(x_difs) ** 2 + jnp.abs(y_difs) ** 2
    z_difs = jnp.sum(jnp.abs(I[:, :, None] - I[:, None, :]), axis=0)
    A = jnp.exp(-(t_dis / (S1 ** 2 + eps) + z_difs ** 2 / (S2 ** 2 + eps)))
    D = jnp.diag(jnp.sum(A, axis=1))
    M, N = X.shape
    K = W.shape[0]
    Jm = jnp.ones((N, N), jnp.float32)
    J = jnp.ones((K, N), jnp.float32)
    E = jnp.ones((N, K), jnp.float32) * eps
    fc = lambda z: z @ W.T + bias
    b = fc(iden)
    num = fc(X.T) + L1 * (A @ V.T) + L2 * (Jm @ J.T)
    den = jnp.abs(fc(V.T @ b.T) + L1 * (D @ V.T) + L2 * ((V.T @ J) @ J.T)) + E
    delta = num / den
    Vn = (V.T * delta).T
    Vn = Vn / (jnp.sum(Vn, axis=0) + jnp.ones(N, jnp.float32) * eps)
    return Vn, D, A, J, Jm, b


if __name__ == "__main__":
    # Small shapes consistent with the forward: X (M,N), V (K,N), I (T,N),
    # iden (M,M), locs (N,2).  N = 300 (not a multiple of 128) plus tile=128
    # exercises both the multi-tile (3x3 grid) accumulation and the padding path.
    M, N, K, T = 8, 300, 8, 4

    key = jax.random.PRNGKey(0)
    k1, k2, k3, k4, k5, k6 = jax.random.split(key, 6)

    X = jax.random.normal(k1, (M, N), jnp.float32)
    V = jax.random.uniform(k2, (K, N), jnp.float32) + 0.1
    I = jax.random.normal(k3, (T, N), jnp.float32)
    iden = jnp.eye(M, dtype=jnp.float32)
    locs = jax.random.uniform(k4, (N, 2), jnp.float32) * 4.0

    W = jax.random.normal(k5, (K, M), jnp.float32) * 0.1       # nn.Linear(M, K)
    bias = jax.random.normal(k6, (K,), jnp.float32) * 0.01
    L1, L2, S1, S2 = 0.5, 0.25, 1.0, 2.0

    # Full-f32 matmuls in the XLA glue/reference so the comparison is tight.
    with jax.default_matmul_precision("float32"):
        outs = superlayer_forward(X, V, I, iden, locs, W, bias,
                                  L1, L2, S1, S2, tile=128)
        outs = jax.block_until_ready(outs)
        refs = superlayer_ref(X, V, I, iden, locs, W, bias, L1, L2, S1, S2)
        refs = jax.block_until_ready(refs)

    names = ("V", "D", "A", "J", "Jm", "b")
    for name, o, r in zip(names, outs, refs):
        assert o.shape == r.shape, f"{name}: shape {o.shape} vs {r.shape}"
        # Structural reassociations (D@V.T as row-scale, V.T@G, N-constants,
        # pre-scaled locs/I) are math-equivalent but not bitwise; 1e-3 still
        # catches real bugs.
        assert jnp.allclose(o, r, rtol=1e-3, atol=1e-3), f"{name}: mismatch"

    print("KERNEL_OK")
</pallas_src>

<mosaic_0001>
module attributes {stable_mosaic.version = 11 : i64} {
  func.func @superlayer_kernel(%arg0: i32, %arg1: i32, %arg2: memref<128x30xf32, #tpu.memory_space<vmem>>, %arg3: memref<6x128xf32, #tpu.memory_space<vmem>>, %arg4: memref<128x9xf32, #tpu.memory_space<vmem>>, %arg5: memref<128x9xf32, #tpu.memory_space<vmem>>, %arg6: memref<128x128xf32, #tpu.memory_space<vmem>>, %arg7: memref<128x9xf32, #tpu.memory_space<vmem>>) attributes {dimension_semantics = [#tpu.dimension_semantics<parallel>, #tpu.dimension_semantics<arbitrary>], iteration_bounds = array<i64: 3, 3>, scalar_prefetch = 0 : i64, scratch_operands = 1 : i64, tpu.core_type = #tpu.core_type<tc>, window_params = [{transform_indices = @transform_0, window_bounds = array<i64: 128, 30>}, {transform_indices = @transform_1, window_bounds = array<i64: 6, 128>}, {transform_indices = @transform_2, window_bounds = array<i64: 128, 9>}, {transform_indices = @transform_3, window_bounds = array<i64: 128, 9>}, {transform_indices = @transform_4, window_bounds = array<i64: 128, 128>}]} {
    %c0_i32 = arith.constant 0 : i32
    %0 = arith.cmpi eq, %arg1, %c0_i32 : i32
    %1 = arith.extui %0 : i1 to i32
    %c0_i32_0 = arith.constant 0 : i32
    %2 = arith.cmpi ne, %1, %c0_i32_0 : i32
    scf.if %2 {
      %cst_21 = arith.constant 0.000000e+00 : f32
      %61 = vector.broadcast %cst_21 : f32 to vector<128x9xf32>
      %c0_22 = arith.constant 0 : index
      %c0_23 = arith.constant 0 : index
      %62 = vector.load %arg7[%c0_22, %c0_23] : memref<128x9xf32, #tpu.memory_space<vmem>>, vector<128x9xf32>
      tpu.vector_store %arg7[%c0_22, %c0_23], %61 {strides = array<i32>} : memref<128x9xf32, #tpu.memory_space<vmem>>, vector<128x9xf32>,
    } else {
    }
    %c0 = arith.constant 0 : index
    %c0_1 = arith.constant 0 : index
    %3 = vector.load %arg2[%c0, %c0_1] : memref<128x30xf32, #tpu.memory_space<vmem>>, vector<128x1xf32>
    %c0_2 = arith.constant 0 : index
    %c1 = arith.constant 1 : index
    %4 = vector.load %arg2[%c0_2, %c1] : memref<128x30xf32, #tpu.memory_space<vmem>>, vector<128x1xf32>
    %c0_3 = arith.constant 0 : index
    %c0_4 = arith.constant 0 : index
    %5 = vector.load %arg3[%c0_3, %c0_4] : memref<6x128xf32, #tpu.memory_space<vmem>>, vector<1x128xf32>
    %c1_5 = arith.constant 1 : index
    %c0_6 = arith.constant 0 : index
    %6 = vector.load %arg3[%c1_5, %c0_6] : memref<6x128xf32, #tpu.memory_space<vmem>>, vector<1x128xf32>
    %7 = vector.broadcast %3 : vector<128x1xf32> to vector<128x128xf32>
    %8 = vector.broadcast %5 : vector<1x128xf32> to vector<128x128xf32>
    %9 = arith.subf %7, %8 : vector<128x128xf32>
    %10 = vector.broadcast %4 : vector<128x1xf32> to vector<128x128xf32>
    %11 = vector.broadcast %6 : vector<1x128xf32> to vector<128x128xf32>
    %12 = arith.subf %10, %11 : vector<128x128xf32>
    %13 = arith.mulf %9, %9 : vector<128x128xf32>
    %14 = arith.mulf %12, %12 : vector<128x128xf32>
    %15 = arith.addf %13, %14 : vector<128x128xf32>
    %c0_7 = arith.constant 0 : index
    %c2 = arith.constant 2 : index
    %16 = vector.load %arg2[%c0_7, %c2] : memref<128x30xf32, #tpu.memory_space<vmem>>, vector<128x4xf32>
    %c2_8 = arith.constant 2 : index
    %c0_9 = arith.constant 0 : index
    %17 = vector.load %arg3[%c2_8, %c0_9] : memref<6x128xf32, #tpu.memory_space<vmem>>, vector<4x128xf32>
    %cst = arith.constant 0.000000e+00 : f32
    %18 = vector.broadcast %cst : f32 to vector<128x128xf32>
    %19 = vector.extract_strided_slice %16 {offsets = [0, 0], sizes = [128, 1], strides = [1, 1]} : vector<128x4xf32> to vector<128x1xf32>
    %20 = vector.extract_strided_slice %17 {offsets = [0, 0], sizes = [1, 128], strides = [1, 1]} : vector<4x128xf32> to vector<1x128xf32>
    %21 = vector.broadcast %19 : vector<128x1xf32> to vector<128x128xf32>
    %22 = vector.broadcast %20 : vector<1x128xf32> to vector<128x128xf32>
    %23 = arith.subf %21, %22 : vector<128x128xf32>
    %24 = math.absf %23 : vector<128x128xf32>
    %25 = arith.addf %18, %24 : vector<128x128xf32>
    %26 = vector.extract_strided_slice %16 {offsets = [0, 1], sizes = [128, 1], strides = [1, 1]} : vector<128x4xf32> to vector<128x1xf32>
    %27 = vector.extract_strided_slice %17 {offsets = [1, 0], sizes = [1, 128], strides = [1, 1]} : vector<4x128xf32> to vector<1x128xf32>
    %28 = vector.broadcast %26 : vector<128x1xf32> to vector<128x128xf32>
    %29 = vector.broadcast %27 : vector<1x128xf32> to vector<128x128xf32>
    %30 = arith.subf %28, %29 : vector<128x128xf32>
    %31 = math.absf %30 : vector<128x128xf32>
    %32 = arith.addf %25, %31 : vector<128x128xf32>
    %33 = vector.extract_strided_slice %16 {offsets = [0, 2], sizes = [128, 1], strides = [1, 1]} : vector<128x4xf32> to vector<128x1xf32>
    %34 = vector.extract_strided_slice %17 {offsets = [2, 0], sizes = [1, 128], strides = [1, 1]} : vector<4x128xf32> to vector<1x128xf32>
    %35 = vector.broadcast %33 : vector<128x1xf32> to vector<128x128xf32>
    %36 = vector.broadcast %34 : vector<1x128xf32> to vector<128x128xf32>
    %37 = arith.subf %35, %36 : vector<128x128xf32>
    %38 = math.absf %37 : vector<128x128xf32>
    %39 = arith.addf %32, %38 : vector<128x128xf32>
    %40 = vector.extract_strided_slice %16 {offsets = [0, 3], sizes = [128, 1], strides = [1, 1]} : vector<128x4xf32> to vector<128x1xf32>
    %41 = vector.extract_strided_slice %17 {offsets = [3, 0], sizes = [1, 128], strides = [1, 1]} : vector<4x128xf32> to vector<1x128xf32>
    %42 = vector.broadcast %40 : vector<128x1xf32> to vector<128x128xf32>
    %43 = vector.broadcast %41 : vector<1x128xf32> to vector<128x128xf32>
    %44 = arith.subf %42, %43 : vector<128x128xf32>
    %45 = math.absf %44 : vector<128x128xf32>
    %46 = arith.addf %39, %45 : vector<128x128xf32>
    %47 = arith.mulf %46, %46 : vector<128x128xf32>
    %48 = arith.addf %15, %47 : vector<128x128xf32>
    %cst_10 = arith.constant 0.000000e+00 : f32
    %49 = vector.broadcast %cst_10 : f32 to vector<128x128xf32>
    %50 = arith.subf %49, %48 : vector<128x128xf32>
    %51 = math.exp %50 : vector<128x128xf32>
    %c0_11 = arith.constant 0 : index
    %c0_12 = arith.constant 0 : index
    %52 = vector.load %arg6[%c0_11, %c0_12] : memref<128x128xf32, #tpu.memory_space<vmem>>, vector<128x128xf32>
    tpu.vector_store %arg6[%c0_11, %c0_12], %51 {strides = array<i32>} : memref<128x128xf32, #tpu.memory_space<vmem>>, vector<128x128xf32>,
    %c0_13 = arith.constant 0 : index
    %c0_14 = arith.constant 0 : index
    %53 = vector.load %arg7[%c0_13, %c0_14] : memref<128x9xf32, #tpu.memory_space<vmem>>, vector<128x9xf32>
    %c0_15 = arith.constant 0 : index
    %c0_16 = arith.constant 0 : index
    %54 = vector.load %arg4[%c0_15, %c0_16] : memref<128x9xf32, #tpu.memory_space<vmem>>, vector<128x9xf32>
    %cst_17 = arith.constant dense<0.000000e+00> : vector<128x9xf32>
    %55 = tpu.matmul %51, %54, %cst_17 {dimension_numbers = #tpu.dot_dimension_numbers<[1], [0], [0], [1], [0, 0, 1, 1], [], []>, precision = #tpu.contract_precision<fp32>} : vector<128x128xf32>, vector<128x9xf32>, vector<128x9xf32> -> vector<128x9xf32>
    %56 = arith.addf %53, %55 : vector<128x9xf32>
    %c0_18 = arith.constant 0 : index
    %c0_19 = arith.constant 0 : index
    %57 = vector.load %arg7[%c0_18, %c0_19] : memref<128x9xf32, #tpu.memory_space<vmem>>, vector<128x9xf32>
    tpu.vector_store %arg7[%c0_18, %c0_19], %56 {strides = array<i32>} : memref<128x9xf32, #tpu.memory_space<vmem>>, vector<128x9xf32>,
    %c2_i32 = arith.constant 2 : i32
    %58 = arith.cmpi eq, %arg1, %c2_i32 : i32
    %59 = arith.extui %58 : i1 to i32
    %c0_i32_20 = arith.constant 0 : i32
    %60 = arith.cmpi ne, %59, %c0_i32_20 : i32
    scf.if %60 {
      %c0_21 = arith.constant 0 : index
      %c0_22 = arith.constant 0 : index
      %61 = vector.load %arg7[%c0_21, %c0_22] : memref<128x9xf32, #tpu.memory_space<vmem>>, vector<128x9xf32>
      %62 = vector.extract_strided_slice %61 {offsets = [0, 0], sizes = [128, 8], strides = [1, 1]} : vector<128x9xf32> to vector<128x8xf32>
      %63 = vector.extract_strided_slice %61 {offsets = [0, 8], sizes = [128, 1], strides = [1, 1]} : vector<128x9xf32> to vector<128x1xf32>
      %c0_23 = arith.constant 0 : index
      %c6 = arith.constant 6 : index
      %64 = vector.load %arg2[%c0_23, %c6] : memref<128x30xf32, #tpu.memory_space<vmem>>, vector<128x8xf32>
      %c0_24 = arith.constant 0 : index
      %c14 = arith.constant 14 : index
      %65 = vector.load %arg2[%c0_24, %c14] : memref<128x30xf32, #tpu.memory_space<vmem>>, vector<128x8xf32>
      %c0_25 = arith.constant 0 : index
      %c22 = arith.constant 22 : index
      %66 = vector.load %arg2[%c0_25, %c22] : memref<128x30xf32, #tpu.memory_space<vmem>>, vector<128x8xf32>
      %cst_26 = arith.constant 5.000000e-01 : f32
      %67 = vector.broadcast %cst_26 : f32 to vector<128x8xf32>
      %68 = arith.mulf %67, %62 : vector<128x8xf32>
      %69 = arith.addf %64, %68 : vector<128x8xf32>
      %cst_27 = arith.constant 7.500000e+01 : f32
      %70 = vector.broadcast %cst_27 : f32 to vector<128x8xf32>
      %71 = arith.addf %69, %70 : vector<128x8xf32>
      %cst_28 = arith.constant dense<0.000000e+00> : vector<128xf32>
      %72 = vector.multi_reduction <add>, %66, %cst_28 [1] : vector<128x8xf32> to vector<128xf32>
      %73 = vector.shape_cast %72 : vector<128xf32> to vector<128x1xf32>
      %cst_29 = arith.constant 5.000000e-01 : f32
      %74 = vector.broadcast %cst_29 : f32 to vector<128x1xf32>
      %75 = arith.mulf %74, %63 : vector<128x1xf32>
      %76 = vector.broadcast %75 : vector<128x1xf32> to vector<128x8xf32>
      %77 = arith.mulf %76, %66 : vector<128x8xf32>
      %78 = arith.addf %65, %77 : vector<128x8xf32>
      %cst_30 = arith.constant 7.500000e+01 : f32
      %79 = vector.broadcast %cst_30 : f32 to vector<128x1xf32>
      %80 = arith.mulf %79, %73 : vector<128x1xf32>
      %81 = vector.broadcast %80 : vector<128x1xf32> to vector<128x8xf32>
      %82 = arith.addf %78, %81 : vector<128x8xf32>
      %83 = math.absf %82 : vector<128x8xf32>
      %cst_31 = arith.constant 1.1920929E-7 : f32
      %84 = vector.broadcast %cst_31 : f32 to vector<128x8xf32>
      %85 = arith.addf %83, %84 : vector<128x8xf32>
      %86 = arith.divf %71, %85 : vector<128x8xf32>
      %87 = arith.mulf %66, %86 : vector<128x8xf32>
      %cst_32 = arith.constant dense<0.000000e+00> : vector<128xf32>
      %88 = vector.multi_reduction <add>, %87, %cst_32 [1] : vector<128x8xf32> to vector<128xf32>
      %89 = vector.shape_cast %88 : vector<128xf32> to vector<128x1xf32>
      %cst_33 = arith.constant 1.1920929E-7 : f32
      %90 = vector.broadcast %cst_33 : f32 to vector<128x1xf32>
      %91 = arith.addf %89, %90 : vector<128x1xf32>
      %92 = vector.broadcast %91 : vector<128x1xf32> to vector<128x8xf32>
      %93 = arith.divf %87, %92 : vector<128x8xf32>
      %c0_34 = arith.constant 0 : index
      %c0_35 = arith.constant 0 : index
      %94 = vector.load %arg5[%c0_34, %c0_35] : memref<128x9xf32, #tpu.memory_space<vmem>>, vector<128x8xf32>
      tpu.vector_store %arg5[%c0_34, %c0_35], %93 {strides = array<i32>} : memref<128x9xf32, #tpu.memory_space<vmem>>, vector<128x8xf32>,
      %c0_36 = arith.constant 0 : index
      %c8 = arith.constant 8 : index
      %95 = vector.load %arg5[%c0_36, %c8] : memref<128x9xf32, #tpu.memory_space<vmem>>, vector<128x1xf32>
      tpu.vector_store %arg5[%c0_36, %c8], %63 {strides = array<i32>} : memref<128x9xf32, #tpu.memory_space<vmem>>, vector<128x1xf32>,
    } else {
    }
    return
  }
  func.func @transform_0(%arg0: i32, %arg1: i32) -> (i32, i32) {
    %c0_i32 = arith.constant 0 : i32
    %c0_i32_0 = arith.constant 0 : i32
    return %arg0, %c0_i32 : i32, i32
  }
  func.func @transform_1(%arg0: i32, %arg1: i32) -> (i32, i32) {
    %c0_i32 = arith.constant 0 : i32
    %c0_i32_0 = arith.constant 0 : i32
    return %c0_i32, %arg1 : i32, i32
  }
  func.func @transform_2(%arg0: i32, %arg1: i32) -> (i32, i32) {
    %c0_i32 = arith.constant 0 : i32
    %c0_i32_0 = arith.constant 0 : i32
    return %arg1, %c0_i32 : i32, i32
  }
  func.func @transform_3(%arg0: i32, %arg1: i32) -> (i32, i32) {
    %c0_i32 = arith.constant 0 : i32
    %c0_i32_0 = arith.constant 0 : i32
    return %arg0, %c0_i32 : i32, i32
  }
  func.func @transform_4(%arg0: i32, %arg1: i32) -> (i32, i32) {
    %c0_i32 = arith.constant 0 : i32
    return %arg0, %arg1 : i32, i32
  }
}

</mosaic_0001>

<bundles_post_ra>
// kernel: tpu_custom_call.1
= control target key start
LH: loop header
LB: loop body
LE: loop exit
PB: predicated region body
PF: predicated region fallthrough
CT: control target
= control target key end

     0   :  { %10 = vsyncpa [#allocation4], 0  ;;  %s6433_s0 = inlined_call_operand.vmem [shape: f32[384,30], index: 0, kind: input, shape index: {}]   ;;  %s6434_s1 = inlined_call_operand.vmem [shape: f32[6,384], index: 1, kind: input, shape index: {}]   ;;  %s6435_s2 = inlined_call_operand.vmem [shape: f32[384,9], index: 2, kind: input, shape index: {}]   ;;  %s6436_s3 = inlined_call_operand.vmem [shape: f32[384,9], index: 3, kind: output, shape index: {0}]   ;;  %s6437_s4 = inlined_call_operand.hbm [shape: f32[384,384], index: 4, kind: output, shape index: {1}]  }
   0x1   :  { %12 = vsyncpa [#allocation4 + $0x1], 0  ;;  %s4456_s15 = smov 0   ;;  %s4458_s16 = smov 0  }
   0x2   :  { %s4460_s17 = smov 0   ;;  %s4462_s18 = smov 0  }
   0x3   :  { %s4464_s19 = smov 0   ;;  %s4466_s20 = smov 0  }
   0x4   :  { %s4468_s21 = smov 0   ;;  %s4470_s22 = smov 0  }
   0x5 LB: > { %6578 = sst [smem:[#allocation6_spill]] %s4405_s20  ;;  %s3516_s23 = sadd.s32 4294967295, %s4413_s22   ;;  %s4413_s22 = sphi %s4470_s22, %s18_s22   ;;  %s4409_s21 = sphi %s4468_s21, %s6773_s21   ;;  %s4405_s20 = sphi %s4466_s20, %s6772_s20   ;;  %s4401_s19 = sphi %s4464_s19, %s6771_s19   ;;  %s4397_s18 = sphi %s4462_s18, %s6770_s18   ;;  %s4393_s17 = sphi %s4460_s17, %s6776_s17   ;;  %s4389_s16 = sphi %s4458_s16, %s6775_s16   ;;  %s4385_s15 = sphi %s4456_s15, %s6774_s15  }
   0x6   : > { %6579 = sst [smem:[#allocation7_spill]] %s4409_s21  ;;  %s3517_s24 = sadd.s32 4294967294, %s4413_s22  }
   0x7   : > { %s27_s25 = sadd.s32 1, %s4405_s20  ;;  %s30_s26 = sadd.s32 1, %s4409_s21 }
   0x8   : > { %p28_p0 = scmp.ge.s32.totalorder %s27_s25, 3  ;;  %p153_p1 = scmp.ne.s32.totalorder %s4393_s17, %s4389_s16 }
   0x9   : > { %p154_p2 = scmp.eq.s32.totalorder %s3516_s23, 8  ;;  %p159_p5 = scmp.ne.s32.totalorder %s4389_s16, %s4385_s15 }
   0xa   : > { %s6778_s25 = smov (%p28_p0, %s27_s25), 0  ;;  %s6780_s26 = smov (!%p28_p0, %s30_s26), %s4409_s21 }
   0xb   : > { %6580 = sst [smem:[#allocation8_spill]] %s6778_s25  ;;  %s139_s27 = ssub.s32 %s4405_s20, %s6778_s25 }
   0xc   : > { %p4507_p3 = por %p154_p2, %p153_p1  ;;  %p32_p4 = scmp.ge.s32.totalorder %s6780_s26, 3 }
   0xd   : > { %p160_p6 = scmp.eq.s32.totalorder %s3517_s24, 8  ;;  %p3520_p7 = scmp.ge.s32.totalorder %s4413_s22, 1 }
   0xe   : > { %s6782_s26 = smov (%p32_p4, %s6780_s26), 0  ;;  %p203_p9 = scmp.lt.s32.totalorder %s4413_s22, 10 }
   0xf   : > { %6582 = sst [smem:[#allocation9_spill]] %s6782_s26  ;;  %p4516_p8 = por %p160_p6, %p159_p5 }
  0x10   : > { %s138_s30 = ssub.s32 %s4409_s21, %s6782_s26  ;;  %s143_s5 = sadd.s32 1, %s4393_s17 }
  0x11   : > { %s140_s6 = sor.u32 %s139_s27, %s138_s30  ;;  %p204_p10 = pnand %p3520_p7, %p203_p9 }
  0x12   : > { %p141_p11 = scmp.eq.s32.totalorder %s140_s6, 0 }
  0x13   : > { %207 = sbr.rel (%p204_p10) target bundleno = 1772 (0x6ec), region = 32 }
  0x14   : > { %s4525_s7 = scalar_select %p141_p11, %s4393_s17, %s143_s5  }
  0x18   : > { %s6439_s8 = sand.u32 1, %s4389_s16   ;;  %s3522_s9 = sshll.u32 %s4401_s19, 4 }
  0x19   : > { %s3521_s10 = sshll.u32 %s6439_s8, 7  ;;  %p244_p12 = scmp.lt.s32.totalorder %s3522_s9, 47 }
  0x1a   : > { %p249_p13 = scmp.lt.s32.totalorder %s4397_s18, 2  ;;  %s3525_s13 = sshll.u32 %s4397_s18, 4 }
  0x1b   : > { %s6784_s9 = smov (!%p244_p12, %s3522_s9), 47  ;;  %p254_p0 = scmp.lt.s32.totalorder %s3525_s13, 47 }
  0x1c   : > { %s250_s11 = scalar_select %p249_p13, %s4397_s18, 2 }
  0x1d   : > { %s3523_s12 = sshll.u32 %s6784_s9, 3  ;;  %s6786_s13 = smov (!%p254_p0, %s3525_s13), 47 }
  0x1e   : > { %s4537_s24 = scalar_lea.vmem %s6433_s0, %s3523_s12  ;;  %s3524_s27 = sshll.u32 %s250_s11, 3 }
  0x1f   : > { %s4542_s6 = scalar_lea.vmem %s6434_s1, %s3524_s27  ;;  %s4547_s25 = scalar_lea.vmem %s6436_s3, %s3523_s12 }
  0x20   : > { %s3526_s9 = sshll.u32 %s6786_s13, 3  ;;  %s4554_s23 = scalar_lea.vmem [#allocation3], %s3521_s10 }
  0x21   : > { %s4552_s14 = scalar_lea.vmem %s6435_s2, %s3526_s9  ;;  %p3529_p1 = scmp.ne.s32.totalorder %s4397_s18, 0 }
  0x23   : > { %269 = sbr.rel (%p3529_p1) target bundleno = 49 (0x31), region = 36 }
  0x28   : > { %vm270_vm0 = vcmask 72704   ;;  %v4415_v0 = vmov 0.0  }
  0x29   : > { %271 = vst.msk [vmem:[#allocation2] sm:$0xff] %vm270_vm0, %v4415_v0  ;;  %272 = vst.msk [vmem:[#allocation2 + $0x8] sm:$0xff] %vm270_vm0, %v4415_v0 }
  0x2a   : > { %273 = vst.msk [vmem:[#allocation2 + $0x10] sm:$0xff] %vm270_vm0, %v4415_v0  ;;  %274 = vst.msk [vmem:[#allocation2 + $0x18] sm:$0xff] %vm270_vm0, %v4415_v0 }
  0x2b   : > { %275 = vst.msk [vmem:[#allocation2 + $0x20] sm:$0xff] %vm270_vm0, %v4415_v0  ;;  %276 = vst.msk [vmem:[#allocation2 + $0x28] sm:$0xff] %vm270_vm0, %v4415_v0 }
  0x2c   : > { %277 = vst.msk [vmem:[#allocation2 + $0x30] sm:$0xff] %vm270_vm0, %v4415_v0  ;;  %278 = vst.msk [vmem:[#allocation2 + $0x38] sm:$0xff] %vm270_vm0, %v4415_v0 }
  0x2d   : > { %279 = vst.msk [vmem:[#allocation2 + $0x40] sm:$0xff] %vm270_vm0, %v4415_v0  ;;  %280 = vst.msk [vmem:[#allocation2 + $0x48] sm:$0xff] %vm270_vm0, %v4415_v0 }
  0x2e   : > { %281 = vst.msk [vmem:[#allocation2 + $0x50] sm:$0xff] %vm270_vm0, %v4415_v0  ;;  %282 = vst.msk [vmem:[#allocation2 + $0x58] sm:$0xff] %vm270_vm0, %v4415_v0 }
  0x2f   : > { %283 = vst.msk [vmem:[#allocation2 + $0x60] sm:$0xff] %vm270_vm0, %v4415_v0  ;;  %284 = vst.msk [vmem:[#allocation2 + $0x68] sm:$0xff] %vm270_vm0, %v4415_v0 }
  0x30   : > { %285 = vst.msk [vmem:[#allocation2 + $0x70] sm:$0xff] %vm270_vm0, %v4415_v0  ;;  %286 = vst.msk [vmem:[#allocation2 + $0x78] sm:$0xff] %vm270_vm0, %v4415_v0 }
  0x31 PF: > { %v4574_v1 = vld [vmem:[%s4537_s24 + $0x8] sm:$0xff]  ;;  %v4577_v2 = vld [vmem:[%s4537_s24] sm:$0xff]  ;;  %v6451_v3 = vmov 2   ;;  %v6449_v4 = vmov 1   ;;  %v6453_v5 = vmov 3   ;;  %v4587_v6 = vld [vmem:[%s4537_s24 + $0x30] sm:$0xff] }
  0x32   : > { %4154 = vset.pattern.permute.xlu1 %v6451_v3  ;;  %4162 = vset.pattern.permute.xlu0 %v6449_v4  ;;  %v6445_v7 = vmov 4   ;;  %v4592_v8 = vld [vmem:[%s4537_s24 + $0x38] sm:$0xff]  ;;  %v289_v9 = vld [vmem:[%s4537_s24 + $0x10] sm:$0xff]  ;;  %v4601_v10 = vld [vmem:[%s4537_s24 + $0x20] sm:$0xff]  ;;  %v6447_v15 = vmov 0   ;;  %v6443_v18 = vmov 5  }
  0x33   : > { %543 = vperm.xlu1 %4154, %v4574_v1   ;;  %406 = vperm.xlu0 %4162, %v4577_v2   ;;  %v4606_v11 = vld [vmem:[%s4537_s24 + $0x28] sm:$0xff]  ;;  %v4609_v12 = vld [vmem:[%s4537_s24 + $0x18] sm:$0xff]  ;;  %v4615_v13 = vld [vmem:[%s4537_s24 + $0x50] sm:$0xff]  ;;  %vm2432_vm1 = vcmask 72704   ;;  %p3532_p2 = scmp.ne.s32.totalorder %s4397_s18, 2 }
  0x34   : > { %v4621_v14 = vld [vmem:[%s4537_s24 + $0x58] sm:$0xff]  ;;  %v4634_v16 = vld [vmem:[%s4537_s24 + $0x60] sm:$0xff]  ;;  %v4640_v17 = vld [vmem:[%s4537_s24 + $0x68] sm:$0xff] }
  0x35   : > { %v1129_v19 = vld [vmem:[%s4552_s14 + $0x78] sm:$0xff]  ;;  %v1128_v21 = vld [vmem:[%s4552_s14 + $0x70] sm:$0xff]  ;;  %v1127_v24 = vld [vmem:[%s4552_s14 + $0x68] sm:$0xff] }
  0x36   : > { %v4668_v20 = vand.u32 4294901760, %v1129_v19  ;;  %v4676_v23 = vand.u32 4294901760, %v1128_v21  ;;  %v4688_v27 = vand.u32 4294901760, %v1127_v24  ;;  %v1126_v28 = vld [vmem:[%s4552_s14 + $0x60] sm:$0xff]  ;;  %v1125_v33 = vld [vmem:[%s4552_s14 + $0x58] sm:$0xff]  ;;  %v1124_v42 = vld [vmem:[%s4552_s14 + $0x50] sm:$0xff] }
  0x37   : > { %4155 = vset.pattern.permute.xlu1 %v6453_v5  ;;  %410 = vperm.xlu0 %4162, %v4574_v1   ;;  %v4702_v32 = vand.u32 4294901760, %v1126_v28  ;;  %v4717_v38 = vand.u32 4294901760, %v1125_v33  ;;  %v4732_v44 = vand.u32 4294901760, %v1124_v42  ;;  %v1123_v46 = vld [vmem:[%s4552_s14 + $0x48] sm:$0xff]  ;;  %v1122_v52 = vld [vmem:[%s4552_s14 + $0x40] sm:$0xff]  ;;  %v1121_v57 = vld [vmem:[%s4552_s14 + $0x38] sm:$0xff] }
  0x38   : > { %659 = vperm.xlu1 %4155, %v4574_v1   ;;  %v4674_v22 = vsub.f32 %v1129_v19, %v4668_v20  ;;  %3731 = vmatprep.subr.mxu0 %v4668_v20  ;;  %v4686_v26 = vsub.f32 %v1128_v21, %v4676_v23  ;;  %v4700_v31 = vsub.f32 %v1127_v24, %v4688_v27  ;;  %v4745_v50 = vand.u32 4294901760, %v1123_v46  ;;  %v1120_v63 = vld [vmem:[%s4552_s14 + $0x30] sm:$0xff]  ;;  %v1119_v19 = vld [vmem:[%s4552_s14 + $0x28] sm:$0xff] }
  0x39   : > { %3732 = vmatpush3.msra.mxu0 %v4668_v20  ;;  %v4714_v37 = vsub.f32 %v1126_v28, %v4702_v32  ;;  %6590 = vst [vmem:[#allocation16_spill] sm:$0xff] %v4717_v38  ;;  %v4730_v43 = vsub.f32 %v1125_v33, %v4717_v38  ;;  %6593 = vst [vmem:[#allocation19_spill] sm:$0xff] %v4732_v44  ;;  %v4743_v49 = vsub.f32 %v1124_v42, %v4732_v44  ;;  %v1118_v33 = vld [vmem:[%s4552_s14 + $0x20] sm:$0xff] }
  0x3a   : > { %v4683_v25 = vand.u32 4294901760, %v4674_v22  ;;  %6585 = vst [vmem:[#allocation11_spill] sm:$0xff] %v4686_v26  ;;  %3733 = vmatprep.subr.mxu0 %v4676_v23  ;;  %v4697_v30 = vand.u32 4294901760, %v4686_v26  ;;  %6587 = vst [vmem:[#allocation13_spill] sm:$0xff] %v4700_v31  ;;  %v4711_v36 = vand.u32 4294901760, %v4700_v31  ;;  %v4756_v55 = vsub.f32 %v1123_v46, %v4745_v50 }
  0x3b   : > { %430 = vperm.xlu0 %4162, %v4587_v6   ;;  %3734 = vmatpush3.msra.mxu0 %v4676_v23  ;;  %6589 = vst [vmem:[#allocation15_spill] sm:$0xff] %v4714_v37  ;;  %v4723_v41 = vand.u32 4294901760, %v4714_v37  ;;  %6592 = vst [vmem:[#allocation18_spill] sm:$0xff] %v4730_v43  ;;  %v4740_v48 = vand.u32 4294901760, %v4730_v43  ;;  %v4753_v54 = vand.u32 4294901760, %v4743_v49  ;;  %v4758_v56 = vand.u32 4294901760, %v1122_v52 }
  0x3c   : > { %4156 = vset.pattern.permute.xlu1 %v6445_v7  ;;  %6584 = vst [vmem:[#allocation10_spill] sm:$0xff] %v4683_v25  ;;  %v1375_v29 = vsub.f32 %v4674_v22, %v4683_v25  ;;  %6586 = vst [vmem:[#allocation12_spill] sm:$0xff] %v4697_v30  ;;  %3735 = vmatprep.subr.mxu0 %v4688_v27  ;;  %v1382_v35 = vsub.f32 %v4686_v26, %v4697_v30  ;;  %v4768_v60 = vand.u32 4294901760, %v4756_v55 }
  0x3d   : > { %771 = vperm.xlu1 %4156, %v4577_v2   ;;  %6588 = vst [vmem:[#allocation14_spill] sm:$0xff] %v4711_v36  ;;  %3736 = vmatpush3.msra.mxu0 %v4688_v27  ;;  %v1389_v40 = vsub.f32 %v4700_v31, %v4711_v36  ;;  %6591 = vst [vmem:[#allocation17_spill] sm:$0xff] %v4723_v41  ;;  %v1396_v45 = vsub.f32 %v4714_v37, %v4723_v41  ;;  %v4773_v62 = vand.u32 4294901760, %v1121_v57  ;;  %v6634_v41 = vmov 5  }
  0x3e   : > { %v1376_v34 = vand.u32 4294901760, %v1375_v29  ;;  %3737 = vmatprep.subr.mxu0 %v4702_v32  ;;  %v1383_v39 = vand.u32 4294901760, %v1382_v35  ;;  %6594 = vst [vmem:[#allocation20_spill] sm:$0xff] %v4740_v48  ;;  %6595 = vst [vmem:[#allocation21_spill] sm:$0xff] %v4743_v49  ;;  %v1403_v53 = vsub.f32 %v4730_v43, %v4740_v48  ;;  %v1410_v59 = vsub.f32 %v4743_v49, %v4753_v54 }
  0x3f   : > { %434 = vperm.xlu0 %4162, %v4592_v8   ;;  %3738 = vmatpush3.msra.mxu0 %v4702_v32  ;;  %v1390_v47 = vand.u32 4294901760, %v1389_v40  ;;  %6596 = vst [vmem:[#allocation22_spill] sm:$0xff] %v4745_v50  ;;  %v1397_v51 = vand.u32 4294901760, %v1396_v45  ;;  %6597 = vst [vmem:[#allocation23_spill] sm:$0xff] %v4753_v54  ;;  %v4771_v61 = vsub.f32 %v1122_v52, %v4758_v56  ;;  %v4796_v29 = vand.u32 4294901760, %v1119_v19  ;;  %v1117_v45 = vld [vmem:[%s4552_s14 + $0x18] sm:$0xff] }
  0x40   : > { %3787 = vmatprep.subr.mxu1 %v1376_v34  ;;  %3739 = vmatprep.subr.mxu0 %v4717_v38  ;;  %6598 = vst [vmem:[#allocation24_spill] sm:$0xff] %v4756_v55  ;;  %6599 = vst [vmem:[#allocation25_spill] sm:$0xff] %v4758_v56  ;;  %v1404_v58 = vand.u32 4294901760, %v1403_v53  ;;  %v1411_v0 = vand.u32 4294901760, %v1410_v59  ;;  %v4810_v40 = vand.u32 4294901760, %v1118_v33  ;;  %v4825_v52 = vand.u32 4294901760, %v1117_v45 }
  0x41   : > { %4157 = vset.pattern.permute.xlu1 %v6451_v3  ;;  %3788 = vmatpush3.msra.mxu1 %v1376_v34  ;;  %6600 = vst [vmem:[#allocation26_spill] sm:$0xff] %v4768_v60  ;;  %6601 = vst [vmem:[#allocation27_spill] sm:$0xff] %v4771_v61  ;;  %v6632_v54 = vmov 4  }
  0x42   : > { %547 = vperm.xlu1 %4157, %v289_v9   ;;  %3789 = vmatprep.subr.mxu1 %v1383_v39  ;;  %6602 = vst [vmem:[#allocation28_spill] sm:$0xff] %v4773_v62  ;;  %6607 = vst [vmem:[#allocation33_spill] sm:$0xff] %v4796_v29 }
  0x43   : > { %4187 = vset.pattern.permute.xlu0 %v6451_v3  ;;  %3740 = vmatpush3.msra.mxu0 %v4717_v38  ;;  %6611 = vst [vmem:[#allocation37_spill] sm:$0xff] %v4810_v40  ;;  %6614 = vst [vmem:[#allocation40_spill] sm:$0xff] %v4825_v52 }
  0x44   : > { %539 = vperm.xlu0 %4187, %v4577_v2   ;;  %3790 = vmatpush3.msra.mxu1 %v1383_v39  ;;  %v4807_v39 = vsub.f32 %v1119_v19, %v4796_v29  ;;  %v1115_v19 = vld [vmem:[%s4552_s14 + $0x8] sm:$0xff] }
  0x45   : > { %3741 = vmatprep.subr.mxu0 %v4732_v44  ;;  %3791 = vmatprep.subr.mxu1 %v1390_v47 }
  0x46   : > { %4158 = vset.pattern.permute.xlu1 %v6453_v5  ;;  %3792 = vmatpush3.msra.mxu1 %v1390_v47  ;;  %6610 = vst [vmem:[#allocation36_spill] sm:$0xff] %v4807_v39  ;;  %v4819_v47 = vand.u32 4294901760, %v4807_v39 }
  0x47   : > { %663 = vperm.xlu1 %4158, %v289_v9   ;;  %3742 = vmatpush3.msra.mxu0 %v4732_v44 }
  0x48   : > { %555 = vperm.xlu0 %4187, %v4601_v10   ;;  %3793 = vmatprep.subr.mxu1 %v1397_v51  ;;  %6612 = vst [vmem:[#allocation38_spill] sm:$0xff] %v4819_v47  ;;  %v1445_v59 = vsub.f32 %v4807_v39, %v4819_v47 }
  0x49   : > { %3743 = vmatprep.subr.mxu0 %v4745_v50  ;;  %3794 = vmatpush3.msra.mxu1 %v1397_v51  ;;  %v4823_v51 = vsub.f32 %v1118_v33, %v4810_v40  ;;  %v4851_v33 = vand.u32 4294901760, %v1115_v19 }
  0x4a   : > { %3795 = vmatprep.subr.mxu1 %v1404_v58  ;;  %3744 = vmatpush3.msra.mxu0 %v4745_v50 }
  0x4b   : > { %4159 = vset.pattern.permute.xlu1 %v6451_v3  ;;  %3796 = vmatpush3.msra.mxu1 %v1404_v58  ;;  %6613 = vst [vmem:[#allocation39_spill] sm:$0xff] %v4823_v51  ;;  %6619 = vst [vmem:[#allocation45_spill] sm:$0xff] %v4851_v33 }
  0x4c   : > { %559 = vperm.xlu0 %4187, %v4606_v11   ;;  %551 = vperm.xlu1 %4159, %v4609_v12  }
  0x4d   : > { %3797 = vmatprep.subr.mxu1 %v1411_v0  ;;  %3745 = vmatprep.subr.mxu0 %v4758_v56 }
  0x4e   : > { %3798 = vmatpush3.msra.mxu1 %v1411_v0  ;;  %v4836_v0 = vsub.f32 %v1117_v45, %v4825_v52  ;;  %3746 = vmatpush3.msra.mxu0 %v4758_v56  ;;  %v1446_v45 = vand.u32 4294901760, %v1445_v59  ;;  %v4874_v59 = vsub.f32 %v1115_v19, %v4851_v33 }
  0x4f   : > { %3747 = vmatprep.subr.mxu0 %v4773_v62 }
  0x50   : > { %579 = vperm.xlu0 %4187, %v4615_v13   ;;  %4160 = vset.pattern.permute.xlu1 %v6453_v5  ;;  %6616 = vst [vmem:[#allocation42_spill] sm:$0xff] %v4836_v0  ;;  %6622 = vst [vmem:[#allocation48_spill] sm:$0xff] %v4874_v59 }
  0x51   : > { %667 = vperm.xlu1 %4160, %v4609_v12   ;;  %3748 = vmatpush3.msra.mxu0 %v4773_v62 }
  0x54   : > { %583 = vperm.xlu0 %4187, %v4621_v14  }
  0x55   : > { %4161 = vset.pattern.permute.xlu1 %v6447_v15 }
  0x56   : > { %307 = vperm.xlu1 %4161, %v4577_v2  }
  0x58   : > { %4191 = vset.pattern.permute.xlu0 %v6453_v5 }
  0x59   : > { %655 = vperm.xlu0 %4191, %v4577_v2  }
  0x5a   : > { %4163 = vset.pattern.permute.xlu1 %v6445_v7 }
  0x5b   : > { %779 = vperm.xlu1 %4163, %v289_v9  }
  0x5d   : > { %679 = vperm.xlu0 %4191, %v4587_v6  }
  0x5f   : > { %4164 = vset.pattern.permute.xlu1 %v6447_v15 }
  0x60   : > { %312 = vperm.xlu1 %4164, %v4574_v1  }
  0x61   : > { %683 = vperm.xlu0 %4191, %v4592_v8  }
  0x64   : > { %4165 = vset.pattern.permute.xlu1 %v6445_v7 }
  0x65   : > { %703 = vperm.xlu0 %4191, %v4634_v16   ;;  %783 = vperm.xlu1 %4165, %v4609_v12  }
  0x69   : > { %707 = vperm.xlu0 %4191, %v4640_v17   ;;  %4166 = vset.pattern.permute.xlu1 %v6453_v5 }
  0x6a   : > { %671 = vperm.xlu1 %4166, %v4601_v10  }
  0x6d   : > { %4200 = vset.pattern.permute.xlu0 %v6447_v15 }
  0x6e   : > { %327 = vperm.xlu0 %4200, %v4601_v10   ;;  %4167 = vset.pattern.permute.xlu1 %v6443_v18 }
  0x6f   : > { %895 = vperm.xlu1 %4167, %v289_v9  }
  0x72   : > { %332 = vperm.xlu0 %4200, %v4606_v11  }
  0x73   : > { %4168 = vset.pattern.permute.xlu1 %v6453_v5 }
  0x74   : > { %675 = vperm.xlu1 %4168, %v4606_v11  }
  0x76   : > { %357 = vperm.xlu0 %4200, %v4615_v13  }
  0x78   : > { %4169 = vset.pattern.permute.xlu1 %v6447_v15 }
  0x79   : > { %317 = vperm.xlu1 %4169, %v289_v9  }
  0x7a   : > { %362 = vperm.xlu0 %4200, %v4621_v14  }
  0x7d   : > { %4170 = vset.pattern.permute.xlu1 %v6449_v4 }
  0x7e   : > { %4204 = vset.pattern.permute.xlu0 %v6445_v7  ;;  %414 = vperm.xlu1 %4170, %v289_v9   ;;  %v4782_v9 = vand.u32 4294901760, %v1120_v63 }
  0x7f   : > { %775 = vperm.xlu0 %4204, %v4574_v1  }
  0x80   : > { %6604 = vst [vmem:[#allocation30_spill] sm:$0xff] %v4782_v9  ;;  %v4794_v28 = vsub.f32 %v1120_v63, %v4782_v9  ;;  %v4833_v63 = vand.u32 4294901760, %v4823_v51  ;;  %3749 = vmatprep.subr.mxu0 %v4782_v9 }
  0x81   : > { %3750 = vmatpush3.msra.mxu0 %v4782_v9 }
  0x82   : > { %4171 = vset.pattern.permute.xlu1 %v6447_v15  ;;  %6606 = vst [vmem:[#allocation32_spill] sm:$0xff] %v4794_v28  ;;  %v4804_v35 = vand.u32 4294901760, %v4794_v28  ;;  %6615 = vst [vmem:[#allocation41_spill] sm:$0xff] %v4833_v63  ;;  %3751 = vmatprep.subr.mxu0 %v4796_v29 }
  0x83   : > { %787 = vperm.xlu0 %4204, %v4601_v10   ;;  %322 = vperm.xlu1 %4171, %v4609_v12  }
  0x84   : > { %6609 = vst [vmem:[#allocation35_spill] sm:$0xff] %v4804_v35  ;;  %v1438_v46 = vsub.f32 %v4794_v28, %v4804_v35  ;;  %3752 = vmatpush3.msra.mxu0 %v4796_v29 }
  0x85   : > { %3753 = vmatprep.subr.mxu0 %v4810_v40 }
  0x86   : > { %v1439_v58 = vand.u32 4294901760, %v1438_v46  ;;  %3754 = vmatpush3.msra.mxu0 %v4810_v40 }
  0x87   : > { %791 = vperm.xlu0 %4204, %v4606_v11   ;;  %4172 = vset.pattern.permute.xlu1 %v6449_v4 }
  0x88   : > { %418 = vperm.xlu1 %4172, %v4609_v12   ;;  %3755 = vmatprep.subr.mxu0 %v4825_v52 }
  0x89   : > { %3756 = vmatpush3.msra.mxu0 %v4825_v52 }
  0x8b   : > { %799 = vperm.xlu0 %4204, %v4592_v8  }
  0x8c   : > { %4173 = vset.pattern.permute.xlu1 %v6451_v3 }
  0x8d   : > { %563 = vperm.xlu1 %4173, %v4587_v6  }
  0x8f   : > { %811 = vperm.xlu0 %4204, %v4615_v13  }
  0x91   : > { %4174 = vset.pattern.permute.xlu1 %v6443_v18 }
  0x92   : > { %903 = vperm.xlu1 %4174, %v4601_v10  }
  0x93   : > { %815 = vperm.xlu0 %4204, %v4621_v14  }
  0x96   : > { %4175 = vset.pattern.permute.xlu1 %v6451_v3 }
  0x97   : > { %823 = vperm.xlu0 %4204, %v4640_v17   ;;  %567 = vperm.xlu1 %4175, %v4592_v8  }
  0x9b   : > { %4206 = vset.pattern.permute.xlu0 %v6443_v18  ;;  %4176 = vset.pattern.permute.xlu1 %v6443_v18  ;;  %v1114_v18 = vld [vmem:[%s4552_s14] sm:$0xff] }
  0x9c   : > { %887 = vperm.xlu0 %4206, %v4577_v2   ;;  %907 = vperm.xlu1 %4176, %v4606_v11   ;;  %v4780_v2 = vand.u32 4294901760, %v4771_v61 }
  0x9e   : > { %6603 = vst [vmem:[#allocation29_spill] sm:$0xff] %v4780_v2  ;;  %v1424_v24 = vsub.f32 %v4771_v61, %v4780_v2  ;;  %v4915_v2 = vld [vmem:[%s4537_s24 + $0x70] sm:$0xff]  ;;  %v537_v61 = vld [vmem:[%s4542_s6 + $0x2] sm:$0xf] }
  0xa0   : > { %891 = vperm.xlu0 %4206, %v4574_v1   ;;  %4177 = vset.pattern.permute.xlu1 %v6449_v4  ;;  %v1417_v1 = vsub.f32 %v4756_v55, %v4768_v60  ;;  %v1425_v34 = vand.u32 4294901760, %v1424_v24  ;;  %v4849_v24 = vand.u32 4294901760, %v4836_v0 }
  0xa1   : > { %422 = vperm.xlu1 %4177, %v4601_v10   ;;  %v4787_v10 = vsub.f32 %v1121_v57, %v4773_v62  ;;  %v1116_v57 = vld [vmem:[%s4552_s14 + $0x10] sm:$0xff] }
  0xa2   : > { %v1418_v21 = vand.u32 4294901760, %v1417_v1  ;;  %v4839_v1 = vand.u32 4294901760, %v1116_v57  ;;  %6618 = vst [vmem:[#allocation44_spill] sm:$0xff] %v4849_v24  ;;  %v1459_v15 = vsub.f32 %v4836_v0, %v4849_v24  ;;  %v4885_v24 = vand.u32 4294901760, %v4874_v59 }
  0xa3   : > { %6605 = vst [vmem:[#allocation31_spill] sm:$0xff] %v4787_v10 }
  0xa4   : > { %899 = vperm.xlu0 %4206, %v4609_v12   ;;  %v4800_v12 = vand.u32 4294901760, %v4787_v10  ;;  %3799 = vmatprep.subr.mxu1 %v1418_v21  ;;  %6617 = vst [vmem:[#allocation43_spill] sm:$0xff] %v4839_v1  ;;  %v4859_v46 = vsub.f32 %v1116_v57, %v4839_v1  ;;  %v4876_v57 = vand.u32 4294901760, %v1114_v18  ;;  %6624 = vst [vmem:[#allocation50_spill] sm:$0xff] %v4885_v24 }
  0xa5   : > { %4178 = vset.pattern.permute.xlu1 %v6445_v7  ;;  %3800 = vmatpush3.msra.mxu1 %v1418_v21  ;;  %v1452_v21 = vsub.f32 %v4823_v51, %v4833_v63  ;;  %v4864_v7 = vld [vmem:[%s4537_s24 + $0x48] sm:$0xff]  ;;  %v1473_v47 = vsub.f32 %v4874_v59, %v4885_v24  ;;  %v602_v51 = vlaneseq }
  0xa6   : > { %795 = vperm.xlu1 %4178, %v4587_v6   ;;  %6608 = vst [vmem:[#allocation34_spill] sm:$0xff] %v4800_v12  ;;  %v1431_v42 = vsub.f32 %v4787_v10, %v4800_v12  ;;  %3801 = vmatprep.subr.mxu1 %v1425_v34  ;;  %6620 = vst [vmem:[#allocation46_spill] sm:$0xff] %v4859_v46  ;;  %v4888_v19 = vsub.f32 %v1114_v18, %v4876_v57  ;;  %v6628_v12 = vmov 2  }
  0xa7   : > { %3802 = vmatpush3.msra.mxu1 %v1425_v34  ;;  %6623 = vst [vmem:[#allocation49_spill] sm:$0xff] %v4876_v57  ;;  %3757 = vmatprep.subr.mxu0 %v4839_v1 }
  0xa8   : > { %911 = vperm.xlu0 %4206, %v4587_v6   ;;  %v1432_v53 = vand.u32 4294901760, %v1431_v42  ;;  %6625 = vst [vmem:[#allocation51_spill] sm:$0xff] %v4888_v19  ;;  %3758 = vmatpush3.msra.mxu0 %v4839_v1  ;;  %v603_v1 = vshrl.u32 %v602_v51, 7 }
  0xa9   : > { %3759 = vmatprep.subr.mxu0 %v4851_v33 }
  0xaa   : > { %4179 = vset.pattern.permute.xlu1 %v6449_v4  ;;  %3803 = vmatprep.subr.mxu1 %v1432_v53  ;;  %v1453_v4 = vand.u32 4294901760, %v1452_v21  ;;  %v6626_v21 = vmov 3   ;;  %v604_v52 = vsub.s32 0, %v603_v1  ;;  %v836_v10 = vsub.s32 2, %v603_v1 }
  0xab   : > { %426 = vperm.xlu1 %4179, %v4606_v11   ;;  %v4843_v11 = vld [vmem:[%s4537_s24 + $0x40] sm:$0xff]  ;;  %3804 = vmatpush3.msra.mxu1 %v1432_v53  ;;  %v4871_v53 = vand.u32 4294901760, %v4859_v46 }
  0xac   : > { %915 = vperm.xlu0 %4206, %v4592_v8   ;;  %3805 = vmatprep.subr.mxu1 %v1439_v58  ;;  %v4998_v51 = vrot.slane %v537_v61, %v604_v52  ;;  %v5000_v55 = vrot.slane %v537_v61, %v836_v10 }
  0xad   : > { %6621 = vst [vmem:[#allocation47_spill] sm:$0xff] %v4871_v53  ;;  %3806 = vmatpush3.msra.mxu1 %v1439_v58  ;;  %v1466_v5 = vsub.f32 %v4859_v46, %v4871_v53  ;;  %v1460_v58 = vand.u32 4294901760, %v1459_v15  ;;  %v4898_v53 = vand.u32 4294901760, %v4888_v19  ;;  %3760 = vmatpush3.msra.mxu0 %v4851_v33 }
  0xae   : > { %v4853_v42 = vpop.permute.xlu1 %543  ;;  %v4855_v34 = vpop.permute.xlu0 %406  ;;  %3807 = vmatprep.subr.mxu1 %v1446_v45  ;;  %3761 = vmatprep.subr.mxu0 %v4876_v57 }
  0xaf   : > { %4180 = vset.pattern.permute.xlu1 %v6451_v3  ;;  %3808 = vmatpush3.msra.mxu1 %v1446_v45  ;;  %6627 = vst [vmem:[#allocation52_spill] sm:$0xff] %v4898_v53  ;;  %v1467_v18 = vand.u32 4294901760, %v1466_v5  ;;  %v1480_v15 = vsub.f32 %v4888_v19, %v4898_v53  ;;  %v1474_v45 = vand.u32 4294901760, %v1473_v47 }
  0xb0   : > { %571 = vperm.xlu1 %4180, %v4843_v11   ;;  %923 = vperm.xlu0 %4206, %v4864_v7  }
  0xb1   : > { %3809 = vmatprep.subr.mxu1 %v1453_v4  ;;  %v1481_v5 = vand.u32 4294901760, %v1480_v15  ;;  %3762 = vmatpush3.msra.mxu0 %v4876_v57 }
  0xb2   : > { %v4879_v3 = vpop.permute.xlu0 %410  ;;  %3810 = vmatpush3.msra.mxu1 %v1453_v4  ;;  %3843 = vmatprep.subr.mxu0 %v4674_v22 }
  0xb3   : > { %v4890_v63 = vpop.permute.xlu1 %659  ;;  %3811 = vmatprep.subr.mxu1 %v1460_v58 }
  0xb4   : > { %4181 = vset.pattern.permute.xlu1 %v6626_v21  ;;  %935 = vperm.xlu0 %4206, %v4634_v16  }
  0xb5   : > { %687 = vperm.xlu1 %4181, %v4843_v11   ;;  %3812 = vmatpush3.msra.mxu1 %v1460_v58 }
  0xb6   : > { %v4901_v35 = vpop.permute.xlu0 %430  ;;  %3813 = vmatprep.subr.mxu1 %v1467_v18 }
  0xb7   : > { %3814 = vmatpush3.msra.mxu1 %v1467_v18  ;;  %v6630_v18 = vmov 1  }
  0xb8   : > { %v4907_v24 = vpop.permute.xlu1 %771  ;;  %939 = vperm.xlu0 %4206, %v4640_v17   ;;  %3815 = vmatprep.subr.mxu1 %v1474_v45 }
  0xb9   : > { %4182 = vset.pattern.permute.xlu1 %v6628_v12  ;;  %3816 = vmatpush3.msra.mxu1 %v1474_v45  ;;  %v6631_v45 = vmov 0  }
  0xba   : > { %575 = vperm.xlu1 %4182, %v4864_v7   ;;  %v4912_v4 = vpop.permute.xlu0 %434  ;;  %3817 = vmatprep.subr.mxu1 %v1481_v5 }
  0xbb   : > { %6629 = vst [vmem:[#allocation53_spill] sm:$0xff] %v4912_v4  ;;  %3818 = vmatpush3.msra.mxu1 %v1481_v5 }
  0xbc   : > { %943 = vperm.xlu0 %4206, %v4915_v2   ;;  %3899 = vmatprep.subr.mxu1 %v4668_v20 }
  0xbd   : > { %v4919_v47 = vpop.permute.xlu1 %547 }
  0xbe   : > { %4183 = vset.pattern.permute.xlu1 %v6626_v21 }
  0xbf   : > { %691 = vperm.xlu1 %4183, %v4864_v7   ;;  %v4924_v58 = vpop.permute.xlu0 %539 }
  0xc0   : > { %4215 = vset.pattern.permute.xlu0 %v6630_v18 }
  0xc1   : > { %454 = vperm.xlu0 %4215, %v4634_v16  }
  0xc2   : > { %v4931_v15 = vpop.permute.xlu1 %663 }
  0xc3   : > { %4184 = vset.pattern.permute.xlu1 %v6631_v45  ;;  %v4936_v5 = vpop.permute.xlu0 %555 }
  0xc4   : > { %337 = vperm.xlu1 %4184, %v4587_v6  }
  0xc5   : > { %458 = vperm.xlu0 %4215, %v4640_v17  }
  0xc7   : > { %v4944_v53 = vpop.permute.xlu1 %551  ;;  %v4946_v60 = vpop.permute.xlu0 %559 }
  0xc8   : > { %4185 = vset.pattern.permute.xlu1 %v6632_v54 }
  0xc9   : > { %803 = vperm.xlu1 %4185, %v4843_v11   ;;  %462 = vperm.xlu0 %4215, %v4915_v2  }
  0xcb   : > { %v4952_v6 = vpop.permute.xlu0 %579 }
  0xcc   : > { %6633 = vst [vmem:[#allocation54_spill] sm:$0xff] %v4952_v6  ;;  %v4954_v48 = vpop.permute.xlu1 %667 }
  0xcd   : > { %4186 = vset.pattern.permute.xlu1 %v6631_v45  ;;  %4219 = vset.pattern.permute.xlu0 %v6634_v41 }
  0xce   : > { %342 = vperm.xlu1 %4186, %v4592_v8  }
  0xcf   : > { %v4959_v36 = vpop.permute.xlu0 %583 }
  0xd0   : > { %6635 = vst [vmem:[#allocation55_spill] sm:$0xff] %v4959_v36  ;;  %v720_v36 = vsub.s32 1, %v603_v1 }
  0xd1   : > { %v4961_v30 = vpop.permute.xlu1 %307 }
  0xd2   : > { %4188 = vset.pattern.permute.xlu1 %v6632_v54  ;;  %v4993_v29 = vrot.slane %v537_v61, %v720_v36  ;;  %v608_v36 = vsub.f32 %v4919_v47, %v4998_v51 }
  0xd3   : > { %807 = vperm.xlu1 %4188, %v4864_v7  }
  0xd4   : > { %v4965_v25 = vpop.permute.xlu0 %655  ;;  %v724_v9 = vsub.f32 %v4931_v15, %v4993_v29 }
  0xd6   : > { %v780_v19 = vpop.permute.xlu1 %779  ;;  %v740_v52 = vand.u32 2147483647, %v724_v9 }
  0xd7   : > { %4189 = vset.pattern.permute.xlu1 %v6626_v21  ;;  %v840_v49 = vsub.f32 %v780_v19, %v5000_v55  ;;  %v5021_v19 = vld [vmem:[%s4542_s6] ss:$0 sm:$0xff] }
  0xd8   : > { %695 = vperm.xlu1 %4189, %v4615_v13   ;;  %v4969_v59 = vpop.permute.xlu0 %679 }
  0xdb   : > { %v4971_v46 = vpop.permute.xlu1 %312 }
  0xdc   : > { %4190 = vset.pattern.permute.xlu1 %v6634_v41  ;;  %v4974_v8 = vpop.permute.xlu0 %683  ;;  %v390_v4 = vsub.f32 %v4971_v46, %v5021_v19 }
  0xdd   : > { %919 = vperm.xlu1 %4190, %v4843_v11  }
  0xe0   : > { %v4977_v0 = vpop.permute.xlu1 %783  ;;  %v4979_v57 = vpop.permute.xlu0 %703 }
  0xe1   : > { %6636 = vst [vmem:[#allocation56_spill] sm:$0xff] %v4979_v57  ;;  %4192 = vset.pattern.permute.xlu1 %v6626_v21  ;;  %v952_v57 = vsub.s32 3, %v603_v1 }
  0xe2   : > { %699 = vperm.xlu1 %4192, %v4621_v14  }
  0xe3   : > { %v5004_v6 = vrot.slane %v537_v61, %v952_v57  ;;  %v624_v61 = vand.u32 2147483647, %v608_v36  ;;  %v856_v57 = vand.u32 2147483647, %v840_v49 }
  0xe4   : > { %v4983_v33 = vpop.permute.xlu0 %707 }
  0xe5   : > { %6637 = vst [vmem:[#allocation57_spill] sm:$0xff] %v4983_v33  ;;  %v4985_v39 = vpop.permute.xlu1 %671  ;;  %v756_v47 = vadd.f32 %v740_v52, %v624_v61 }
  0xe6   : > { %4193 = vset.pattern.permute.xlu1 %v6631_v45 }
  0xe7   : > { %347 = vperm.xlu1 %4193, %v4843_v11   ;;  %v872_v56 = vadd.f32 %v856_v57, %v756_v47 }
  0xe9   : > { %v4989_v28 = vpop.permute.xlu0 %327 }
  0xea   : > { %v896_v40 = vpop.permute.xlu1 %895 }
  0xeb   : > { %4194 = vset.pattern.permute.xlu1 %v6630_v18 }
  0xec   : > { %438 = vperm.xlu1 %4194, %v4843_v11   ;;  %v956_v11 = vsub.f32 %v896_v40, %v5004_v6 }
  0xed   : > { %v4996_v33 = vpop.permute.xlu0 %332 }
  0xee   : > { %v972_v43 = vand.u32 2147483647, %v956_v11 }
  0xef   : > { %v5006_v1 = vpop.permute.xlu1 %675 }
  0xf0   : > { %4195 = vset.pattern.permute.xlu1 %v6631_v45  ;;  %v988_v40 = vadd.f32 %v972_v43, %v872_v56 }
  0xf1   : > { %352 = vperm.xlu1 %4195, %v4864_v7   ;;  %v5013_v10 = vpop.permute.xlu0 %357 }
  0xf2   : > { %6638 = vst [vmem:[#allocation58_spill] sm:$0xff] %v5013_v10  ;;  %v5025_v10 = vld [vmem:[%s4542_s6 + $0x1] ss:$0 sm:$0xff] }
  0xf4   : > { %v318_v15 = vpop.permute.xlu1 %317 }
  0xf5   : > { %4196 = vset.pattern.permute.xlu1 %v6630_v18  ;;  %v5017_v62 = vpop.permute.xlu0 %362  ;;  %v391_v37 = vsub.f32 %v318_v15, %v5021_v19 }
  0xf6   : > { %6639 = vst [vmem:[#allocation59_spill] sm:$0xff] %v5017_v62  ;;  %442 = vperm.xlu1 %4196, %v4864_v7   ;;  %v1004_v7 = vmul.f32 %v988_v40, %v988_v40 }
  0xf7   : > { %v491_v52 = vmul.f32 %v391_v37, %v391_v37 }
  0xf9   : > { %v415_v9 = vpop.permute.xlu1 %414 }
  0xfa   : > { %v475_v49 = vsub.f32 %v415_v9, %v5025_v10  ;;  %v5028_v36 = vpop.permute.xlu0 %775  ;;  %4197 = vset.pattern.permute.xlu1 %v6628_v12 }
  0xfb   : > { %587 = vperm.xlu1 %4197, %v4634_v16  }
  0xfc   : > { %v507_v11 = vmul.f32 %v475_v49, %v475_v49 }
  0xfe   : > { %v523_v61 = vadd.f32 %v507_v11, %v491_v52  ;;  %v788_v62 = vpop.permute.xlu0 %787  ;;  %v5032_v57 = vpop.permute.xlu1 %322  ;;  %v606_v11 = vsub.f32 %v4924_v58, %v4998_v51  ;;  %v610_v58 = vsub.f32 %v4936_v5, %v4998_v51 }
  0xff   : > { %4198 = vset.pattern.permute.xlu1 %v6634_v41  ;;  %v842_v5 = vsub.f32 %v788_v62, %v5000_v55 }
 0x100   : > { %v1020_v15 = vadd.f32 %v1004_v7, %v523_v61  ;;  %927 = vperm.xlu1 %4198, %v4615_v13   ;;  %v722_v7 = vsub.f32 %v4965_v25, %v4993_v29  ;;  %v723_v61 = vsub.f32 %v4890_v63, %v4993_v29  ;;  %v726_v25 = vsub.f32 %v4985_v39, %v4993_v29 }
 0x102   : > { %v1036_v43 = vsub.f32 0.0, %v1020_v15  ;;  %v5036_v56 = vpop.permute.xlu0 %791  ;;  %v607_v15 = vsub.f32 %v4853_v42, %v4998_v51  ;;  %v738_v63 = vand.u32 2147483647, %v722_v7  ;;  %v739_v50 = vand.u32 2147483647, %v723_v61 }
 0x103   : > { %v5038_v47 = vpop.permute.xlu1 %418  ;;  %v626_v7 = vand.u32 2147483647, %v610_v58  ;;  %v742_v61 = vand.u32 2147483647, %v726_v25  ;;  %v858_v58 = vand.u32 2147483647, %v842_v5 }
 0x104   : > { %v1054_v9 = vmul.f32 1.442695, %v1036_v43  ;;  %4199 = vset.pattern.permute.xlu1 %v6628_v12  ;;  %v473_v43 = vsub.f32 %v4855_v34, %v5025_v10  ;;  %v725_v34 = vsub.f32 %v4954_v48, %v4993_v29  ;;  %v623_v39 = vand.u32 2147483647, %v607_v15 }
 0x105   : > { %591 = vperm.xlu1 %4199, %v4640_v17   ;;  %v609_v48 = vsub.f32 %v4944_v53, %v4998_v51  ;;  %v611_v15 = vsub.f32 %v4946_v60, %v4998_v51 }
 0x106   : > { %4220 = vpow2.f32 %v1054_v9  ;;  %v5042_v37 = vpop.permute.xlu0 %799  ;;  %v474_v9 = vsub.f32 %v4879_v3, %v5025_v10  ;;  %v505_v31 = vmul.f32 %v473_v43, %v473_v43  ;;  %v838_v3 = vsub.f32 %v4907_v24, %v5000_v55 }
 0x107   : > { %v839_v24 = vsub.f32 %v5028_v36, %v5000_v55  ;;  %v741_v44 = vand.u32 2147483647, %v725_v34  ;;  %v625_v60 = vand.u32 2147483647, %v609_v48  ;;  %v627_v46 = vand.u32 2147483647, %v611_v15 }
 0x108   : > { %v5044_v40 = vpop.permute.xlu1 %563  ;;  %v854_v53 = vand.u32 2147483647, %v838_v3  ;;  %v490_v3 = vmul.f32 %v390_v4, %v390_v4  ;;  %v476_v4 = vsub.f32 %v5038_v47, %v5025_v10 }
 0x109   : > { %4201 = vset.pattern.permute.xlu1 %v6634_v41 }
 0x10a   : > { %931 = vperm.xlu1 %4201, %v4621_v14   ;;  %v5048_v49 = vpop.permute.xlu0 %811 }
 0x10b   : > { %6640 = vst [vmem:[#allocation60_spill] sm:$0xff] %v5048_v49 }
 0x10d   : > { %v904_v52 = vpop.permute.xlu1 %903 }
 0x10e   : > { %4202 = vset.pattern.permute.xlu1 %v6630_v18  ;;  %v5055_v17 = vpop.permute.xlu0 %815  ;;  %v958_v62 = vsub.f32 %v904_v52, %v5004_v6  ;;  %v841_v52 = vsub.f32 %v4977_v0, %v5000_v55  ;;  %v727_v0 = vsub.f32 %v5006_v1, %v4993_v29 }
 0x10f   : > { %6641 = vst [vmem:[#allocation61_spill] sm:$0xff] %v5055_v17  ;;  %446 = vperm.xlu1 %4202, %v4615_v13   ;;  %v622_v17 = vand.u32 2147483647, %v606_v11  ;;  %v389_v11 = vsub.f32 %v4961_v30, %v5021_v19  ;;  %v755_v30 = vadd.f32 %v739_v50, %v623_v39  ;;  %v393_v50 = vsub.f32 %v4989_v28, %v5021_v19 }
 0x110   : > { %v974_v36 = vand.u32 2147483647, %v958_v62  ;;  %v757_v39 = vadd.f32 %v741_v44, %v625_v60  ;;  %v857_v48 = vand.u32 2147483647, %v841_v52 }
 0x111   : > { %v754_v43 = vadd.f32 %v738_v63, %v622_v17  ;;  %v489_v25 = vmul.f32 %v389_v11, %v389_v11  ;;  %v758_v17 = vadd.f32 %v742_v61, %v626_v7  ;;  %v855_v63 = vand.u32 2147483647, %v839_v24 }
 0x112   : > { %v5070_v49 = vpop.permute.xlu1 %567  ;;  %v5072_v13 = vpop.permute.xlu0 %823  ;;  %v493_v62 = vmul.f32 %v393_v50, %v393_v50 }
 0x113   : > { %6642 = vst [vmem:[#allocation62_spill] sm:$0xff] %v5072_v13  ;;  %v5074_v42 = vpop.eup %4220  ;;  %4203 = vset.pattern.permute.xlu1 %v6632_v54  ;;  %v506_v13 = vmul.f32 %v474_v9, %v474_v9  ;;  %v870_v34 = vadd.f32 %v854_v53, %v754_v43  ;;  %v871_v44 = vadd.f32 %v855_v63, %v755_v30 }
 0x114   : > { %1084 = vst [vmem:[%s4554_s23 + $0x10] sm:$0xff] %v5074_v42  ;;  %819 = vperm.xlu1 %4203, %v4634_v16  }
 0x115   : > { %v522_v24 = vadd.f32 %v506_v13, %v490_v3 }
 0x117   : > { %v888_v26 = vpop.permute.xlu0 %887  ;;  %v908_v38 = vpop.permute.xlu1 %907 }
 0x118   : > { %v954_v9 = vsub.f32 %v888_v26, %v5004_v6  ;;  %4205 = vset.pattern.permute.xlu1 %v6630_v18  ;;  %v874_v26 = vadd.f32 %v858_v58, %v758_v17  ;;  %v521_v18 = vadd.f32 %v505_v31, %v489_v25  ;;  %v743_v58 = vand.u32 2147483647, %v727_v0 }
 0x119   : > { %450 = vperm.xlu1 %4205, %v4621_v14   ;;  %v843_v14 = vsub.f32 %v5036_v56, %v5000_v55  ;;  %v959_v53 = vsub.f32 %v908_v38, %v5004_v6  ;;  %v392_v56 = vsub.f32 %v5032_v57, %v5021_v19  ;;  %v873_v17 = vadd.f32 %v857_v48, %v757_v39 }
 0x11a   : > { %v970_v5 = vand.u32 2147483647, %v954_v9  ;;  %v990_v15 = vadd.f32 %v974_v36, %v874_v26  ;;  %v394_v57 = vsub.f32 %v4996_v33, %v5021_v19 }
 0x11b   : > { %v892_v11 = vpop.permute.xlu0 %891  ;;  %v859_v50 = vand.u32 2147483647, %v843_v14  ;;  %v975_v3 = vand.u32 2147483647, %v959_v53  ;;  %v492_v39 = vmul.f32 %v392_v56, %v392_v56 }
 0x11c   : > { %v986_v7 = vadd.f32 %v970_v5, %v870_v34  ;;  %v955_v61 = vsub.f32 %v892_v11, %v5004_v6  ;;  %v423_v28 = vpop.permute.xlu1 %422  ;;  %v1006_v47 = vmul.f32 %v990_v15, %v990_v15  ;;  %v508_v34 = vmul.f32 %v476_v4, %v476_v4 }
 0x11d   : > { %v477_v43 = vsub.f32 %v423_v28, %v5025_v10  ;;  %4207 = vset.pattern.permute.xlu1 %v6628_v12  ;;  %v5124_v28 = vld [vmem:[%s4537_s24 + $0x78] sm:$0xff] }
 0x11e   : > { %v1002_v1 = vmul.f32 %v986_v7, %v986_v7  ;;  %v971_v31 = vand.u32 2147483647, %v955_v61  ;;  %595 = vperm.xlu1 %4207, %v4915_v2  }
 0x11f   : > { %v509_v25 = vmul.f32 %v477_v43, %v477_v43  ;;  %v900_v52 = vpop.permute.xlu0 %899 }
 0x120   : > { %v1018_v9 = vadd.f32 %v1002_v1, %v521_v18  ;;  %v987_v60 = vadd.f32 %v971_v31, %v871_v44  ;;  %v957_v30 = vsub.f32 %v900_v52, %v5004_v6  ;;  %v759_v18 = vadd.f32 %v743_v58, %v627_v46 }
 0x121   : > { %v525_v36 = vadd.f32 %v509_v25, %v493_v62  ;;  %v5117_v63 = vpop.permute.xlu1 %795  ;;  %v524_v62 = vadd.f32 %v508_v34, %v492_v39  ;;  %v494_v44 = vmul.f32 %v394_v57, %v394_v57 }
 0x122   : > { %v1034_v13 = vsub.f32 0.0, %v1018_v9  ;;  %v1003_v5 = vmul.f32 %v987_v60, %v987_v60  ;;  %v973_v38 = vand.u32 2147483647, %v957_v30  ;;  %4208 = vset.pattern.permute.xlu1 %v6626_v21  ;;  %v875_v7 = vadd.f32 %v859_v50, %v759_v18 }
 0x123   : > { %v1022_v0 = vadd.f32 %v1006_v47, %v525_v36  ;;  %711 = vperm.xlu1 %4208, %v4915_v2   ;;  %v728_v30 = vsub.f32 %v4969_v59, %v4993_v29  ;;  %v5141_v47 = vand.u32 4294901760, %v5074_v42  ;;  %v844_v36 = vsub.f32 %v5117_v63, %v5000_v55 }
 0x124   : > { %v1050_v26 = vmul.f32 1.442695, %v1034_v13  ;;  %v1019_v11 = vadd.f32 %v1003_v5, %v522_v24  ;;  %v989_v48 = vadd.f32 %v973_v38, %v873_v17  ;;  %v991_v33 = vadd.f32 %v975_v3, %v875_v7  ;;  %v912_v13 = vpop.permute.xlu0 %911 }
 0x125   : > { %v1038_v61 = vsub.f32 0.0, %v1022_v0  ;;  %v612_v17 = vsub.f32 %v5044_v40, %v4998_v51  ;;  %v744_v34 = vand.u32 2147483647, %v728_v30  ;;  %v5153_v38 = vsub.f32 %v5074_v42, %v5141_v47 }
 0x126   : > { %4222 = vpow2.f32 %v1050_v26  ;;  %v1035_v14 = vsub.f32 0.0, %v1019_v11  ;;  %v1005_v15 = vmul.f32 %v989_v48, %v989_v48  ;;  %v427_v43 = vpop.permute.xlu1 %426  ;;  %v1007_v53 = vmul.f32 %v991_v33, %v991_v33 }
 0x127   : > { %v1058_v46 = vmul.f32 1.442695, %v1038_v61  ;;  %v478_v4 = vsub.f32 %v427_v43, %v5025_v10  ;;  %4209 = vset.pattern.permute.xlu1 %v6628_v12  ;;  %v628_v40 = vand.u32 2147483647, %v612_v17  ;;  %v860_v18 = vand.u32 2147483647, %v844_v36 }
 0x128   : > { %v1052_v1 = vmul.f32 1.442695, %v1035_v14  ;;  %v1021_v31 = vadd.f32 %v1005_v15, %v524_v62  ;;  %599 = vperm.xlu1 %4209, %v5124_v28   ;;  %v960_v0 = vsub.f32 %v912_v13, %v5004_v6  ;;  %v6546_v11 = vand.u32 4294901760, %v5153_v38 }
 0x129   : > { %4224 = vpow2.f32 %v1058_v46  ;;  %v510_v24 = vmul.f32 %v478_v4, %v478_v4  ;;  %v760_v26 = vadd.f32 %v744_v34, %v628_v40  ;;  %v729_v15 = vsub.f32 %v4974_v8, %v4993_v29  ;;  %v4252_v46 = vld [vmem:[%s4537_s24 + $0x68] sm:$0xff] }
 0x12a   : > { %4226 = vpow2.f32 %v1052_v1  ;;  %v1037_v58 = vsub.f32 0.0, %v1021_v31  ;;  %v613_v43 = vsub.f32 %v5070_v49, %v4998_v51  ;;  %v976_v33 = vand.u32 2147483647, %v960_v0 }
 0x12b   : > { %v526_v25 = vadd.f32 %v510_v24, %v494_v44  ;;  %v5129_v52 = vpop.permute.xlu1 %571  ;;  %v876_v44 = vadd.f32 %v860_v18, %v760_v26  ;;  %v479_v8 = vsub.f32 %v4901_v35, %v5025_v10  ;;  %v1234_v49 = vsub.f32 %v5153_v38, %v6546_v11 }
 0x12c   : > { %v1056_v56 = vmul.f32 1.442695, %v1037_v58  ;;  %4210 = vset.pattern.permute.xlu1 %v6626_v21  ;;  %v745_v35 = vand.u32 2147483647, %v729_v15 }
 0x12d   : > { %v1023_v9 = vadd.f32 %v1007_v53, %v526_v25  ;;  %715 = vperm.xlu1 %4210, %v5124_v28   ;;  %v845_v25 = vsub.f32 %v5042_v37, %v5000_v55  ;;  %v992_v17 = vadd.f32 %v976_v33, %v876_v44  ;;  %v511_v34 = vmul.f32 %v479_v8, %v479_v8 }
 0x12e   : > { %4228 = vpow2.f32 %v1056_v56  ;;  %v629_v56 = vand.u32 2147483647, %v613_v43  ;;  %v1235_v37 = vand.u32 4294901760, %v1234_v49 }
 0x12f   : > { %v1039_v12 = vsub.f32 0.0, %v1023_v9  ;;  %v916_v9 = vpop.permute.xlu0 %915  ;;  %v861_v18 = vand.u32 2147483647, %v845_v25 }
 0x130   : > { %v5133_v60 = vpop.permute.xlu1 %687  ;;  %v761_v26 = vadd.f32 %v745_v35, %v629_v56 }
 0x131   : > { %v1060_v50 = vmul.f32 1.442695, %v1039_v12  ;;  %4211 = vset.pattern.permute.xlu1 %v6631_v45 }
 0x132   : > { %367 = vperm.xlu1 %4211, %v4634_v16   ;;  %v877_v35 = vadd.f32 %v861_v18, %v761_v26 }
 0x133   : > { %v4223_v21 = vpop.eup %4222  ;;  %4230 = vpow2.f32 %v1060_v50 }
 0x134   : > { %1082 = vst [vmem:[%s4554_s23] sm:$0xff] %v4223_v21  ;;  %v5147_v59 = vand.u32 4294901760, %v4223_v21 }
 0x135   : > { %v5149_v5 = vpop.permute.xlu1 %575 }
 0x136   : > { %v4225_v16 = vpop.eup %4224  ;;  %4212 = vset.pattern.permute.xlu1 %v6632_v54  ;;  %3819 = vmatprep.mubr.f32.mxu1 %v5147_v59  ;;  %v5158_v63 = vsub.f32 %v4223_v21, %v5147_v59 }
 0x137   : > { %v4227_v57 = vpop.eup %4226  ;;  %1086 = vst [vmem:[%s4554_s23 + $0x20] sm:$0xff] %v4225_v16  ;;  %827 = vperm.xlu1 %4212, %v4915_v2   ;;  %v5162_v3 = vand.u32 4294901760, %v4225_v16 }
 0x138   : > { %1083 = vst [vmem:[%s4554_s23 + $0x8] sm:$0xff] %v4227_v57  ;;  %v5166_v42 = vand.u32 4294901760, %v4227_v57  ;;  %v6548_v39 = vand.u32 4294901760, %v5158_v63 }
 0x139   : > { %6643 = vst [vmem:[#allocation63_spill] sm:$0xff] %v5162_v3  ;;  %v5171_v48 = vsub.f32 %v4225_v16, %v5162_v3 }
 0x13a   : > { %3820 = vmatmul.mubr.f32.vlgmr.msra.gmra.mxu1 %v5166_v42  ;;  %v5174_v7 = vpop.permute.xlu1 %691  ;;  %v1214_v61 = vsub.f32 %v5158_v63, %v6548_v39  ;;  %v5180_v62 = vsub.f32 %v4227_v57, %v5166_v42 }
 0x13b   : > { %v4229_v14 = vpop.eup %4228  ;;  %4213 = vset.pattern.permute.xlu1 %v6631_v45  ;;  %3822 = vmatprep.mubr.f32.mxu1 %v5141_v47  ;;  %v6544_v24 = vand.u32 4294901760, %v5171_v48 }
 0x13c   : > { %1085 = vst [vmem:[%s4554_s23 + $0x18] sm:$0xff] %v4229_v14  ;;  %372 = vperm.xlu1 %4213, %v4252_v46   ;;  %v1215_v4 = vand.u32 4294901760, %v1214_v61  ;;  %v5190_v1 = vand.u32 4294901760, %v4229_v14  ;;  %v6547_v31 = vand.u32 4294901760, %v5180_v62  ;;  %3900 = vmatpush3.msra.mxu1 %v4668_v20  ;;  %v1008_v61 = vmul.f32 %v992_v17, %v992_v17  ;;  %v6645_v46 = vld [vmem:[#allocation16_spill] sm:$0xff] }
 0x13d   : > { %3901 = vmatprep.subr.mxu1 %v4676_v23  ;;  %v1254_v13 = vsub.f32 %v5171_v48, %v6544_v24 }
 0x13e   : > { %3763 = vmatprep.mubr.f32.mxu0 %v1215_v4  ;;  %3823 = vmatmul.mubr.f32.gmra.mxu1 %v5190_v1  ;;  %v1224_v58 = vsub.f32 %v5180_v62, %v6547_v31  ;;  %v5206_v53 = vsub.f32 %v4229_v14, %v5190_v1 }
 0x13f   : > { %3825 = vmatprep.mubr.f32.mxu1 %v5162_v3  ;;  %v338_v12 = vpop.permute.xlu1 %337  ;;  %3902 = vmatpush3.msra.mxu1 %v4676_v23  ;;  %v1255_v44 = vand.u32 4294901760, %v1254_v13  ;;  %v6650_v13 = vld [vmem:[#allocation22_spill] sm:$0xff] }
 0x140   : > { %v4231_v30 = vpop.eup %4230  ;;  %v395_v50 = vsub.f32 %v338_v12, %v5021_v19  ;;  %4214 = vset.pattern.permute.xlu1 %v6632_v54  ;;  %v1225_v21 = vand.u32 4294901760, %v1224_v58  ;;  %v6545_v36 = vand.u32 4294901760, %v5206_v53  ;;  %3903 = vmatprep.subr.mxu1 %v4688_v27  ;;  %v961_v54 = vsub.f32 %v916_v9, %v5004_v6  ;;  %v6646_v58 = vld [vmem:[#allocation11_spill] sm:$0xff] }
 0x141   : > { %1087 = vst [vmem:[%s4554_s23 + $0x28] sm:$0xff] %v4231_v30  ;;  %831 = vperm.xlu1 %4214, %v5124_v28   ;;  %v5218_v40 = vand.u32 4294901760, %v4231_v30  ;;  %3904 = vmatpush3.msra.mxu1 %v4688_v27  ;;  %v6648_v12 = vld [vmem:[#allocation19_spill] sm:$0xff] }
 0x142   : > { %v495_v16 = vmul.f32 %v395_v50, %v395_v50  ;;  %3764 = vmatmul.mubr.f32.vlgmr.msra.gmra.mxu0 %v1225_v21  ;;  %v1244_v57 = vsub.f32 %v5206_v53, %v6545_v36  ;;  %3905 = vmatprep.subr.mxu1 %v4702_v32  ;;  %v977_v4 = vand.u32 2147483647, %v961_v54  ;;  %v6651_v54 = vld [vmem:[#allocation15_spill] sm:$0xff] }
 0x143   : > { %6644 = vst [vmem:[#allocation64_spill] sm:$0xff] %v5218_v40  ;;  %3766 = vmatprep.mubr.f32.mxu0 %v1235_v37  ;;  %3826 = vmatmul.mubr.f32.gmra.mxu1 %v5218_v40  ;;  %v5231_v0 = vsub.f32 %v4231_v30, %v5218_v40  ;;  %v6649_v30 = vld [vmem:[#allocation13_spill] sm:$0xff] }
 0x144   : > { %v527_v14 = vadd.f32 %v511_v34, %v495_v16  ;;  %v5233_v15 = vpop.permute.xlu1 %803  ;;  %v1245_v43 = vand.u32 4294901760, %v1244_v57  ;;  %3906 = vmatpush3.msra.mxu1 %v4702_v32  ;;  %3844 = vmatpush3.msra.mxu0 %v4674_v22  ;;  %v6647_v22 = vld [vmem:[#allocation53_spill] sm:$0xff]  ;;  %v993_v17 = vadd.f32 %v977_v4, %v877_v35  ;;  %v6657_v4 = vld [vmem:[#allocation60_spill] sm:$0xff] }
 0x145   : > { %4216 = vset.pattern.permute.xlu1 %v6634_v41  ;;  %v6543_v33 = vand.u32 4294901760, %v5231_v0  ;;  %3907 = vmatprep.subr.mxu1 %v6645_v46  ;;  %v480_v41 = vsub.f32 %v6647_v22, %v5025_v10 }
 0x146   : > { %v1024_v8 = vadd.f32 %v1008_v61, %v527_v14  ;;  %947 = vperm.xlu1 %4216, %v5124_v28   ;;  %3767 = vmatmul.mubr.f32.gmra.mxu0 %v1245_v43  ;;  %v1009_v16 = vmul.f32 %v993_v17, %v993_v17  ;;  %v6654_v61 = vld [vmem:[#allocation28_spill] sm:$0xff]  ;;  %v6655_v14 = vld [vmem:[#allocation21_spill] sm:$0xff]  ;;  %v6656_v43 = vld [vmem:[#allocation54_spill] sm:$0xff] }
 0x147   : > { %3769 = vmatprep.mubr.f32.mxu0 %v1255_v44  ;;  %v1264_v49 = vsub.f32 %v5231_v0, %v6543_v33  ;;  %3845 = vmatprep.subr.mxu0 %v6646_v58  ;;  %v512_v34 = vmul.f32 %v480_v41, %v480_v41  ;;  %v616_v44 = vsub.f32 %v6656_v43, %v4998_v51  ;;  %v6659_v41 = vld [vmem:[#allocation30_spill] sm:$0xff]  ;;  %v6668_v43 = vld [vmem:[#allocation55_spill] sm:$0xff] }
 0x148   : > { %v1040_v25 = vsub.f32 0.0, %v1024_v8  ;;  %3908 = vmatpush3.msra.mxu1 %v6645_v46  ;;  %3846 = vmatpush3.msra.mxu0 %v6646_v58  ;;  %v848_v8 = vsub.f32 %v6657_v4, %v5000_v55  ;;  %v6658_v58 = vmov 1   ;;  %v730_v4 = vsub.f32 %v5133_v60, %v4993_v29 }
 0x149   : > { %v343_v56 = vpop.permute.xlu1 %342  ;;  %v1265_v9 = vand.u32 4294901760, %v1264_v49  ;;  %3909 = vmatprep.subr.mxu1 %v6648_v12  ;;  %3847 = vmatprep.subr.mxu0 %v6649_v30  ;;  %v846_v60 = vsub.f32 %v5233_v15, %v5000_v55 }
 0x14a   : > { %v1062_v50 = vmul.f32 1.442695, %v1040_v25  ;;  %v396_v21 = vsub.f32 %v343_v56, %v5021_v19  ;;  %4217 = vset.pattern.permute.xlu1 %v6631_v45  ;;  %3910 = vmatpush3.msra.mxu1 %v6648_v12  ;;  %v6652_v45 = vld [vmem:[#allocation25_spill] sm:$0xff]  ;;  %v6660_v56 = vld [vmem:[#allocation24_spill] sm:$0xff] }
 0x14b   : > { %377 = vperm.xlu1 %4217, %v4915_v2   ;;  %3770 = vmatmul.mubr.f32.gmra.mxu0 %v1265_v9  ;;  %v6653_v2 = vld [vmem:[#allocation18_spill] sm:$0xff]  ;;  %v632_v9 = vand.u32 2147483647, %v616_v44  ;;  %v617_v44 = vsub.f32 %v6668_v43, %v4998_v51  ;;  %v6674_v43 = vld [vmem:[#allocation49_spill] sm:$0xff] }
 0x14c   : > { %4232 = vpow2.f32 %v1062_v50  ;;  %v496_v37 = vmul.f32 %v396_v21, %v396_v21  ;;  %3848 = vmatpush3.msra.mxu0 %v6649_v30  ;;  %3911 = vmatprep.subr.mxu1 %v6650_v13  ;;  %v864_v30 = vand.u32 2147483647, %v848_v8  ;;  %v6661_v50 = vld [vmem:[#allocation33_spill] sm:$0xff]  ;;  %v6662_v21 = vld [vmem:[#allocation27_spill] sm:$0xff] }
 0x14d   : > { %3849 = vmatprep.subr.mxu0 %v6651_v54  ;;  %3912 = vmatpush3.msra.mxu1 %v6650_v13  ;;  %v6669_v8 = vld [vmem:[#allocation61_spill] sm:$0xff] }
 0x14e   : > { %v528_v57 = vadd.f32 %v512_v34, %v496_v37  ;;  %v5259_v18 = vpop.permute.xlu1 %807  ;;  %3850 = vmatpush3.msra.mxu0 %v6651_v54  ;;  %3913 = vmatprep.subr.mxu1 %v6652_v45  ;;  %v6663_v37 = vld [vmem:[#allocation37_spill] sm:$0xff]  ;;  %v6664_v54 = vld [vmem:[#allocation31_spill] sm:$0xff] }
 0x14f   : > { %382 = vperm.xlu1 %4217, %v5124_v28   ;;  %3851 = vmatprep.subr.mxu0 %v6653_v2 }
 0x150   : > { %v1025_v26 = vadd.f32 %v1009_v16, %v528_v57  ;;  %3914 = vmatpush3.msra.mxu1 %v6652_v45  ;;  %3852 = vmatpush3.msra.mxu0 %v6653_v2 }
 0x151   : > { %3915 = vmatprep.subr.mxu1 %v6654_v61  ;;  %3853 = vmatprep.subr.mxu0 %v6655_v14 }
 0x152   : > { %v1041_v49 = vsub.f32 0.0, %v1025_v26  ;;  %3916 = vmatpush3.msra.mxu1 %v6654_v61  ;;  %3854 = vmatpush3.msra.mxu0 %v6655_v14  ;;  %v6666_v26 = vld [vmem:[#allocation40_spill] sm:$0xff] }
 0x153   : > { %4218 = vset.pattern.permute.xlu1 %v6658_v58  ;;  %v696_v22 = vpop.permute.xlu1 %695  ;;  %3917 = vmatprep.subr.mxu1 %v6659_v41  ;;  %v6667_v14 = vld [vmem:[#allocation32_spill] sm:$0xff] }
 0x154   : > { %v1064_v35 = vmul.f32 1.442695, %v1041_v49  ;;  %v732_v25 = vsub.f32 %v696_v22, %v4993_v29  ;;  %466 = vperm.xlu1 %4218, %v5124_v28   ;;  %3855 = vmatprep.subr.mxu0 %v6660_v56  ;;  %v849_v49 = vsub.f32 %v6669_v8, %v5000_v55  ;;  %v6670_v22 = vld [vmem:[#allocation43_spill] sm:$0xff] }
 0x155   : > { %3918 = vmatpush3.msra.mxu1 %v6659_v41  ;;  %3856 = vmatpush3.msra.mxu0 %v6660_v56  ;;  %v6671_v56 = vld [vmem:[#allocation36_spill] sm:$0xff] }
 0x156   : > { %4234 = vpow2.f32 %v1064_v35  ;;  %v748_v17 = vand.u32 2147483647, %v732_v25  ;;  %3919 = vmatprep.subr.mxu1 %v6661_v50  ;;  %3857 = vmatprep.subr.mxu0 %v6662_v21  ;;  %v614_v35 = vsub.f32 %v5129_v52, %v4998_v51  ;;  %v865_v52 = vand.u32 2147483647, %v849_v49 }
 0x157   : > { %3920 = vmatpush3.msra.mxu1 %v6661_v50  ;;  %3858 = vmatpush3.msra.mxu0 %v6662_v21  ;;  %v633_v21 = vand.u32 2147483647, %v617_v44  ;;  %v862_v44 = vand.u32 2147483647, %v846_v60 }
 0x158   : > { %v764_v28 = vadd.f32 %v748_v17, %v632_v9  ;;  %v920_v34 = vpop.permute.xlu1 %919  ;;  %3921 = vmatprep.subr.mxu1 %v6663_v37  ;;  %3859 = vmatprep.subr.mxu0 %v6664_v54  ;;  %v6672_v17 = vld [vmem:[#allocation45_spill] sm:$0xff]  ;;  %v630_v8 = vand.u32 2147483647, %v614_v35 }
 0x159   : > { %v4233_v16 = vpop.eup %4232  ;;  %3922 = vmatpush3.msra.mxu1 %v6663_v37  ;;  %3860 = vmatpush3.msra.mxu0 %v6664_v54  ;;  %v6673_v54 = vld [vmem:[#allocation39_spill] sm:$0xff]  ;;  %v962_v15 = vsub.f32 %v920_v34, %v5004_v6 }
 0x15a   : > { %1088 = vst [vmem:[%s4554_s23 + $0x30] sm:$0xff] %v4233_v16  ;;  %v5291_v57 = vand.u32 4294901760, %v4233_v16  ;;  %v5293_v2 = vadd.f32 %v864_v30, %v764_v28  ;;  %3923 = vmatprep.subr.mxu1 %v6666_v26  ;;  %3861 = vmatprep.subr.mxu0 %v6667_v14  ;;  %v746_v28 = vand.u32 2147483647, %v730_v4  ;;  %v6675_v4 = vld [vmem:[#allocation42_spill] sm:$0xff] }
 0x15b   : > { %3924 = vmatpush3.msra.mxu1 %v6666_v26  ;;  %3862 = vmatpush3.msra.mxu0 %v6667_v14  ;;  %v978_v35 = vand.u32 2147483647, %v962_v15 }
 0x15c   : > { %6665 = vst [vmem:[#allocation16_spill] sm:$0xff] %v5291_v57  ;;  %3828 = vmatprep.mubr.f32.mxu1 %v5291_v57  ;;  %v5307_v58 = vsub.f32 %v4233_v16, %v5291_v57  ;;  %3925 = vmatprep.subr.mxu1 %v6670_v22 }
 0x15d   : > { %v700_v25 = vpop.permute.xlu1 %699  ;;  %3863 = vmatprep.subr.mxu0 %v6671_v56  ;;  %3926 = vmatpush3.msra.mxu1 %v6670_v22 }
 0x15e   : > { %v733_v9 = vsub.f32 %v700_v25, %v4993_v29  ;;  %v6542_v30 = vand.u32 4294901760, %v5307_v58  ;;  %3864 = vmatpush3.msra.mxu0 %v6671_v56  ;;  %3927 = vmatprep.subr.mxu1 %v6672_v17 }
 0x15f   : > { %3865 = vmatprep.subr.mxu0 %v6673_v54  ;;  %3928 = vmatpush3.msra.mxu1 %v6672_v17 }
 0x160   : > { %v749_v16 = vand.u32 2147483647, %v733_v9  ;;  %v1274_v14 = vsub.f32 %v5307_v58, %v6542_v30  ;;  %3866 = vmatpush3.msra.mxu0 %v6673_v54  ;;  %3929 = vmatprep.subr.mxu1 %v6674_v43  ;;  %v762_v9 = vadd.f32 %v746_v28, %v630_v8  ;;  %v6676_v30 = vld [vmem:[#allocation46_spill] sm:$0xff]  ;;  %v731_v54 = vsub.f32 %v5174_v7, %v4993_v29  ;;  %v924_v8 = vpop.permute.xlu0 %923 }
 0x161   : > { %3867 = vmatprep.subr.mxu0 %v6675_v4  ;;  %3930 = vmatpush3.msra.mxu1 %v6674_v43  ;;  %v847_v28 = vsub.f32 %v5259_v18, %v5000_v55 }
 0x162   : > { %v765_v25 = vadd.f32 %v749_v16, %v633_v21  ;;  %v348_v49 = vpop.permute.xlu1 %347  ;;  %v1275_v56 = vand.u32 4294901760, %v1274_v14  ;;  %3868 = vmatpush3.msra.mxu0 %v6675_v4  ;;  %4011 = vmatprep.subr.mxu1 %v4668_v20  ;;  %v615_v21 = vsub.f32 %v5149_v5, %v4998_v51  ;;  %v878_v16 = vadd.f32 %v862_v44, %v762_v9  ;;  %v6678_v14 = vld [vmem:[#allocation48_spill] sm:$0xff] }
 0x163   : > { %v4235_v34 = vpop.eup %4234  ;;  %3869 = vmatprep.subr.mxu0 %v6676_v30  ;;  %v397_v7 = vsub.f32 %v348_v49, %v5021_v19  ;;  %v747_v5 = vand.u32 2147483647, %v731_v54  ;;  %v963_v49 = vsub.f32 %v924_v8, %v5004_v6 }
 0x164   : > { %1089 = vst [vmem:[%s4554_s23 + $0x38] sm:$0xff] %v4235_v34  ;;  %3772 = vmatprep.mubr.f32.mxu0 %v1275_v56  ;;  %v5336_v60 = vand.u32 4294901760, %v4235_v34  ;;  %v5338_v33 = vadd.f32 %v865_v52, %v765_v25  ;;  %3870 = vmatpush3.msra.mxu0 %v6676_v30  ;;  %v6679_v52 = vld [vmem:[#allocation51_spill] sm:$0xff]  ;;  %v994_v44 = vadd.f32 %v978_v35, %v878_v16  ;;  %v631_v18 = vand.u32 2147483647, %v615_v21  ;;  %v6680_v56 = vld [vmem:[#allocation10_spill] sm:$0xff] }
 0x165   : > { %3871 = vmatprep.subr.mxu0 %v6678_v14  ;;  %v497_v9 = vmul.f32 %v397_v7, %v397_v7  ;;  %v979_v31 = vand.u32 2147483647, %v963_v49 }
 0x166   : > { %6677 = vst [vmem:[#allocation11_spill] sm:$0xff] %v5336_v60  ;;  %3829 = vmatmul.mubr.f32.gmra.mxu1 %v5336_v60  ;;  %v5349_v15 = vsub.f32 %v4235_v34, %v5336_v60  ;;  %3872 = vmatpush3.msra.mxu0 %v6678_v14  ;;  %v863_v34 = vand.u32 2147483647, %v847_v28  ;;  %v763_v54 = vadd.f32 %v747_v5, %v631_v18 }
 0x167   : > { %v439_v30 = vpop.permute.xlu1 %438  ;;  %3873 = vmatprep.subr.mxu0 %v6679_v52  ;;  %v1010_v35 = vmul.f32 %v994_v44, %v994_v44 }
 0x168   : > { %v481_v4 = vsub.f32 %v439_v30, %v5025_v10  ;;  %v6549_v25 = vand.u32 4294901760, %v5349_v15  ;;  %3874 = vmatpush3.msra.mxu0 %v6679_v52  ;;  %v879_v11 = vadd.f32 %v863_v34, %v763_v54 }
 0x169   : > { %3955 = vmatprep.subr.mxu0 %v6680_v56 }
 0x16a   : > { %v513_v24 = vmul.f32 %v481_v4, %v481_v4  ;;  %v1284_v14 = vsub.f32 %v5349_v15, %v6549_v25  ;;  %v995_v28 = vadd.f32 %v979_v31, %v879_v11  ;;  %v6682_v11 = vld [vmem:[#allocation62_spill] sm:$0xff] }
 0x16b   : > { %v851_v31 = vsub.f32 %v6682_v11, %v5000_v55 }
 0x16c   : > { %v529_v16 = vadd.f32 %v513_v24, %v497_v9  ;;  %v353_v30 = vpop.permute.xlu1 %352  ;;  %v1285_v36 = vand.u32 4294901760, %v1284_v14  ;;  %v1011_v44 = vmul.f32 %v995_v28, %v995_v28  ;;  %v6681_v14 = vld [vmem:[#allocation57_spill] sm:$0xff] }
 0x16d   : > { %v398_v8 = vsub.f32 %v353_v30, %v5021_v19  ;;  %v735_v54 = vsub.f32 %v6681_v14, %v4993_v29 }
 0x16e   : > { %v1026_v52 = vadd.f32 %v1010_v35, %v529_v16  ;;  %3773 = vmatmul.mubr.f32.gmra.mxu0 %v1285_v36 }
 0x16f   : > { %v498_v25 = vmul.f32 %v398_v8, %v398_v8 }
 0x170   : > { %v1042_v21 = vsub.f32 0.0, %v1026_v52  ;;  %v867_v52 = vand.u32 2147483647, %v851_v31 }
 0x171   : > { %v443_v39 = vpop.permute.xlu1 %442 }
 0x172   : > { %v1066_v7 = vmul.f32 1.442695, %v1042_v21  ;;  %v482_v4 = vsub.f32 %v443_v39, %v5025_v10 }
 0x174   : > { %4236 = vpow2.f32 %v1066_v7  ;;  %v514_v5 = vmul.f32 %v482_v4, %v482_v4 }
 0x176   : > { %v530_v24 = vadd.f32 %v514_v5, %v498_v25  ;;  %v5363_v18 = vpop.permute.xlu1 %587  ;;  %v751_v25 = vand.u32 2147483647, %v735_v54 }
 0x178   : > { %v1027_v34 = vadd.f32 %v1011_v44, %v530_v24 }
 0x17a   : > { %v1043_v49 = vsub.f32 0.0, %v1027_v34 }
 0x17b   : > { %v928_v9 = vpop.permute.xlu1 %927 }
 0x17c   : > { %v1068_v36 = vmul.f32 1.442695, %v1043_v49  ;;  %v964_v21 = vsub.f32 %v928_v9, %v5004_v6  ;;  %v6684_v49 = vld [vmem:[#allocation58_spill] sm:$0xff] }
 0x17d   : > { %v399_v9 = vsub.f32 %v6684_v49, %v5021_v19 }
 0x17e   : > { %4238 = vpow2.f32 %v1068_v36  ;;  %v980_v44 = vand.u32 2147483647, %v964_v21 }
 0x180   : > { %v592_v39 = vpop.permute.xlu1 %591  ;;  %v996_v11 = vadd.f32 %v980_v44, %v5293_v2 }
 0x181   : > { %v4237_v35 = vpop.eup %4236  ;;  %v619_v16 = vsub.f32 %v592_v39, %v4998_v51 }
 0x182   : > { %1090 = vst [vmem:[%s4554_s23 + $0x40] sm:$0xff] %v4237_v35  ;;  %v5371_v30 = vand.u32 4294901760, %v4237_v35  ;;  %v1012_v21 = vmul.f32 %v996_v11, %v996_v11 }
 0x183   : > { %v635_v8 = vand.u32 2147483647, %v619_v16 }
 0x184   : > { %6683 = vst [vmem:[#allocation53_spill] sm:$0xff] %v5371_v30  ;;  %3831 = vmatprep.mubr.f32.mxu1 %v5371_v30  ;;  %v5376_v28 = vsub.f32 %v4237_v35, %v5371_v30  ;;  %v499_v35 = vmul.f32 %v399_v9, %v399_v9  ;;  %v6686_v9 = vld [vmem:[#allocation59_spill] sm:$0xff] }
 0x185   : > { %v767_v7 = vadd.f32 %v751_v25, %v635_v8  ;;  %v932_v4 = vpop.permute.xlu1 %931 }
 0x186   : > { %v6550_v5 = vand.u32 4294901760, %v5376_v28  ;;  %v965_v16 = vsub.f32 %v932_v4, %v5004_v6  ;;  %v400_v4 = vsub.f32 %v6686_v9, %v5021_v19 }
 0x187   : > { %v5379_v24 = vadd.f32 %v867_v52, %v767_v7 }
 0x188   : > { %v1294_v34 = vsub.f32 %v5376_v28, %v6550_v5  ;;  %v981_v44 = vand.u32 2147483647, %v965_v16 }
 0x18a   : > { %v447_v36 = vpop.permute.xlu1 %446  ;;  %v1295_v14 = vand.u32 4294901760, %v1294_v34 }
 0x18b   : > { %v4239_v54 = vpop.eup %4238  ;;  %v483_v31 = vsub.f32 %v447_v36, %v5025_v10 }
 0x18c   : > { %1091 = vst [vmem:[%s4554_s23 + $0x48] sm:$0xff] %v4239_v54  ;;  %3775 = vmatprep.mubr.f32.mxu0 %v1295_v14  ;;  %v5389_v39 = vand.u32 4294901760, %v4239_v54 }
 0x18d   : > { %v515_v25 = vmul.f32 %v483_v31, %v483_v31 }
 0x18e   : > { %6685 = vst [vmem:[#allocation19_spill] sm:$0xff] %v5389_v39  ;;  %3832 = vmatmul.mubr.f32.gmra.mxu1 %v5389_v39  ;;  %v5394_v52 = vsub.f32 %v4239_v54, %v5389_v39  ;;  %v997_v54 = vadd.f32 %v981_v44, %v5338_v33  ;;  %v618_v33 = vsub.f32 %v5363_v18, %v4998_v51  ;;  %v6687_v44 = vld [vmem:[#allocation56_spill] sm:$0xff] }
 0x18f   : > { %v531_v8 = vadd.f32 %v515_v25, %v499_v35  ;;  %v820_v7 = vpop.permute.xlu1 %819  ;;  %v500_v35 = vmul.f32 %v400_v4, %v400_v4  ;;  %v936_v25 = vpop.permute.xlu0 %935 }
 0x190   : > { %v6551_v2 = vand.u32 4294901760, %v5394_v52  ;;  %v850_v4 = vsub.f32 %v820_v7, %v5000_v55 }
 0x191   : > { %v1028_v34 = vadd.f32 %v1012_v21, %v531_v8  ;;  %v1013_v21 = vmul.f32 %v997_v54, %v997_v54  ;;  %v634_v54 = vand.u32 2147483647, %v618_v33 }
 0x192   : > { %v1304_v49 = vsub.f32 %v5394_v52, %v6551_v2 }
 0x193   : > { %v1044_v36 = vsub.f32 0.0, %v1028_v34 }
 0x194   : > { %v451_v14 = vpop.permute.xlu1 %450  ;;  %v1305_v31 = vand.u32 4294901760, %v1304_v49  ;;  %v940_v49 = vpop.permute.xlu0 %939 }
 0x195   : > { %v1070_v5 = vmul.f32 1.442695, %v1044_v36  ;;  %v484_v11 = vsub.f32 %v451_v14, %v5025_v10 }
 0x196   : > { %3776 = vmatmul.mubr.f32.gmra.mxu0 %v1305_v31 }
 0x197   : > { %4240 = vpow2.f32 %v1070_v5  ;;  %v516_v16 = vmul.f32 %v484_v11, %v484_v11  ;;  %v734_v5 = vsub.f32 %v6687_v44, %v4993_v29 }
 0x198   : > { %v5413_v36 = vpop.permute.xlu0 %943 }
 0x199   : > { %v532_v8 = vadd.f32 %v516_v16, %v500_v35  ;;  %v5404_v2 = vpop.permute.xlu1 %595  ;;  %v750_v11 = vand.u32 2147483647, %v734_v5  ;;  %v966_v35 = vsub.f32 %v936_v25, %v5004_v6  ;;  %v866_v16 = vand.u32 2147483647, %v850_v4 }
 0x19b   : > { %v1029_v39 = vadd.f32 %v1013_v21, %v532_v8  ;;  %v766_v21 = vadd.f32 %v750_v11, %v634_v54 }
 0x19c   : > { %v455_v18 = vpop.permute.xlu0 %454 }
 0x19d   : > { %v1045_v19 = vsub.f32 0.0, %v1029_v39  ;;  %v882_v33 = vadd.f32 %v866_v16, %v766_v21  ;;  %v485_v44 = vsub.f32 %v455_v18, %v5025_v10  ;;  %v967_v10 = vsub.f32 %v940_v49, %v5004_v6 }
 0x19e   : > { %v5406_v34 = vpop.permute.xlu1 %711 }
 0x19f   : > { %v1072_v9 = vmul.f32 1.442695, %v1045_v19  ;;  %v517_v57 = vmul.f32 %v485_v44, %v485_v44 }
 0x1a0   : > { %v459_v16 = vpop.permute.xlu0 %458 }
 0x1a1   : > { %4242 = vpow2.f32 %v1072_v9  ;;  %v982_v9 = vand.u32 2147483647, %v966_v35 }
 0x1a3   : > { %v5415_v14 = vpop.permute.xlu1 %599  ;;  %v998_v60 = vadd.f32 %v982_v9, %v882_v33 }
 0x1a4   : > { %v4241_v31 = vpop.eup %4240 }
 0x1a5   : > { %1092 = vst [vmem:[%s4554_s23 + $0x50] sm:$0xff] %v4241_v31  ;;  %v5418_v39 = vand.u32 4294901760, %v4241_v31  ;;  %v1014_v21 = vmul.f32 %v998_v60, %v998_v60 }
 0x1a7   : > { %6688 = vst [vmem:[#allocation13_spill] sm:$0xff] %v5418_v39  ;;  %3834 = vmatprep.mubr.f32.mxu1 %v5418_v39  ;;  %v5423_v7 = vsub.f32 %v4241_v31, %v5418_v39  ;;  %v5433_v31 = vld [vmem:[%s4542_s6] ss:$0 sm:$0xff] }
 0x1a8   : > { %v5425_v8 = vpop.permute.xlu1 %715 }
 0x1a9   : > { %v6560_v19 = vand.u32 4294901760, %v5423_v7 }
 0x1ab   : > { %v1314_v25 = vsub.f32 %v5423_v7, %v6560_v19  ;;  %v5446_v19 = vld [vmem:[%s4542_s6 + $0x1] ss:$0 sm:$0xff] }
 0x1ad   : > { %v368_v5 = vpop.permute.xlu1 %367  ;;  %v1315_v4 = vand.u32 4294901760, %v1314_v25  ;;  %v983_v25 = vand.u32 2147483647, %v967_v10  ;;  %v736_v10 = vsub.f32 %v5406_v34, %v4993_v29 }
 0x1ae   : > { %v4243_v30 = vpop.eup %4242  ;;  %v401_v54 = vsub.f32 %v368_v5, %v5433_v31 }
 0x1af   : > { %1093 = vst [vmem:[%s4554_s23 + $0x58] sm:$0xff] %v4243_v30  ;;  %3778 = vmatprep.mubr.f32.mxu0 %v1315_v4  ;;  %v5437_v11 = vand.u32 4294901760, %v4243_v30  ;;  %v486_v4 = vsub.f32 %v459_v16, %v5446_v19  ;;  %v620_v16 = vsub.f32 %v5404_v2, %v4998_v51 }
 0x1b0   : > { %v501_v35 = vmul.f32 %v401_v54, %v401_v54 }
 0x1b1   : > { %6689 = vst [vmem:[#allocation22_spill] sm:$0xff] %v5437_v11  ;;  %3835 = vmatmul.mubr.f32.gmra.mxu1 %v5437_v11  ;;  %v5442_v18 = vsub.f32 %v4243_v30, %v5437_v11  ;;  %v999_v30 = vadd.f32 %v983_v25, %v5379_v24  ;;  %v752_v11 = vand.u32 2147483647, %v736_v10  ;;  %v636_v25 = vand.u32 2147483647, %v620_v16 }
 0x1b2   : > { %v533_v9 = vadd.f32 %v517_v57, %v501_v35  ;;  %v828_v33 = vpop.permute.xlu1 %827  ;;  %v518_v57 = vmul.f32 %v486_v4, %v486_v4 }
 0x1b3   : > { %v6565_v44 = vand.u32 4294901760, %v5442_v18  ;;  %v768_v3 = vadd.f32 %v752_v11, %v636_v25 }
 0x1b4   : > { %v1030_v5 = vadd.f32 %v1014_v21, %v533_v9  ;;  %v852_v9 = vsub.f32 %v828_v33, %v5000_v55  ;;  %v737_v33 = vsub.f32 %v5425_v8, %v4993_v29 }
 0x1b5   : > { %v1324_v49 = vsub.f32 %v5442_v18, %v6565_v44 }
 0x1b6   : > { %v1046_v54 = vsub.f32 0.0, %v1030_v5  ;;  %v1015_v5 = vmul.f32 %v999_v30, %v999_v30  ;;  %v868_v4 = vand.u32 2147483647, %v852_v9  ;;  %v753_v9 = vand.u32 2147483647, %v737_v33 }
 0x1b7   : > { %v373_v39 = vpop.permute.xlu1 %372  ;;  %v1325_v40 = vand.u32 4294901760, %v1324_v49 }
 0x1b8   : > { %v1074_v60 = vmul.f32 1.442695, %v1046_v54  ;;  %v402_v35 = vsub.f32 %v373_v39, %v5433_v31  ;;  %v463_v39 = vpop.permute.xlu0 %462 }
 0x1b9   : > { %3779 = vmatmul.mubr.f32.gmra.mxu0 %v1325_v40  ;;  %v968_v40 = vsub.f32 %v5413_v36, %v5004_v6  ;;  %v487_v2 = vsub.f32 %v463_v39, %v5446_v19 }
 0x1ba   : > { %4244 = vpow2.f32 %v1074_v60  ;;  %v502_v21 = vmul.f32 %v402_v35, %v402_v35  ;;  %v884_v35 = vadd.f32 %v868_v4, %v768_v3 }
 0x1bb   : > { %v984_v30 = vand.u32 2147483647, %v968_v40  ;;  %v519_v36 = vmul.f32 %v487_v2, %v487_v2 }
 0x1bc   : > { %v534_v44 = vadd.f32 %v518_v57, %v502_v21  ;;  %v832_v49 = vpop.permute.xlu1 %831 }
 0x1bd   : > { %v853_v57 = vsub.f32 %v832_v49, %v5000_v55  ;;  %v1000_v21 = vadd.f32 %v984_v30, %v884_v35 }
 0x1be   : > { %v1031_v24 = vadd.f32 %v1015_v5, %v534_v44  ;;  %v621_v44 = vsub.f32 %v5415_v14, %v4998_v51 }
 0x1bf   : > { %v1016_v14 = vmul.f32 %v1000_v21, %v1000_v21 }
 0x1c0   : > { %v1047_v54 = vsub.f32 0.0, %v1031_v24  ;;  %v637_v8 = vand.u32 2147483647, %v621_v44  ;;  %v869_v24 = vand.u32 2147483647, %v853_v57 }
 0x1c1   : > { %v948_v34 = vpop.permute.xlu1 %947 }
 0x1c2   : > { %v1076_v60 = vmul.f32 1.442695, %v1047_v54  ;;  %v969_v3 = vsub.f32 %v948_v34, %v5004_v6  ;;  %v769_v25 = vadd.f32 %v753_v9, %v637_v8 }
 0x1c4   : > { %4246 = vpow2.f32 %v1076_v60  ;;  %v985_v4 = vand.u32 2147483647, %v969_v3  ;;  %v885_v6 = vadd.f32 %v869_v24, %v769_v25 }
 0x1c6   : > { %v378_v11 = vpop.permute.xlu1 %377  ;;  %v1001_v2 = vadd.f32 %v985_v4, %v885_v6 }
 0x1c7   : > { %v4245_v10 = vpop.eup %4244  ;;  %v403_v16 = vsub.f32 %v378_v11, %v5433_v31 }
 0x1c8   : > { %1094 = vst [vmem:[%s4554_s23 + $0x60] sm:$0xff] %v4245_v10  ;;  %v5470_v5 = vand.u32 4294901760, %v4245_v10 }
 0x1c9   : > { %v503_v29 = vmul.f32 %v403_v16, %v403_v16 }
 0x1ca   : > { %3837 = vmatprep.mubr.f32.mxu1 %v5470_v5  ;;  %v383_v51 = vpop.permute.xlu1 %382  ;;  %v5474_v55 = vsub.f32 %v4245_v10, %v5470_v5 }
 0x1cb   : > { %v535_v49 = vadd.f32 %v519_v36, %v503_v29  ;;  %v404_v40 = vsub.f32 %v383_v51, %v5433_v31  ;;  %v1017_v31 = vmul.f32 %v1001_v2, %v1001_v2  ;;  %v6691_v2 = vand.u32 4294901760, %v5180_v62 }
 0x1cc   : > { %v1333_v54 = vand.u32 4294901760, %v5474_v55 }
 0x1cd   : > { %v1032_v39 = vadd.f32 %v1016_v14, %v535_v49  ;;  %v504_v11 = vmul.f32 %v404_v40, %v404_v40 }
 0x1ce   : > { %v1334_v34 = vsub.f32 %v5474_v55, %v1333_v54 }
 0x1cf   : > { %v1048_v60 = vsub.f32 0.0, %v1032_v39  ;;  %v467_v35 = vpop.permute.xlu1 %466 }
 0x1d0   : > { %v488_v33 = vsub.f32 %v467_v35, %v5446_v19  ;;  %v1335_v30 = vand.u32 4294901760, %v1334_v34 }
 0x1d1   : > { %v4247_v44 = vpop.eup %4246  ;;  %v1078_v57 = vmul.f32 1.442695, %v1048_v60  ;;  %v6690_v60 = vand.u32 4294901760, %v5158_v63 }
 0x1d2   : > { %1095 = vst [vmem:[%s4554_s23 + $0x68] sm:$0xff] %v4247_v44  ;;  %v520_v10 = vmul.f32 %v488_v33, %v488_v33  ;;  %3781 = vmatprep.mubr.f32.mxu0 %v1335_v30  ;;  %v5483_v21 = vand.u32 4294901760, %v4247_v44  ;;  %v6692_v30 = vand.u32 4294901760, %v5153_v38 }
 0x1d3   : > { %4248 = vpow2.f32 %v1078_v57  ;;  %v6693_v57 = vand.u32 4294901760, %v5206_v53 }
 0x1d4   : > { %v536_v36 = vadd.f32 %v520_v10, %v504_v11  ;;  %3838 = vmatmul.mubr.f32.gmra.mxu1 %v5483_v21  ;;  %v5487_v16 = vsub.f32 %v4247_v44, %v5483_v21  ;;  %v6694_v11 = vand.u32 4294901760, %v5171_v48 }
 0x1d6   : > { %v1033_v9 = vadd.f32 %v1017_v31, %v536_v36  ;;  %v1343_v19 = vand.u32 4294901760, %v5487_v16 }
 0x1d8   : > { %v1049_v3 = vsub.f32 0.0, %v1033_v9  ;;  %v1344_v29 = vsub.f32 %v5487_v16, %v1343_v19 }
 0x1da   : > { %v1080_v8 = vmul.f32 1.442695, %v1049_v3  ;;  %v1345_v24 = vand.u32 4294901760, %v1344_v29 }
 0x1dc   : > { %4250 = vpow2.f32 %v1080_v8  ;;  %3782 = vmatmul.mubr.f32.gmra.mxu0 %v1345_v24 }
 0x1e0   : > { %v4249_v51 = vpop.eup %4248 }
 0x1e1   : > { %1096 = vst [vmem:[%s4554_s23 + $0x70] sm:$0xff] %v4249_v51  ;;  %v5494_v14 = vand.u32 4294901760, %v4249_v51 }
 0x1e3   : > { %3840 = vmatprep.mubr.f32.mxu1 %v5494_v14  ;;  %v5498_v49 = vsub.f32 %v4249_v51, %v5494_v14 }
 0x1e5   : > { %v1353_v25 = vand.u32 4294901760, %v5498_v49 }
 0x1e7   : > { %v1354_v4 = vsub.f32 %v5498_v49, %v1353_v25 }
 0x1e9   : > { %v4251_v39 = vpop.eup %4250  ;;  %v1355_v6 = vand.u32 4294901760, %v1354_v4 }
 0x1ea   : > { %1097 = vst [vmem:[%s4554_s23 + $0x78] sm:$0xff] %v4251_v39  ;;  %v5505_v40 = vand.u32 4294901760, %v4251_v39 }
 0x1eb   : > { %3784 = vmatprep.mubr.f32.mxu0 %v1355_v6 }
 0x1ec   : > { %3841 = vmatmul.mubr.f32.gmra.mxu1 %v5505_v40  ;;  %v5509_v34 = vsub.f32 %v4251_v39, %v5505_v40 }
 0x1ed   : > { %3931 = vmatprep.mubr.f32.mxu1 %v6690_v60 }
 0x1ee   : > { %v1363_v35 = vand.u32 4294901760, %v5509_v34 }
 0x1f0   : > { %3932 = vmatmul.mubr.f32.vlgmr.msra.gmra.mxu1 %v6691_v2  ;;  %v1364_v33 = vsub.f32 %v5509_v34, %v1363_v35 }
 0x1f1   : > { %3934 = vmatprep.mubr.f32.mxu1 %v6692_v30  ;;  %4012 = vmatpush3.msra.mxu1 %v4668_v20  ;;  %v6695_v20 = vand.u32 4294901760, %v5231_v0 }
 0x1f2   : > { %4013 = vmatprep.subr.mxu1 %v4676_v23  ;;  %v1365_v44 = vand.u32 4294901760, %v1364_v33 }
 0x1f3   : > { %4014 = vmatpush3.msra.mxu1 %v4676_v23  ;;  %v6696_v23 = vand.u32 4294901760, %v5307_v58 }
 0x1f4   : > { %3785 = vmatmul.mubr.f32.gmra.mxu0 %v1365_v44  ;;  %3935 = vmatmul.mubr.f32.gmra.mxu1 %v6693_v57 }
 0x1f5   : > { %4015 = vmatprep.subr.mxu1 %v4688_v27  ;;  %3875 = vmatprep.mubr.f32.mxu0 %v5158_v63  ;;  %v6697_v63 = vld [vmem:[#allocation12_spill] sm:$0xff] }
 0x1f6   : > { %3937 = vmatprep.mubr.f32.mxu1 %v6694_v11  ;;  %4016 = vmatpush3.msra.mxu1 %v4688_v27  ;;  %v6698_v27 = vld [vmem:[#allocation14_spill] sm:$0xff] }
 0x1f7   : > { %4017 = vmatprep.subr.mxu1 %v4702_v32 }
 0x1f8   : > { %4018 = vmatpush3.msra.mxu1 %v4702_v32  ;;  %3876 = vmatmul.mubr.f32.vlgmr.msra.gmra.mxu0 %v5180_v62  ;;  %v6699_v32 = vand.u32 4294901760, %v5349_v15  ;;  %v6701_v62 = vld [vmem:[#allocation17_spill] sm:$0xff] }
 0x1f9   : > { %3938 = vmatmul.mubr.f32.gmra.mxu1 %v6695_v20  ;;  %3956 = vmatpush3.msra.mxu0 %v6680_v56  ;;  %v6719_v56 = vld [vmem:[#allocation16_spill] sm:$0xff] }
 0x1fa   : > { %4019 = vmatprep.subr.mxu1 %v6645_v46  ;;  %3878 = vmatprep.mubr.f32.mxu0 %v5153_v38  ;;  %v6700_v38 = vand.u32 4294901760, %v5376_v28 }
 0x1fb   : > { %3940 = vmatprep.mubr.f32.mxu1 %v6696_v23  ;;  %3957 = vmatprep.subr.mxu0 %v6697_v63 }
 0x1fc   : > { %4020 = vmatpush3.msra.mxu1 %v6645_v46  ;;  %3958 = vmatpush3.msra.mxu0 %v6697_v63  ;;  %v6703_v46 = vand.u32 4294901760, %v5394_v52 }
 0x1fd   : > { %4021 = vmatprep.subr.mxu1 %v6648_v12  ;;  %3959 = vmatprep.subr.mxu0 %v6698_v27 }
 0x1fe   : > { %4022 = vmatpush3.msra.mxu1 %v6648_v12  ;;  %3879 = vmatmul.mubr.f32.gmra.mxu0 %v5206_v53  ;;  %v6702_v53 = vld [vmem:[#allocation20_spill] sm:$0xff]  ;;  %v6705_v12 = vld [vmem:[#allocation23_spill] sm:$0xff] }
 0x1ff   : > { %3941 = vmatmul.mubr.f32.gmra.mxu1 %v6699_v32  ;;  %3960 = vmatpush3.msra.mxu0 %v6698_v27 }
 0x200   : > { %4023 = vmatprep.subr.mxu1 %v6650_v13  ;;  %3881 = vmatprep.mubr.f32.mxu0 %v5171_v48  ;;  %v6704_v48 = vand.u32 4294901760, %v5423_v7 }
 0x201   : > { %3943 = vmatprep.mubr.f32.mxu1 %v6700_v38  ;;  %3961 = vmatprep.subr.mxu0 %v6701_v62 }
 0x202   : > { %4024 = vmatpush3.msra.mxu1 %v6650_v13  ;;  %3962 = vmatpush3.msra.mxu0 %v6701_v62  ;;  %v6707_v13 = vand.u32 4294901760, %v5442_v18 }
 0x203   : > { %4025 = vmatprep.subr.mxu1 %v6652_v45  ;;  %3963 = vmatprep.subr.mxu0 %v6702_v53 }
 0x204   : > { %4026 = vmatpush3.msra.mxu1 %v6652_v45  ;;  %3882 = vmatmul.mubr.f32.gmra.mxu0 %v5231_v0  ;;  %v6706_v0 = vld [vmem:[#allocation26_spill] sm:$0xff]  ;;  %v6708_v45 = vld [vmem:[#allocation29_spill] sm:$0xff] }
 0x205   : > { %3944 = vmatmul.mubr.f32.gmra.mxu1 %v6703_v46  ;;  %3964 = vmatpush3.msra.mxu0 %v6702_v53 }
 0x206   : > { %4027 = vmatprep.subr.mxu1 %v6654_v61  ;;  %3884 = vmatprep.mubr.f32.mxu0 %v5307_v58  ;;  %v6714_v58 = vld [vmem:[#allocation47_spill] sm:$0xff] }
 0x207   : > { %3946 = vmatprep.mubr.f32.mxu1 %v6704_v48  ;;  %3965 = vmatprep.subr.mxu0 %v6705_v12 }
 0x208   : > { %4028 = vmatpush3.msra.mxu1 %v6654_v61  ;;  %3966 = vmatpush3.msra.mxu0 %v6705_v12  ;;  %v6709_v61 = vld [vmem:[#allocation34_spill] sm:$0xff] }
 0x209   : > { %4029 = vmatprep.subr.mxu1 %v6659_v41  ;;  %3967 = vmatprep.subr.mxu0 %v6706_v0 }
 0x20a   : > { %4030 = vmatpush3.msra.mxu1 %v6659_v41  ;;  %3885 = vmatmul.mubr.f32.gmra.mxu0 %v5349_v15  ;;  %v6710_v41 = vld [vmem:[#allocation35_spill] sm:$0xff]  ;;  %v6718_v15 = vld [vmem:[#allocation64_spill] sm:$0xff] }
 0x20b   : > { %3947 = vmatmul.mubr.f32.gmra.mxu1 %v6707_v13  ;;  %3968 = vmatpush3.msra.mxu0 %v6706_v0 }
 0x20c   : > { %4031 = vmatprep.subr.mxu1 %v6661_v50  ;;  %3887 = vmatprep.mubr.f32.mxu0 %v5376_v28  ;;  %v6720_v28 = vld [vmem:[#allocation11_spill] sm:$0xff] }
 0x20d   : > { %3949 = vmatprep.mubr.f32.mxu1 %v1333_v54  ;;  %3969 = vmatprep.subr.mxu0 %v6708_v45 }
 0x20e   : > { %4032 = vmatpush3.msra.mxu1 %v6661_v50  ;;  %3970 = vmatpush3.msra.mxu0 %v6708_v45  ;;  %v6711_v50 = vld [vmem:[#allocation38_spill] sm:$0xff] }
 0x20f   : > { %4033 = vmatprep.subr.mxu1 %v6663_v37  ;;  %3971 = vmatprep.subr.mxu0 %v6709_v61 }
 0x210   : > { %4034 = vmatpush3.msra.mxu1 %v6663_v37  ;;  %3888 = vmatmul.mubr.f32.gmra.mxu0 %v5394_v52  ;;  %v6712_v37 = vld [vmem:[#allocation41_spill] sm:$0xff] }
 0x211   : > { %3950 = vmatmul.mubr.f32.gmra.mxu1 %v1343_v19  ;;  %3972 = vmatpush3.msra.mxu0 %v6709_v61  ;;  %v6721_v52 = vld [vmem:[#allocation53_spill] sm:$0xff] }
 0x212   : > { %4035 = vmatprep.subr.mxu1 %v6666_v26  ;;  %3890 = vmatprep.mubr.f32.mxu0 %v5423_v7 }
 0x213   : > { %3952 = vmatprep.mubr.f32.mxu1 %v1353_v25  ;;  %3973 = vmatprep.subr.mxu0 %v6710_v41 }
 0x214   : > { %4036 = vmatpush3.msra.mxu1 %v6666_v26  ;;  %3974 = vmatpush3.msra.mxu0 %v6710_v41  ;;  %v6713_v26 = vld [vmem:[#allocation44_spill] sm:$0xff] }
 0x215   : > { %4037 = vmatprep.subr.mxu1 %v6670_v22  ;;  %3975 = vmatprep.subr.mxu0 %v6711_v50 }
 0x216   : > { %4038 = vmatpush3.msra.mxu1 %v6670_v22  ;;  %3891 = vmatmul.mubr.f32.gmra.mxu0 %v5442_v18  ;;  %v6715_v22 = vld [vmem:[#allocation50_spill] sm:$0xff] }
 0x217   : > { %3953 = vmatmul.mubr.f32.gmra.mxu1 %v1363_v35  ;;  %3976 = vmatpush3.msra.mxu0 %v6711_v50 }
 0x218   : > { %4039 = vmatprep.subr.mxu1 %v6672_v17  ;;  %3893 = vmatprep.mubr.f32.mxu0 %v5474_v55  ;;  %v3765_v55 = vpop.f32.mrf.mxu0 }
 0x219   : > { %3977 = vmatprep.subr.mxu0 %v6712_v37  ;;  %4040 = vmatpush3.msra.mxu1 %v6672_v17  ;;  %v6716_v17 = vld [vmem:[#allocation52_spill] sm:$0xff] }
 0x21a   : > { %4043 = vmatprep.mubr.f32.mxu1 %v5147_v59  ;;  %3978 = vmatpush3.msra.mxu0 %v6712_v37  ;;  %v1217_v10 = vpop.f32.mrf.mxu0 }
 0x21b   : > { %4041 = vmatprep.subr.mxu1 %v6674_v43  ;;  %3979 = vmatprep.subr.mxu0 %v6713_v26 }
 0x21c   : > { %4042 = vmatpush3.msra.mxu1 %v6674_v43  ;;  %3894 = vmatmul.mubr.f32.gmra.mxu0 %v5487_v16  ;;  %v6717_v43 = vld [vmem:[#allocation63_spill] sm:$0xff]  ;;  %v3768_v36 = vpop.f32.mrf.mxu0 }
 0x21d   : > { %3980 = vmatpush3.msra.mxu0 %v6713_v26  ;;  %4044 = vmatmul.mubr.f32.vlgmr.msra.gmra.mxu1 %v5166_v42 }
 0x21e   : > { %3896 = vmatprep.mubr.f32.mxu0 %v5498_v49  ;;  %3981 = vmatprep.subr.mxu0 %v6714_v58 }
 0x21f   : > { %4046 = vmatprep.mubr.f32.mxu1 %v5141_v47  ;;  %3982 = vmatpush3.msra.mxu0 %v6714_v58 }
 0x220   : > { %3983 = vmatprep.subr.mxu0 %v6715_v22  ;;  %3897 = vmatmul.mubr.f32.gmra.mxu0 %v5509_v34 }
 0x221   : > { %3984 = vmatpush3.msra.mxu0 %v6715_v22  ;;  %4047 = vmatmul.mubr.f32.gmra.mxu1 %v5190_v1 }
 0x222   : > { %3985 = vmatprep.subr.mxu0 %v6716_v17  ;;  %3987 = vmatprep.mubr.f32.mxu0 %v5147_v59  ;;  %v6722_v59 = vld [vmem:[#allocation19_spill] sm:$0xff] }
 0x223   : > { %4049 = vmatprep.mubr.f32.mxu1 %v6717_v43  ;;  %3986 = vmatpush3.msra.mxu0 %v6716_v17 }
 0x224   : > { %3988 = vmatmul.mubr.f32.vlgmr.msra.gmra.mxu0 %v5166_v42  ;;  %v6723_v42 = vld [vmem:[#allocation13_spill] sm:$0xff] }
 0x225   : > { %4050 = vmatmul.mubr.f32.gmra.mxu1 %v6718_v15  ;;  %3990 = vmatprep.mubr.f32.mxu0 %v5141_v47  ;;  %v6724_v47 = vld [vmem:[#allocation22_spill] sm:$0xff] }
 0x226   : > { %4052 = vmatprep.mubr.f32.mxu1 %v6719_v56 }
 0x228   : > { %3991 = vmatmul.mubr.f32.gmra.mxu0 %v5190_v1  ;;  %v3821_v1 = vpop.f32.mrf.mxu1 }
 0x229   : > { %4053 = vmatmul.mubr.f32.gmra.mxu1 %v6720_v28  ;;  %3993 = vmatprep.mubr.f32.mxu0 %v6717_v43 }
 0x22a   : > { %4055 = vmatprep.mubr.f32.mxu1 %v6721_v52  ;;  %v5657_v7 = vpop.f32.mrf.mxu1 }
 0x22c   : > { %3994 = vmatmul.mubr.f32.gmra.mxu0 %v6718_v15  ;;  %v5659_v18 = vpop.f32.mrf.mxu1 }
 0x22d   : > { %4056 = vmatmul.mubr.f32.gmra.mxu1 %v6722_v59  ;;  %3996 = vmatprep.mubr.f32.mxu0 %v6719_v56 }
 0x22e   : > { %4058 = vmatprep.mubr.f32.mxu1 %v6723_v42  ;;  %v5661_v54 = vpop.f32.mrf.mxu1 }
 0x230   : > { %3997 = vmatmul.mubr.f32.gmra.mxu0 %v6720_v28  ;;  %v5663_v31 = vpop.f32.mrf.mxu1 }
 0x231   : > { %4059 = vmatmul.mubr.f32.gmra.mxu1 %v6724_v47  ;;  %3999 = vmatprep.mubr.f32.mxu0 %v6721_v52 }
 0x232   : > { %4061 = vmatprep.mubr.f32.mxu1 %v5470_v5  ;;  %v5665_v16 = vpop.f32.mrf.mxu1 }
 0x234   : > { %4000 = vmatmul.mubr.f32.gmra.mxu0 %v6722_v59  ;;  %v1525_v59 = vadd.f32 %v3821_v1, %v3765_v55 }
 0x235   : > { %4062 = vmatmul.mubr.f32.gmra.mxu1 %v5483_v21  ;;  %4002 = vmatprep.mubr.f32.mxu0 %v6723_v42 }
 0x236   : > { %4064 = vmatprep.mubr.f32.mxu1 %v5494_v14 }
 0x238   : > { %4003 = vmatmul.mubr.f32.gmra.mxu0 %v6724_v47 }
 0x239   : > { %4065 = vmatmul.mubr.f32.gmra.mxu1 %v5505_v40  ;;  %4005 = vmatprep.mubr.f32.mxu0 %v5470_v5  ;;  %v5667_v5 = vpop.f32.mrf.mxu0 }
 0x23b   : > { %v5671_v9 = vpop.f32.mrf.mxu0 }
 0x23c   : > { %4006 = vmatmul.mubr.f32.gmra.mxu0 %v5483_v21  ;;  %v5669_v21 = vpop.f32.mrf.mxu1 }
 0x23d   : > { %4008 = vmatprep.mubr.f32.mxu0 %v5494_v14  ;;  %v5675_v3 = vpop.f32.mrf.mxu0 }
 0x23e   : > { %v5673_v19 = vpop.f32.mrf.mxu1 }
 0x23f   : > { %v5679_v8 = vpop.f32.mrf.mxu0 }
 0x240   : > { %4009 = vmatmul.mubr.f32.gmra.mxu0 %v5505_v40 }
 0x241   : > { %v5683_v51 = vpop.f32.mrf.mxu0 }
 0x24e   : > { %v5677_v29 = vpop.f32.mrf.mxu1 }
 0x250   : > { %v5681_v24 = vpop.f32.mrf.mxu1 }
 0x256   : > { %v5687_v49 = vpop.f32.mrf.mxu0 }
 0x258   : > { %v5691_v4 = vpop.f32.mrf.mxu0 }
 0x271   : > { %v5685_v14 = vpop.f32.mrf.mxu1 }
 0x273   : > { %v5689_v25 = vpop.f32.mrf.mxu1 }
 0x279   : > { %v5695_v6 = vpop.f32.mrf.mxu0 }
 0x27b   : > { %v5699_v34 = vpop.f32.mrf.mxu0 }
 0x294   : > { %v5693_v39 = vpop.f32.mrf.mxu1 }
 0x296   : > { %v5697_v40 = vpop.f32.mrf.mxu1 }
 0x29c   : > { %v5703_v35 = vpop.f32.mrf.mxu0 }
 0x29e   : > { %v5707_v30 = vpop.f32.mrf.mxu0 }
 0x2ac   : > { %v5701_v60 = vpop.f32.mrf.mxu1 }
 0x2ad   : > { %6725 = vst [vmem:[#allocation15_spill] sm:$0xff] %v5701_v60 }
 0x2ae   : > { %v5705_v2 = vpop.f32.mrf.mxu1 }
 0x2af   : > { %6726 = vst [vmem:[#allocation25_spill] sm:$0xff] %v5705_v2 }
 0x2b0   : > { %v3933_v33 = vpop.f32.mrf.mxu1 }
 0x2b2   : > { %v1906_v44 = vpop.f32.mrf.mxu1 }
 0x2b4   : > { %v5709_v57 = vpop.f32.mrf.mxu0  ;;  %v3936_v11 = vpop.f32.mrf.mxu1 }
 0x2b5   : > { %6727 = vst [vmem:[#allocation18_spill] sm:$0xff] %v5709_v57 }
 0x2b6   : > { %v5711_v20 = vpop.f32.mrf.mxu0  ;;  %v5713_v23 = vpop.f32.mrf.mxu1 }
 0x2b7   : > { %6728 = vst [vmem:[#allocation28_spill] sm:$0xff] %v5711_v20 }
 0x2b8   : > { %v3877_v63 = vpop.f32.mrf.mxu0 }
 0x2b9   : > { %v5715_v27 = vpop.f32.mrf.mxu1  ;;  %v1720_v2 = vadd.f32 %v3877_v63, %v1525_v59 }
 0x2ba   : > { %v1712_v32 = vpop.f32.mrf.mxu0 }
 0x2bb   : > { %v5717_v38 = vpop.f32.mrf.mxu1  ;;  %v1915_v55 = vadd.f32 %v3933_v33, %v1720_v2  ;;  %v1561_v2 = vadd.f32 %v5669_v21, %v5679_v8 }
 0x2be   : > { %v3880_v62 = vpop.f32.mrf.mxu0 }
 0x2bf   : > { %v5719_v53 = vpop.f32.mrf.mxu1 }
 0x2c0   : > { %v1726_v46 = vpop.f32.mrf.mxu0 }
 0x2c1   : > { %v5721_v48 = vpop.f32.mrf.mxu1 }
 0x2c4   : > { %v3883_v12 = vpop.f32.mrf.mxu0 }
 0x2c5   : > { %v5723_v0 = vpop.f32.mrf.mxu1 }
 0x2c6   : > { %v1740_v13 = vpop.f32.mrf.mxu0 }
 0x2c7   : > { %v5725_v45 = vpop.f32.mrf.mxu1 }
 0x2ca   : > { %v3886_v61 = vpop.f32.mrf.mxu0 }
 0x2cb   : > { %v5727_v41 = vpop.f32.mrf.mxu1 }
 0x2cc   : > { %6729 = vst [vmem:[#allocation21_spill] sm:$0xff] %v5727_v41  ;;  %v5729_v50 = vpop.f32.mrf.mxu0 }
 0x2cd   : > { %v5731_v37 = vpop.f32.mrf.mxu1 }
 0x2ce   : > { %6730 = vst [vmem:[#allocation54_spill] sm:$0xff] %v5731_v37 }
 0x2d0   : > { %v5733_v26 = vpop.f32.mrf.mxu0 }
 0x2d1   : > { %v5735_v58 = vpop.f32.mrf.mxu1 }
 0x2d2   : > { %6731 = vst [vmem:[#allocation60_spill] sm:$0xff] %v5735_v58  ;;  %v5737_v22 = vpop.f32.mrf.mxu0  ;;  %v1519_v58 = vadd.f32 %v5657_v7, %v1217_v10 }
 0x2d3   : > { %v5739_v17 = vpop.f32.mrf.mxu1 }
 0x2d4   : > { %6732 = vst [vmem:[#allocation30_spill] sm:$0xff] %v5739_v17  ;;  %v1537_v17 = vadd.f32 %v5659_v18, %v3768_v36  ;;  %v1713_v60 = vadd.f32 %v1712_v32, %v1519_v58  ;;  %v1543_v18 = vadd.f32 %v5665_v16, %v5675_v3  ;;  %v1099_v32 = vld [vmem:[#allocation2 + $0x8] sm:$0xff]  ;;  %v1555_v3 = vadd.f32 %v5673_v19, %v5683_v51 }
 0x2d6   : > { %v5741_v43 = vpop.f32.mrf.mxu0  ;;  %v1734_v41 = vadd.f32 %v3880_v62, %v1537_v17  ;;  %v1741_v33 = vadd.f32 %v1740_v13, %v1543_v18  ;;  %v1755_v19 = vadd.f32 %v5729_v50, %v1555_v3 }
 0x2d7   : > { %v5743_v15 = vpop.f32.mrf.mxu1 }
 0x2d8   : > { %6733 = vst [vmem:[#allocation24_spill] sm:$0xff] %v5743_v15  ;;  %v5745_v56 = vpop.f32.mrf.mxu0 }
 0x2d9   : > { %v5747_v28 = vpop.f32.mrf.mxu1 }
 0x2da   : > { %6734 = vst [vmem:[#allocation33_spill] sm:$0xff] %v5747_v28  ;;  %v1531_v28 = vadd.f32 %v5661_v54, %v5667_v5  ;;  %v1931_v5 = vadd.f32 %v3936_v11, %v1734_v41  ;;  %v1762_v41 = vadd.f32 %v3886_v61, %v1561_v2 }
 0x2dc   : > { %v5749_v52 = vpop.f32.mrf.mxu0  ;;  %v1727_v10 = vadd.f32 %v1726_v46, %v1531_v28  ;;  %v1963_v50 = vadd.f32 %v5719_v53, %v1762_v41 }
 0x2dd   : > { %6735 = vst [vmem:[#allocation27_spill] sm:$0xff] %v5749_v52  ;;  %v4045_v42 = vpop.f32.mrf.mxu1 }
 0x2de   : > { %v5751_v47 = vpop.f32.mrf.mxu0  ;;  %v1923_v16 = vadd.f32 %v5713_v23, %v1727_v10  ;;  %v1939_v23 = vadd.f32 %v5717_v38, %v1741_v33  ;;  %v1104_v33 = vld [vmem:[#allocation2 + $0x30] sm:$0xff] }
 0x2df   : > { %6736 = vst [vmem:[#allocation37_spill] sm:$0xff] %v5751_v47  ;;  %v2322_v20 = vpop.f32.mrf.mxu1  ;;  %v1549_v47 = vadd.f32 %v5663_v31, %v5671_v9  ;;  %v1098_v31 = vld [vmem:[#allocation2] sm:$0xff] }
 0x2e0   : > { %v5754_v37 = vpop.f32.mrf.mxu0 }
 0x2e1   : > { %6737 = vst [vmem:[#allocation31_spill] sm:$0xff] %v5754_v37  ;;  %v4048_v15 = vpop.f32.mrf.mxu1  ;;  %v1907_v37 = vadd.f32 %v1906_v44, %v1713_v60  ;;  %v1748_v36 = vadd.f32 %v3883_v12, %v1549_v47  ;;  %v1101_v12 = vld [vmem:[#allocation2 + $0x18] sm:$0xff]  ;;  %v1103_v47 = vld [vmem:[#allocation2 + $0x28] sm:$0xff] }
 0x2e2   : > { %v5757_v57 = vpop.f32.mrf.mxu0 }
 0x2e3   : > { %6738 = vst [vmem:[#allocation40_spill] sm:$0xff] %v5757_v57  ;;  %v2334_v1 = vpop.f32.mrf.mxu1  ;;  %v1947_v11 = vadd.f32 %v5715_v27, %v1748_v36 }
 0x2e4   : > { %v3989_v7 = vpop.f32.mrf.mxu0 }
 0x2e5   : > { %v2152_v63 = vadd.f32 %v3989_v7, %v1915_v55  ;;  %v4051_v59 = vpop.f32.mrf.mxu1 }
 0x2e6   : > { %v2145_v58 = vpop.f32.mrf.mxu0  ;;  %v6743_v41 = vld [vmem:[#allocation37_spill] sm:$0xff] }
 0x2e7   : > { %v2329_v57 = vadd.f32 %v4045_v42, %v2152_v63  ;;  %v2146_v52 = vadd.f32 %v2145_v58, %v1907_v37  ;;  %v2346_v54 = vpop.f32.mrf.mxu1  ;;  %v1102_v63 = vld [vmem:[#allocation2 + $0x20] sm:$0xff]  ;;  %v1105_v58 = vld [vmem:[#allocation2 + $0x38] sm:$0xff] }
 0x2e8   : > { %v3992_v9 = vpop.f32.mrf.mxu0 }
 0x2e9   : > { %v2417_v62 = vadd.f32 %v2329_v57, %v1099_v32  ;;  %v2323_v46 = vadd.f32 %v2322_v20, %v2146_v52  ;;  %v2164_v60 = vadd.f32 %v3992_v9, %v1931_v5  ;;  %v4054_v44 = vpop.f32.mrf.mxu1  ;;  %v1573_v57 = vadd.f32 %v5677_v29, %v5687_v49  ;;  %v1100_v20 = vld [vmem:[#allocation2 + $0x10] sm:$0xff] }
 0x2ea   : > { %v2157_v37 = vpop.f32.mrf.mxu0  ;;  %v1955_v32 = vadd.f32 %v5721_v48, %v1755_v19  ;;  %v6746_v19 = vld [vmem:[#allocation25_spill] sm:$0xff] }
 0x2eb   : > { %2434 = vst.msk [vmem:[#allocation2 + $0x8] sm:$0xff] %vm2432_vm1, %v2417_v62  ;;  %v2416_v21 = vadd.f32 %v2323_v46, %v1098_v31  ;;  %v2341_v8 = vadd.f32 %v4048_v15, %v2164_v60  ;;  %v2158_v13 = vadd.f32 %v2157_v37, %v1923_v16  ;;  %v2358_v17 = vpop.f32.mrf.mxu1  ;;  %v1567_v15 = vadd.f32 %v5681_v24, %v5691_v4  ;;  %v6739_v46 = vld [vmem:[#allocation27_spill] sm:$0xff] }
 0x2ec   : > { %v3995_v28 = vpop.f32.mrf.mxu0  ;;  %v1776_v42 = vadd.f32 %v5733_v26, %v1573_v57  ;;  %v1591_v62 = vadd.f32 %v5697_v40, %v5707_v30  ;;  %v6742_v37 = vld [vmem:[#allocation15_spill] sm:$0xff] }
 0x2ed   : > { %2433 = vst.msk [vmem:[#allocation2] sm:$0xff] %vm2432_vm1, %v2416_v21  ;;  %v2419_v51 = vadd.f32 %v2341_v8, %v1101_v12  ;;  %v2335_v27 = vadd.f32 %v2334_v1, %v2158_v13  ;;  %v2176_v61 = vadd.f32 %v3995_v28, %v1947_v11  ;;  %v4057_v52 = vpop.f32.mrf.mxu1  ;;  %v1585_v1 = vadd.f32 %v5685_v14, %v5695_v6  ;;  %v1106_v13 = vld [vmem:[#allocation2 + $0x40] sm:$0xff] }
 0x2ee   : > { %v2169_v55 = vpop.f32.mrf.mxu0  ;;  %v1769_v10 = vadd.f32 %v5737_v22, %v1567_v15  ;;  %v1979_v5 = vadd.f32 %v5723_v0, %v1776_v42  ;;  %v1797_v21 = vadd.f32 %v6743_v41, %v1591_v62  ;;  %v6748_v42 = vld [vmem:[#allocation31_spill] sm:$0xff] }
 0x2ef   : > { %2436 = vst.msk [vmem:[#allocation2 + $0x18] sm:$0xff] %vm2432_vm1, %v2419_v51  ;;  %v2418_v29 = vadd.f32 %v2335_v27, %v1100_v20  ;;  %v2353_v49 = vadd.f32 %v4051_v59, %v2176_v61  ;;  %v2170_v38 = vadd.f32 %v2169_v55, %v1939_v23  ;;  %v2370_v7 = vpop.f32.mrf.mxu1  ;;  %v1579_v59 = vadd.f32 %v5689_v25, %v5699_v34  ;;  %v6744_v20 = vld [vmem:[#allocation54_spill] sm:$0xff]  ;;  %v6745_v23 = vld [vmem:[#allocation28_spill] sm:$0xff]  ;;  %v1109_v27 = vld [vmem:[#allocation2 + $0x58] sm:$0xff] }
 0x2f0   : > { %v3998_v18 = vpop.f32.mrf.mxu0  ;;  %v1790_v14 = vadd.f32 %v5741_v43, %v1585_v1  ;;  %v1971_v9 = vadd.f32 %v5725_v45, %v1769_v10  ;;  %v6740_v45 = vld [vmem:[#allocation21_spill] sm:$0xff]  ;;  %v1603_v51 = vadd.f32 %v6746_v19, %v6745_v23  ;;  %v6749_v1 = vld [vmem:[#allocation30_spill] sm:$0xff] }
 0x2f1   : > { %2435 = vst.msk [vmem:[#allocation2 + $0x10] sm:$0xff] %vm2432_vm1, %v2418_v29  ;;  %v2421_v24 = vadd.f32 %v2353_v49, %v1103_v47  ;;  %v2347_v4 = vadd.f32 %v2346_v54, %v2170_v38  ;;  %v2188_v26 = vadd.f32 %v3998_v18, %v1963_v50  ;;  %v4060_v36 = vpop.f32.mrf.mxu1  ;;  %v1597_v54 = vadd.f32 %v5693_v39, %v5703_v35  ;;  %v1108_v50 = vld [vmem:[#allocation2 + $0x50] sm:$0xff] }
 0x2f2   : > { %v2181_v53 = vpop.f32.mrf.mxu0  ;;  %v1783_v25 = vadd.f32 %v5745_v56, %v1579_v59  ;;  %v1995_v12 = vadd.f32 %v6740_v45, %v1790_v14  ;;  %v6741_v56 = vld [vmem:[#allocation18_spill] sm:$0xff]  ;;  %v2003_v10 = vadd.f32 %v6749_v1, %v1797_v21 }
 0x2f3   : > { %2438 = vst.msk [vmem:[#allocation2 + $0x28] sm:$0xff] %vm2432_vm1, %v2421_v24  ;;  %v2420_v6 = vadd.f32 %v2347_v4, %v1102_v63  ;;  %v2365_v22 = vadd.f32 %v4054_v44, %v2188_v26  ;;  %v2182_v2 = vadd.f32 %v2181_v53, %v1955_v32  ;;  %v2382_v31 = vpop.f32.mrf.mxu1  ;;  %v1804_v60 = vadd.f32 %v6739_v46, %v1597_v54  ;;  %v1107_v44 = vld [vmem:[#allocation2 + $0x48] sm:$0xff]  ;;  %v6750_v63 = vld [vmem:[#allocation40_spill] sm:$0xff] }
 0x2f4   : > { %v4001_v48 = vpop.f32.mrf.mxu0  ;;  %v1609_v11 = vadd.f32 %v6742_v37, %v6741_v56  ;;  %v1987_v28 = vadd.f32 %v6744_v20, %v1783_v25  ;;  %v1811_v18 = vadd.f32 %v6750_v63, %v1603_v51  ;;  %v1111_v32 = vld [vmem:[#allocation2 + $0x68] sm:$0xff]  ;;  %v1113_v25 = vld [vmem:[#allocation2 + $0x78] sm:$0xff] }
 0x2f5   : > { %2437 = vst.msk [vmem:[#allocation2 + $0x20] sm:$0xff] %vm2432_vm1, %v2420_v6  ;;  %v2423_v34 = vadd.f32 %v2365_v22, %v1105_v58  ;;  %v2359_v0 = vadd.f32 %v2358_v17, %v2182_v2  ;;  %v2200_v43 = vadd.f32 %v4001_v48, %v1979_v5  ;;  %v4063_v8 = vpop.f32.mrf.mxu1  ;;  %v6751_v5 = vld [vmem:[#allocation24_spill] sm:$0xff]  ;;  %v1110_v22 = vld [vmem:[#allocation2 + $0x60] sm:$0xff] }
 0x2f6   : > { %v2193_v16 = vpop.f32.mrf.mxu0  ;;  %v1818_v47 = vadd.f32 %v6748_v42, %v1609_v11 }
 0x2f7   : > { %2440 = vst.msk [vmem:[#allocation2 + $0x38] sm:$0xff] %vm2432_vm1, %v2423_v34  ;;  %v2422_v39 = vadd.f32 %v2359_v0, %v1104_v33  ;;  %v2377_v35 = vadd.f32 %v4057_v52, %v2200_v43  ;;  %v2194_v3 = vadd.f32 %v2193_v16, %v1971_v9  ;;  %v6747_v52 = vld [vmem:[#allocation60_spill] sm:$0xff]  ;;  %v2394_v38 = vpop.f32.mrf.mxu1  ;;  %v6752_v9 = vld [vmem:[#allocation33_spill] sm:$0xff] }
 0x2f8   : > { %v4004_v17 = vpop.f32.mrf.mxu0  ;;  %v2011_v15 = vadd.f32 %v6747_v52, %v1804_v60  ;;  %v2027_v14 = vadd.f32 %v6751_v5, %v1818_v47  ;;  %v1112_v60 = vld [vmem:[#allocation2 + $0x70] sm:$0xff] }
 0x2f9   : > { %2439 = vst.msk [vmem:[#allocation2 + $0x30] sm:$0xff] %vm2432_vm1, %v2422_v39  ;;  %v2425_v40 = vadd.f32 %v2377_v35, %v1107_v44  ;;  %v2371_v30 = vadd.f32 %v2370_v7, %v2194_v3  ;;  %v2212_v57 = vadd.f32 %v4004_v17, %v1995_v12  ;;  %v4066_v6 = vpop.f32.mrf.mxu1 }
 0x2fa   : > { %v2205_v61 = vpop.f32.mrf.mxu0 }
 0x2fb   : > { %2442 = vst.msk [vmem:[#allocation2 + $0x48] sm:$0xff] %vm2432_vm1, %v2425_v40  ;;  %v2424_v55 = vadd.f32 %v2371_v30, %v1106_v13  ;;  %v2389_v29 = vadd.f32 %v4060_v36, %v2212_v57  ;;  %v2206_v49 = vadd.f32 %v2205_v61, %v1987_v28  ;;  %v2406_v46 = vpop.f32.mrf.mxu1 }
 0x2fc   : > { %v4007_v7 = vpop.f32.mrf.mxu0 }
 0x2fd   : > { %2441 = vst.msk [vmem:[#allocation2 + $0x40] sm:$0xff] %vm2432_vm1, %v2424_v55  ;;  %v2427_v24 = vadd.f32 %v2389_v29, %v1109_v27  ;;  %v2383_v4 = vadd.f32 %v2382_v31, %v2206_v49  ;;  %v2224_v26 = vadd.f32 %v4007_v7, %v2011_v15  ;;  %v2019_v31 = vadd.f32 %v6752_v9, %v1811_v18 }
 0x2fe   : > { %v2217_v59 = vpop.f32.mrf.mxu0 }
 0x2ff   : > { %2444 = vst.msk [vmem:[#allocation2 + $0x58] sm:$0xff] %vm2432_vm1, %v2427_v24  ;;  %v2426_v58 = vadd.f32 %v2383_v4, %v1108_v50  ;;  %v2401_v53 = vadd.f32 %v4063_v8, %v2224_v26  ;;  %v2218_v36 = vadd.f32 %v2217_v59, %v2003_v10 }
 0x300   : > { %v4010_v2 = vpop.f32.mrf.mxu0 }
 0x301   : > { %2443 = vst.msk [vmem:[#allocation2 + $0x50] sm:$0xff] %vm2432_vm1, %v2426_v58  ;;  %v2429_v54 = vadd.f32 %v2401_v53, %v1111_v32  ;;  %v2395_v33 = vadd.f32 %v2394_v38, %v2218_v36  ;;  %v2236_v48 = vadd.f32 %v4010_v2, %v2027_v14 }
 0x302   : > { %v2229_v34 = vpop.f32.mrf.mxu0 }
 0x303   : > { %2446 = vst.msk [vmem:[#allocation2 + $0x68] sm:$0xff] %vm2432_vm1, %v2429_v54  ;;  %v2428_v0 = vadd.f32 %v2395_v33, %v1110_v22  ;;  %v2413_v43 = vadd.f32 %v4066_v6, %v2236_v48  ;;  %v2230_v62 = vadd.f32 %v2229_v34, %v2019_v31 }
 0x305   : > { %2445 = vst.msk [vmem:[#allocation2 + $0x60] sm:$0xff] %vm2432_vm1, %v2428_v0  ;;  %v2431_v44 = vadd.f32 %v2413_v43, %v1113_v25  ;;  %v2407_v16 = vadd.f32 %v2406_v46, %v2230_v62  ;;  %2452 = sbr.rel (%p3532_p2) target bundleno = 1745 (0x6d1), region = 40 }
 0x307   : > { %2448 = vst.msk [vmem:[#allocation2 + $0x78] sm:$0xff] %vm2432_vm1, %v2431_v44  ;;  %v2430_v39 = vadd.f32 %v2407_v16, %v1112_v60 }
 0x309   : > { %2447 = vst.msk [vmem:[#allocation2 + $0x70] sm:$0xff] %vm2432_vm1, %v2430_v39 }
 0x30a   : > { %v5825_v35 = vld [vmem:[%s4537_s24 + $0x10] sm:$0xff]  ;;  %v5828_v3 = vld [vmem:[%s4537_s24] sm:$0xff]  ;;  %s4422_s20 = smov 106   ;;  %v5835_v45 = vld [vmem:[%s4537_s24 + $0x18] sm:$0xff]  ;;  %v4423_v56 = vmov 8   ;;  %vm2661_vm2 = vcmask 64512  }
 0x30b   : > { %2617 = vrot.lane.b32.xlu1 %v5825_v35, %s4422_s20  ;;  %2613 = vrot.lane.b32.xlu0 %v5828_v3, %s4422_s20  ;;  %v5838_v12 = vld [vmem:[%s4537_s24 + $0x8] sm:$0xff]  ;;  %v5848_v11 = vld [vmem:[%s4537_s24 + $0x20] sm:$0xff]  ;;  %v5914_v61 = vld [vmem:[#allocation2 + $0x10] sm:$0xff]  ;;  %s4424_s21 = smov 120   ;;  %s4425_s26 = smov 6   ;;  %vm3350_vm3 = vcmask 72768  }
 0x30c   : > { %4256 = vset.pattern.permute.xlu1 %v4423_v56  ;;  %4255 = vset.pattern.permute.xlu0 %v4423_v56  ;;  %v5845_v37 = vld [vmem:[%s4537_s24 + $0x28] sm:$0xff]  ;;  %v5855_v41 = vld [vmem:[%s4537_s24 + $0x38] sm:$0xff]  ;;  %v5858_v21 = vld [vmem:[%s4537_s24 + $0x30] sm:$0xff]  ;;  %v5921_v15 = vmul.f32 0.5, %v5914_v61  ;;  %s4426_s8 = smov 16  }
 0x30d   : > { %v5865_v8 = vld [vmem:[%s4537_s24 + $0x48] sm:$0xff]  ;;  %v5868_v13 = vld [vmem:[%s4537_s24 + $0x40] sm:$0xff]  ;;  %v5875_v17 = vld [vmem:[%s4537_s24 + $0x58] sm:$0xff] }
 0x30e   : > { %v5878_v40 = vld [vmem:[%s4537_s24 + $0x50] sm:$0xff]  ;;  %v5885_v30 = vld [vmem:[%s4537_s24 + $0x68] sm:$0xff]  ;;  %v5888_v57 = vld [vmem:[%s4537_s24 + $0x60] sm:$0xff] }
 0x30f   : > { %2619 = vrot.lane.b32.xlu1 %v5835_v45, %s4422_s20  ;;  %2615 = vrot.lane.b32.xlu0 %v5838_v12, %s4422_s20  ;;  %v5894_v20 = vld [vmem:[#allocation2 + $0x8] sm:$0xff]  ;;  %v5897_v28 = vld [vmem:[%s4537_s24 + $0x78] sm:$0xff]  ;;  %v5900_v23 = vld [vmem:[%s4537_s24 + $0x70] sm:$0xff] }
 0x310   : > { %v5902_v19 = vld [vmem:[#allocation2] sm:$0xff]  ;;  %v5909_v51 = vmul.f32 0.5, %v5894_v20  ;;  %v5916_v52 = vld [vmem:[#allocation2 + $0x18] sm:$0xff]  ;;  %v5928_v55 = vld [vmem:[#allocation2 + $0x28] sm:$0xff] }
 0x311   : > { %v5912_v27 = vmul.f32 0.5, %v5902_v19  ;;  %v5924_v42 = vmul.f32 0.5, %v5916_v52  ;;  %v5926_v47 = vld [vmem:[#allocation2 + $0x20] sm:$0xff]  ;;  %v5936_v49 = vmul.f32 0.5, %v5928_v55  ;;  %v5938_v38 = vld [vmem:[#allocation2 + $0x30] sm:$0xff]  ;;  %v5940_v50 = vld [vmem:[#allocation2 + $0x38] sm:$0xff] }
 0x312   : > { %v5933_v29 = vmul.f32 0.5, %v5926_v47  ;;  %v5945_v7 = vmul.f32 0.5, %v5938_v38  ;;  %v5948_v1 = vmul.f32 0.5, %v5940_v50  ;;  %v5950_v10 = vld [vmem:[#allocation2 + $0x40] sm:$0xff]  ;;  %v5952_v63 = vld [vmem:[#allocation2 + $0x48] sm:$0xff]  ;;  %v5962_v4 = vld [vmem:[#allocation2 + $0x50] sm:$0xff] }
 0x313   : > { %2623 = vrot.lane.b32.xlu1 %v5845_v37, %s4422_s20  ;;  %2621 = vrot.lane.b32.xlu0 %v5848_v11, %s4422_s20  ;;  %6753 = vst [vmem:[#allocation65_spill] sm:$0xff] %v5950_v10  ;;  %6754 = vst [vmem:[#allocation66_spill] sm:$0xff] %v5952_v63  ;;  %v5957_v18 = vmul.f32 0.5, %v5950_v10  ;;  %v5960_v24 = vmul.f32 0.5, %v5952_v63  ;;  %v5964_v26 = vld [vmem:[#allocation2 + $0x58] sm:$0xff]  ;;  %v5969_v32 = vmul.f32 0.5, %v5962_v4 }
 0x314   : > { %6755 = vst [vmem:[#allocation67_spill] sm:$0xff] %v5962_v4  ;;  %6756 = vst [vmem:[#allocation68_spill] sm:$0xff] %v5964_v26  ;;  %v5972_v59 = vmul.f32 0.5, %v5964_v26  ;;  %v5974_v58 = vld [vmem:[#allocation2 + $0x60] sm:$0xff]  ;;  %v5976_v53 = vld [vmem:[#allocation2 + $0x68] sm:$0xff] }
 0x315   : > { %6757 = vst [vmem:[#allocation69_spill] sm:$0xff] %v5974_v58  ;;  %6758 = vst [vmem:[#allocation70_spill] sm:$0xff] %v5976_v53  ;;  %v5981_v36 = vmul.f32 0.5, %v5974_v58  ;;  %v5984_v5 = vmul.f32 0.5, %v5976_v53  ;;  %v5986_v14 = vld [vmem:[#allocation2 + $0x70] sm:$0xff]  ;;  %v5988_v6 = vld [vmem:[#allocation2 + $0x78] sm:$0xff] }
 0x316   : > { %6759 = vst [vmem:[#allocation71_spill] sm:$0xff] %v5986_v14  ;;  %6760 = vst [vmem:[#allocation72_spill] sm:$0xff] %v5988_v6  ;;  %v5993_v22 = vmul.f32 0.5, %v5986_v14  ;;  %v5996_v2 = vmul.f32 0.5, %v5988_v6 }
 0x317   : > { %2627 = vrot.lane.b32.xlu1 %v5855_v41, %s4422_s20  ;;  %2625 = vrot.lane.b32.xlu0 %v5858_v21, %s4422_s20 }
 0x31b   : > { %2631 = vrot.lane.b32.xlu1 %v5865_v8, %s4422_s20  ;;  %2629 = vrot.lane.b32.xlu0 %v5868_v13, %s4422_s20 }
 0x31f   : > { %2635 = vrot.lane.b32.xlu1 %v5875_v17, %s4422_s20  ;;  %2633 = vrot.lane.b32.xlu0 %v5878_v40, %s4422_s20 }
 0x323   : > { %2639 = vrot.lane.b32.xlu1 %v5885_v30, %s4422_s20  ;;  %2637 = vrot.lane.b32.xlu0 %v5888_v57, %s4422_s20 }
 0x327   : > { %2643 = vrot.lane.b32.xlu1 %v5897_v28, %s4422_s20  ;;  %2641 = vrot.lane.b32.xlu0 %v5900_v23, %s4422_s20 }
 0x32b   : > { %2715 = vperm.xlu1 %4256, %v5909_v51   ;;  %2711 = vperm.xlu0 %4255, %v5912_v27  }
 0x32f   : > { %2719 = vperm.xlu1 %4256, %v5921_v15   ;;  %2723 = vperm.xlu0 %4255, %v5924_v42  }
 0x333   : > { %2727 = vperm.xlu1 %4256, %v5933_v29   ;;  %2731 = vperm.xlu0 %4255, %v5936_v49  }
 0x337   : > { %2735 = vperm.xlu1 %4256, %v5945_v7   ;;  %2739 = vperm.xlu0 %4255, %v5948_v1  }
 0x33b   : > { %2743 = vperm.xlu1 %4256, %v5957_v18   ;;  %2747 = vperm.xlu0 %4255, %v5960_v24  }
 0x33f   : > { %2751 = vperm.xlu1 %4256, %v5969_v32   ;;  %2755 = vperm.xlu0 %4255, %v5972_v59  }
 0x343   : > { %2759 = vperm.xlu1 %4256, %v5981_v36   ;;  %2763 = vperm.xlu0 %4255, %v5984_v5  }
 0x347   : > { %2767 = vperm.xlu1 %4256, %v5993_v22   ;;  %2771 = vperm.xlu0 %4255, %v5996_v2  }
 0x37d   : > { %v2618_v54 = vpop.permute.xlu1 %2617  ;;  %v2614_v33 = vpop.permute.xlu0 %2613 }
 0x37e   : > { %v2662_v48 = vsel %vm2661_vm2, %v2614_v33, 0.0  ;;  %v2668_v46 = vsel %vm2661_vm2, %v2618_v54, 0.0 }
 0x37f   : > { %2663 = vadd.xlane.f32.xlu1 %v2662_v48 }
 0x381   : > { %v2620_v9 = vpop.permute.xlu1 %2619  ;;  %v2616_v31 = vpop.permute.xlu0 %2615 }
 0x382   : > { %v2671_v25 = vsel %vm2661_vm2, %v2620_v9, 0.0  ;;  %v2665_v34 = vsel %vm2661_vm2, %v2616_v31, 0.0 }
 0x383   : > { %2672 = vadd.xlane.f32.xlu1 %v2671_v25  ;;  %2666 = vadd.xlane.f32.xlu0 %v2665_v34 }
 0x385   : > { %v2624_v0 = vpop.permute.xlu1 %2623  ;;  %v2622_v43 = vpop.permute.xlu0 %2621 }
 0x386   : > { %v2677_v62 = vsel %vm2661_vm2, %v2624_v0, 0.0  ;;  %v2674_v60 = vsel %vm2661_vm2, %v2622_v43, 0.0 }
 0x387   : > { %2678 = vadd.xlane.f32.xlu1 %v2677_v62  ;;  %2669 = vadd.xlane.f32.xlu0 %v2668_v46 }
 0x389   : > { %v2628_v44 = vpop.permute.xlu1 %2627  ;;  %v2626_v16 = vpop.permute.xlu0 %2625 }
 0x38a   : > { %v2683_v39 = vsel %vm2661_vm2, %v2628_v44, 0.0  ;;  %v2680_v56 = vsel %vm2661_vm2, %v2626_v16, 0.0 }
 0x38b   : > { %2684 = vadd.xlane.f32.xlu1 %v2683_v39  ;;  %2675 = vadd.xlane.f32.xlu0 %v2674_v60 }
 0x38d   : > { %v2632_v33 = vpop.permute.xlu1 %2631  ;;  %v2630_v48 = vpop.permute.xlu0 %2629 }
 0x38e   : > { %v2689_v9 = vsel %vm2661_vm2, %v2632_v33, 0.0  ;;  %v2686_v54 = vsel %vm2661_vm2, %v2630_v48, 0.0 }
 0x38f   : > { %2690 = vadd.xlane.f32.xlu1 %v2689_v9  ;;  %2681 = vadd.xlane.f32.xlu0 %v2680_v56 }
 0x391   : > { %v2636_v31 = vpop.permute.xlu1 %2635  ;;  %v2634_v25 = vpop.permute.xlu0 %2633 }
 0x392   : > { %v2695_v34 = vsel %vm2661_vm2, %v2636_v31, 0.0  ;;  %v2692_v0 = vsel %vm2661_vm2, %v2634_v25, 0.0 }
 0x393   : > { %2696 = vadd.xlane.f32.xlu1 %v2695_v34  ;;  %2687 = vadd.xlane.f32.xlu0 %v2686_v54 }
 0x395   : > { %v2640_v43 = vpop.permute.xlu1 %2639  ;;  %v2638_v62 = vpop.permute.xlu0 %2637 }
 0x396   : > { %v2701_v46 = vsel %vm2661_vm2, %v2640_v43, 0.0  ;;  %v2698_v60 = vsel %vm2661_vm2, %v2638_v62, 0.0 }
 0x397   : > { %2702 = vadd.xlane.f32.xlu1 %v2701_v46  ;;  %2693 = vadd.xlane.f32.xlu0 %v2692_v0 }
 0x399   : > { %v2644_v44 = vpop.permute.xlu1 %2643  ;;  %v2642_v16 = vpop.permute.xlu0 %2641 }
 0x39a   : > { %v2707_v39 = vsel %vm2661_vm2, %v2644_v44, 0.0  ;;  %v2704_v56 = vsel %vm2661_vm2, %v2642_v16, 0.0 }
 0x39b   : > { %2708 = vadd.xlane.f32.xlu1 %v2707_v39  ;;  %2699 = vadd.xlane.f32.xlu0 %v2698_v60 }
 0x39f   : > { %2705 = vadd.xlane.f32.xlu0 %v2704_v56 }
 0x3a6   : > { %v2716_v33 = vpop.permute.xlu1 %2715  ;;  %v2712_v48 = vpop.permute.xlu0 %2711 }
 0x3a7   : > { %v2775_v9 = vmul.f32 %v2716_v33, %v5838_v12  ;;  %v2774_v62 = vmul.f32 %v2712_v48, %v5828_v3 }
 0x3aa   : > { %v2720_v54 = vpop.permute.xlu1 %2719  ;;  %v2724_v31 = vpop.permute.xlu0 %2723 }
 0x3ab   : > { %v2776_v25 = vmul.f32 %v2720_v54, %v5825_v35  ;;  %v2777_v16 = vmul.f32 %v2724_v31, %v5835_v45 }
 0x3ac   : > { %2808 = vrot.lane.b32.xlu1 %v2775_v9, %s4424_s21 }
 0x3ae   : > { %v2728_v34 = vpop.permute.xlu1 %2727  ;;  %v2732_v0 = vpop.permute.xlu0 %2731 }
 0x3af   : > { %v2778_v43 = vmul.f32 %v2728_v34, %v5848_v11  ;;  %v2779_v48 = vmul.f32 %v2732_v0, %v5845_v37 }
 0x3b0   : > { %2810 = vrot.lane.b32.xlu1 %v2776_v25, %s4424_s21 }
 0x3b2   : > { %v2736_v46 = vpop.permute.xlu1 %2735  ;;  %v2740_v44 = vpop.permute.xlu0 %2739 }
 0x3b3   : > { %v2780_v60 = vmul.f32 %v2736_v46, %v5858_v21  ;;  %v2781_v25 = vmul.f32 %v2740_v44, %v5855_v41 }
 0x3b4   : > { %2814 = vrot.lane.b32.xlu1 %v2778_v43, %s4424_s21 }
 0x3b5   : > { %2806 = vrot.lane.b32.xlu0 %v2774_v62, %s4424_s21 }
 0x3b6   : > { %v2744_v39 = vpop.permute.xlu1 %2743  ;;  %v2748_v33 = vpop.permute.xlu0 %2747 }
 0x3b7   : > { %v2782_v56 = vmul.f32 %v2744_v39, %v5868_v13  ;;  %v2783_v62 = vmul.f32 %v2748_v33, %v5865_v8 }
 0x3b8   : > { %2818 = vrot.lane.b32.xlu1 %v2780_v60, %s4424_s21 }
 0x3b9   : > { %2812 = vrot.lane.b32.xlu0 %v2777_v16, %s4424_s21 }
 0x3ba   : > { %v2752_v9 = vpop.permute.xlu1 %2751  ;;  %v2756_v34 = vpop.permute.xlu0 %2755 }
 0x3bb   : > { %v2784_v54 = vmul.f32 %v2752_v9, %v5878_v40  ;;  %v2785_v16 = vmul.f32 %v2756_v34, %v5875_v17 }
 0x3bc   : > { %2822 = vrot.lane.b32.xlu1 %v2782_v56, %s4424_s21 }
 0x3bd   : > { %2816 = vrot.lane.b32.xlu0 %v2779_v48, %s4424_s21 }
 0x3be   : > { %v2760_v31 = vpop.permute.xlu1 %2759  ;;  %v2764_v0 = vpop.permute.xlu0 %2763 }
 0x3bf   : > { %v2786_v43 = vmul.f32 %v2760_v31, %v5888_v57  ;;  %v2787_v44 = vmul.f32 %v2764_v0, %v5885_v30 }
 0x3c0   : > { %2826 = vrot.lane.b32.xlu1 %v2784_v54, %s4424_s21 }
 0x3c1   : > { %2820 = vrot.lane.b32.xlu0 %v2781_v25, %s4424_s21 }
 0x3c2   : > { %v2768_v46 = vpop.permute.xlu1 %2767  ;;  %v2772_v39 = vpop.permute.xlu0 %2771 }
 0x3c3   : > { %v2788_v60 = vmul.f32 %v2768_v46, %v5900_v23  ;;  %v2789_v56 = vmul.f32 %v2772_v39, %v5897_v28 }
 0x3c4   : > { %2830 = vrot.lane.b32.xlu1 %v2786_v43, %s4424_s21 }
 0x3c5   : > { %2824 = vrot.lane.b32.xlu0 %v2783_v62, %s4424_s21 }
 0x3c8   : > { %2834 = vrot.lane.b32.xlu1 %v2788_v60, %s4424_s21 }
 0x3c9   : > { %2828 = vrot.lane.b32.xlu0 %v2785_v16, %s4424_s21 }
 0x3cc   : > { %2517 = vrot.lane.b32.xlu1 %v5912_v27, %s4425_s26 }
 0x3cd   : > { %2832 = vrot.lane.b32.xlu0 %v2787_v44, %s4424_s21 }
 0x3d0   : > { %2521 = vrot.lane.b32.xlu1 %v5921_v15, %s4425_s26 }
 0x3d1   : > { %2836 = vrot.lane.b32.xlu0 %v2789_v56, %s4424_s21 }
 0x3d4   : > { %2525 = vrot.lane.b32.xlu1 %v5933_v29, %s4425_s26 }
 0x3d5   : > { %2519 = vrot.lane.b32.xlu0 %v5909_v51, %s4425_s26 }
 0x3d8   : > { %2529 = vrot.lane.b32.xlu1 %v5945_v7, %s4425_s26 }
 0x3d9   : > { %2523 = vrot.lane.b32.xlu0 %v5924_v42, %s4425_s26 }
 0x3dc   : > { %2533 = vrot.lane.b32.xlu1 %v5957_v18, %s4425_s26 }
 0x3dd   : > { %2527 = vrot.lane.b32.xlu0 %v5936_v49, %s4425_s26 }
 0x3e1   : > { %2531 = vrot.lane.b32.xlu0 %v5948_v1, %s4425_s26 }
 0x3e5   : > { %2535 = vrot.lane.b32.xlu0 %v5960_v24, %s4425_s26 }
 0x408   : > { %v2664_v27 = vpop.xlane.xlu1 %2663 }
 0x409   : > { %v2870_v0 = vmul.f32 75.0, %v2664_v27 }
 0x40c   : > { %v2673_v51 = vpop.xlane.xlu1 %2672  ;;  %v2667_v15 = vpop.xlane.xlu0 %2666 }
 0x40d   : > { %v2871_v43 = vmul.f32 75.0, %v2667_v15  ;;  %v2873_v4 = vmul.f32 75.0, %v2673_v51 }
 0x410   : > { %v2679_v29 = vpop.xlane.xlu1 %2678  ;;  %v2670_v7 = vpop.xlane.xlu0 %2669 }
 0x411   : > { %v2872_v44 = vmul.f32 75.0, %v2670_v7 }
 0x414   : > { %v2685_v33 = vpop.xlane.xlu1 %2684  ;;  %v2676_v9 = vpop.xlane.xlu0 %2675 }
 0x415   : > { %v2874_v10 = vmul.f32 75.0, %v2676_v9 }
 0x418   : > { %v2691_v42 = vpop.xlane.xlu1 %2690  ;;  %v2682_v48 = vpop.xlane.xlu0 %2681 }
 0x41c   : > { %v6068_v54 = vpop.xlane.xlu1 %2696  ;;  %v2688_v18 = vpop.xlane.xlu0 %2687 }
 0x420   : > { %v6070_v31 = vpop.xlane.xlu1 %2702  ;;  %v2694_v49 = vpop.xlane.xlu0 %2693 }
 0x424   : > { %v6072_v25 = vpop.xlane.xlu1 %2708  ;;  %v6074_v1 = vpop.xlane.xlu0 %2699 }
 0x428   : > { %v2809_v24 = vpop.permute.xlu1 %2808  ;;  %v6076_v34 = vpop.xlane.xlu0 %2705 }
 0x429   : > { %v2855_v62 = vadd.f32 %v2809_v24, %v5838_v12 }
 0x42b   : > { %v2887_v46 = vadd.f32 %v2871_v43, %v2855_v62 }
 0x42c   : > { %v2811_v60 = vpop.permute.xlu1 %2810  ;;  %v2807_v16 = vpop.permute.xlu0 %2806 }
 0x42d   : > { %v2903_v39 = vand.u32 2147483647, %v2887_v46  ;;  %v2856_v56 = vadd.f32 %v2811_v60, %v5825_v35  ;;  %v2854_v14 = vadd.f32 %v2807_v16, %v5828_v3  ;;  %v2875_v60 = vmul.f32 75.0, %v2679_v29 }
 0x42f   : > { %v2888_v6 = vadd.f32 %v2872_v44, %v2856_v56  ;;  %v2886_v58 = vadd.f32 %v2870_v0, %v2854_v14  ;;  %v2919_v53 = vadd.f32 1.1920929e-07, %v2903_v39  ;;  %v2876_v14 = vmul.f32 75.0, %v2682_v48 }
 0x430   : > { %v2815_v26 = vpop.permute.xlu1 %2814  ;;  %v2813_v63 = vpop.permute.xlu0 %2812  ;;  %v2878_v56 = vmul.f32 75.0, %v2688_v18 }
 0x431   : > { %v2902_v15 = vand.u32 2147483647, %v2886_v58  ;;  %v2858_v24 = vadd.f32 %v2815_v26, %v5848_v11  ;;  %v2857_v27 = vadd.f32 %v2813_v63, %v5835_v45  ;;  %2952 = vrot.lane.b32.xlu0 %v2919_v53, %s4424_s21  ;;  %v2904_v7 = vand.u32 2147483647, %v2888_v6 }
 0x432   : > { %v2877_v6 = vmul.f32 75.0, %v2685_v33 }
 0x433   : > { %v2890_v43 = vadd.f32 %v2874_v10, %v2858_v24  ;;  %v2889_v62 = vadd.f32 %v2873_v4, %v2857_v27  ;;  %v2918_v46 = vadd.f32 1.1920929e-07, %v2902_v15  ;;  %v2920_v26 = vadd.f32 1.1920929e-07, %v2904_v7 }
 0x434   : > { %v2819_v16 = vpop.permute.xlu1 %2818  ;;  %v2817_v44 = vpop.permute.xlu0 %2816 }
 0x435   : > { %v2905_v0 = vand.u32 2147483647, %v2889_v62  ;;  %v2860_v51 = vadd.f32 %v2819_v16, %v5858_v21  ;;  %v2859_v9 = vadd.f32 %v2817_v44, %v5845_v37  ;;  %2950 = vrot.lane.b32.xlu1 %v2918_v46, %s4424_s21  ;;  %v2906_v58 = vand.u32 2147483647, %v2890_v43 }
 0x436   : > { %v2879_v46 = vmul.f32 75.0, %v2691_v42  ;;  %v2880_v16 = vmul.f32 75.0, %v2694_v49  ;;  %v2882_v49 = vmul.f32 75.0, %v6074_v1  ;;  %v2884_v1 = vmul.f32 75.0, %v6076_v34 }
 0x437   : > { %v2892_v63 = vadd.f32 %v2876_v14, %v2860_v51  ;;  %v2891_v39 = vadd.f32 %v2875_v60, %v2859_v9  ;;  %v2921_v53 = vadd.f32 1.1920929e-07, %v2905_v0  ;;  %v2922_v43 = vadd.f32 1.1920929e-07, %v2906_v58 }
 0x438   : > { %v2823_v10 = vpop.permute.xlu1 %2822  ;;  %v2821_v4 = vpop.permute.xlu0 %2820  ;;  %v2881_v58 = vmul.f32 75.0, %v6068_v54  ;;  %v2883_v54 = vmul.f32 75.0, %v6070_v31  ;;  %v2885_v31 = vmul.f32 75.0, %v6072_v25 }
 0x439   : > { %v2907_v29 = vand.u32 2147483647, %v2891_v39  ;;  %v2862_v15 = vadd.f32 %v2823_v10, %v5868_v13  ;;  %v2861_v48 = vadd.f32 %v2821_v4, %v5855_v41  ;;  %2954 = vrot.lane.b32.xlu1 %v2920_v26, %s4424_s21  ;;  %2956 = vrot.lane.b32.xlu0 %v2921_v53, %s4424_s21  ;;  %v2908_v24 = vand.u32 2147483647, %v2892_v63 }
 0x43b   : > { %v2894_v27 = vadd.f32 %v2878_v56, %v2862_v15  ;;  %v2893_v7 = vadd.f32 %v2877_v6, %v2861_v48  ;;  %v2923_v62 = vadd.f32 1.1920929e-07, %v2907_v29  ;;  %v2924_v0 = vadd.f32 1.1920929e-07, %v2908_v24 }
 0x43c   : > { %v2827_v60 = vpop.permute.xlu1 %2826  ;;  %v2825_v33 = vpop.permute.xlu0 %2824 }
 0x43d   : > { %v2909_v44 = vand.u32 2147483647, %v2893_v7  ;;  %v2864_v18 = vadd.f32 %v2827_v60, %v5878_v40  ;;  %v2863_v14 = vadd.f32 %v2825_v33, %v5865_v8  ;;  %2958 = vrot.lane.b32.xlu1 %v2922_v43, %s4424_s21  ;;  %2960 = vrot.lane.b32.xlu0 %v2923_v62, %s4424_s21  ;;  %v2910_v51 = vand.u32 2147483647, %v2894_v27 }
 0x43f   : > { %v2896_v9 = vadd.f32 %v2880_v16, %v2864_v18  ;;  %v2895_v26 = vadd.f32 %v2879_v46, %v2863_v14  ;;  %v2925_v63 = vadd.f32 1.1920929e-07, %v2909_v44  ;;  %v2926_v15 = vadd.f32 1.1920929e-07, %v2910_v51 }
 0x440   : > { %v2831_v42 = vpop.permute.xlu1 %2830  ;;  %v2829_v39 = vpop.permute.xlu0 %2828 }
 0x441   : > { %v2911_v53 = vand.u32 2147483647, %v2895_v26  ;;  %v2866_v6 = vadd.f32 %v2831_v42, %v5888_v57  ;;  %v2865_v10 = vadd.f32 %v2829_v39, %v5875_v17  ;;  %2962 = vrot.lane.b32.xlu1 %v2924_v0, %s4424_s21  ;;  %2964 = vrot.lane.b32.xlu0 %v2925_v63, %s4424_s21  ;;  %v2912_v4 = vand.u32 2147483647, %v2896_v9 }
 0x443   : > { %v2898_v56 = vadd.f32 %v2882_v49, %v2866_v6  ;;  %v2897_v29 = vadd.f32 %v2881_v58, %v2865_v10  ;;  %v2927_v48 = vadd.f32 1.1920929e-07, %v2911_v53  ;;  %v2928_v46 = vadd.f32 1.1920929e-07, %v2912_v4 }
 0x444   : > { %v2835_v24 = vpop.permute.xlu1 %2834  ;;  %v2833_v27 = vpop.permute.xlu0 %2832 }
 0x445   : > { %v2913_v7 = vand.u32 2147483647, %v2897_v29  ;;  %v2868_v43 = vadd.f32 %v2835_v24, %v5900_v23  ;;  %v2867_v62 = vadd.f32 %v2833_v27, %v5885_v30  ;;  %2966 = vrot.lane.b32.xlu1 %v2926_v15, %s4424_s21  ;;  %2968 = vrot.lane.b32.xlu0 %v2927_v48, %s4424_s21  ;;  %v2914_v60 = vand.u32 2147483647, %v2898_v56 }
 0x447   : > { %v2900_v33 = vadd.f32 %v2884_v1, %v2868_v43  ;;  %v2899_v16 = vadd.f32 %v2883_v54, %v2867_v62  ;;  %v2929_v44 = vadd.f32 1.1920929e-07, %v2913_v7  ;;  %v2930_v9 = vadd.f32 1.1920929e-07, %v2914_v60 }
 0x448   : > { %v2837_v18 = vpop.permute.xlu0 %2836  ;;  %v2518_v39 = vpop.permute.xlu1 %2517 }
 0x449   : > { %v2915_v14 = vand.u32 2147483647, %v2899_v16  ;;  %v2869_v34 = vadd.f32 %v2837_v18, %v5897_v28  ;;  %2970 = vrot.lane.b32.xlu1 %v2928_v46, %s4424_s21  ;;  %2972 = vrot.lane.b32.xlu0 %v2929_v44, %s4424_s21  ;;  %v2916_v0 = vand.u32 2147483647, %v2900_v33  ;;  %v2565_v24 = vadd.f32 %v2518_v39, %v5828_v3 }
 0x44b   : > { %v2901_v51 = vadd.f32 %v2885_v31, %v2869_v34  ;;  %v2931_v26 = vadd.f32 1.1920929e-07, %v2915_v14  ;;  %v2932_v58 = vadd.f32 1.1920929e-07, %v2916_v0  ;;  %v2581_v62 = vadd.f32 75.0, %v2565_v24 }
 0x44c   : > { %v2520_v25 = vpop.permute.xlu0 %2519  ;;  %v2522_v53 = vpop.permute.xlu1 %2521 }
 0x44d   : > { %v2917_v63 = vand.u32 2147483647, %v2901_v51  ;;  %2974 = vrot.lane.b32.xlu1 %v2930_v9, %s4424_s21  ;;  %2976 = vrot.lane.b32.xlu0 %v2931_v26, %s4424_s21  ;;  %v2566_v15 = vadd.f32 %v2520_v25, %v5838_v12  ;;  %v2567_v46 = vadd.f32 %v2522_v53, %v5825_v35 }
 0x44f   : > { %v2933_v42 = vadd.f32 1.1920929e-07, %v2917_v63  ;;  %v2582_v54 = vadd.f32 75.0, %v2566_v15  ;;  %v2583_v31 = vadd.f32 75.0, %v2567_v46 }
 0x450   : > { %v2524_v49 = vpop.permute.xlu0 %2523  ;;  %v2526_v6 = vpop.permute.xlu1 %2525 }
 0x451   : > { %2978 = vrot.lane.b32.xlu1 %v2932_v58, %s4424_s21  ;;  %2980 = vrot.lane.b32.xlu0 %v2933_v42, %s4424_s21  ;;  %v2568_v33 = vadd.f32 %v2524_v49, %v5835_v45  ;;  %v2569_v14 = vadd.f32 %v2526_v6, %v5848_v11 }
 0x453   : > { %v2584_v0 = vadd.f32 75.0, %v2568_v33  ;;  %v2585_v25 = vadd.f32 75.0, %v2569_v14 }
 0x455   : > { %2537 = vrot.lane.b32.xlu1 %v5969_v32, %s4425_s26  ;;  %2539 = vrot.lane.b32.xlu0 %v5972_v59, %s4425_s26  ;;  %v2528_v32 = vpop.permute.xlu0 %2527  ;;  %v2530_v59 = vpop.permute.xlu1 %2529 }
 0x456   : > { %v2570_v51 = vadd.f32 %v2528_v32, %v5845_v37  ;;  %v2571_v39 = vadd.f32 %v2530_v59, %v5858_v21 }
 0x458   : > { %v2586_v53 = vadd.f32 75.0, %v2570_v51  ;;  %v2587_v15 = vadd.f32 75.0, %v2571_v39 }
 0x459   : > { %2541 = vrot.lane.b32.xlu1 %v5981_v36, %s4425_s26  ;;  %2543 = vrot.lane.b32.xlu0 %v5984_v5, %s4425_s26  ;;  %v2532_v10 = vpop.permute.xlu0 %2531  ;;  %v2534_v36 = vpop.permute.xlu1 %2533 }
 0x45a   : > { %v2572_v6 = vadd.f32 %v2532_v10, %v5855_v41 }
 0x45d   : > { %2545 = vrot.lane.b32.xlu1 %v5993_v22, %s4425_s26  ;;  %2547 = vrot.lane.b32.xlu0 %v5996_v2, %s4425_s26  ;;  %v6127_v4 = vpop.permute.xlu0 %2535 }
 0x4a3   : > { %v2953_v56 = vpop.permute.xlu0 %2952 }
 0x4a4   : > { %4257 = vrcp.f32 %v2953_v56 }
 0x4a7   : > { %v2951_v5 = vpop.permute.xlu1 %2950 }
 0x4a8   : > { %4259 = vrcp.f32 %v2951_v5 }
 0x4ab   : > { %v2955_v29 = vpop.permute.xlu1 %2954  ;;  %v2957_v22 = vpop.permute.xlu0 %2956 }
 0x4ac   : > { %4261 = vrcp.f32 %v2955_v29 }
 0x4ad   : > { %4263 = vrcp.f32 %v2957_v22 }
 0x4af   : > { %v2959_v2 = vpop.permute.xlu1 %2958  ;;  %v2961_v48 = vpop.permute.xlu0 %2960 }
 0x4b0   : > { %4265 = vrcp.f32 %v2959_v2  ;;  %v2573_v2 = vadd.f32 %v2534_v36, %v5868_v13 }
 0x4b1   : > { %v4258_v27 = vpop.eup %4257  ;;  %4267 = vrcp.f32 %v2961_v48  ;;  %v2588_v48 = vadd.f32 75.0, %v2572_v6 }
 0x4b2   : > { %v3001_v1 = vmul.f32 %v4258_v27, %v2582_v54  ;;  %v2574_v54 = vadd.f32 %v6127_v4, %v5865_v8 }
 0x4b3   : > { %v2963_v7 = vpop.permute.xlu1 %2962  ;;  %v2965_v43 = vpop.permute.xlu0 %2964 }
 0x4b4   : > { %4269 = vrcp.f32 %v2963_v7  ;;  %3048 = vrot.lane.b32.xlu0 %v3001_v1, %s4426_s8 }
 0x4b5   : > { %v4260_v60 = vpop.eup %4259  ;;  %4271 = vrcp.f32 %v2965_v43  ;;  %v2589_v43 = vadd.f32 75.0, %v2573_v2 }
 0x4b6   : > { %v2999_v16 = vmul.f32 %v4260_v60, %v2581_v62  ;;  %v2590_v62 = vadd.f32 75.0, %v2574_v54 }
 0x4b7   : > { %v2967_v44 = vpop.permute.xlu1 %2966  ;;  %v2969_v18 = vpop.permute.xlu0 %2968 }
 0x4b8   : > { %4273 = vrcp.f32 %v2967_v44  ;;  %3046 = vrot.lane.b32.xlu1 %v2999_v16, %s4426_s8 }
 0x4b9   : > { %v4262_v34 = vpop.eup %4261  ;;  %4275 = vrcp.f32 %v2969_v18 }
 0x4ba   : > { %v4264_v9 = vpop.eup %4263  ;;  %v3003_v26 = vmul.f32 %v4262_v34, %v2583_v31 }
 0x4bb   : > { %v2971_v63 = vpop.permute.xlu1 %2970  ;;  %v2973_v58 = vpop.permute.xlu0 %2972  ;;  %v3005_v42 = vmul.f32 %v4264_v9, %v2584_v0 }
 0x4bc   : > { %3050 = vrot.lane.b32.xlu1 %v3003_v26, %s4426_s8  ;;  %4277 = vrcp.f32 %v2971_v63 }
 0x4bd   : > { %v4266_v49 = vpop.eup %4265  ;;  %3052 = vrot.lane.b32.xlu0 %v3005_v42, %s4426_s8  ;;  %4279 = vrcp.f32 %v2973_v58 }
 0x4be   : > { %v4268_v56 = vpop.eup %4267  ;;  %v3007_v32 = vmul.f32 %v4266_v49, %v2585_v25 }
 0x4bf   : > { %v2975_v5 = vpop.permute.xlu1 %2974  ;;  %v2977_v29 = vpop.permute.xlu0 %2976  ;;  %v3009_v22 = vmul.f32 %v4268_v56, %v2586_v53 }
 0x4c0   : > { %3054 = vrot.lane.b32.xlu1 %v3007_v32, %s4426_s8  ;;  %4281 = vrcp.f32 %v2975_v5 }
 0x4c1   : > { %v4270_v59 = vpop.eup %4269  ;;  %3056 = vrot.lane.b32.xlu0 %v3009_v22, %s4426_s8  ;;  %4283 = vrcp.f32 %v2977_v29 }
 0x4c2   : > { %v4272_v10 = vpop.eup %4271  ;;  %v3011_v24 = vmul.f32 %v4270_v59, %v2587_v15 }
 0x4c3   : > { %v2979_v27 = vpop.permute.xlu1 %2978  ;;  %v2981_v1 = vpop.permute.xlu0 %2980  ;;  %v3013_v7 = vmul.f32 %v4272_v10, %v2588_v48 }
 0x4c4   : > { %3058 = vrot.lane.b32.xlu1 %v3011_v24, %s4426_s8  ;;  %4285 = vrcp.f32 %v2979_v27 }
 0x4c5   : > { %v4274_v36 = vpop.eup %4273  ;;  %3060 = vrot.lane.b32.xlu0 %v3013_v7, %s4426_s8  ;;  %4287 = vrcp.f32 %v2981_v1 }
 0x4c6   : > { %v4276_v46 = vpop.eup %4275  ;;  %v3015_v4 = vmul.f32 %v4274_v36, %v2589_v43 }
 0x4c7   : > { %v2538_v60 = vpop.permute.xlu1 %2537  ;;  %v2540_v33 = vpop.permute.xlu0 %2539  ;;  %v3017_v16 = vmul.f32 %v4276_v46, %v2590_v62 }
 0x4c8   : > { %v2575_v44 = vadd.f32 %v2538_v60, %v5878_v40  ;;  %v2576_v18 = vadd.f32 %v2540_v33, %v5875_v17  ;;  %3062 = vrot.lane.b32.xlu1 %v3015_v4, %s4426_s8 }
 0x4c9   : > { %3064 = vrot.lane.b32.xlu0 %v3017_v16, %s4426_s8  ;;  %v4278_v31 = vpop.eup %4277 }
 0x4ca   : > { %v2591_v14 = vadd.f32 75.0, %v2575_v44  ;;  %v2592_v34 = vadd.f32 75.0, %v2576_v18  ;;  %v4280_v0 = vpop.eup %4279 }
 0x4cb   : > { %v2542_v51 = vpop.permute.xlu1 %2541  ;;  %v2544_v9 = vpop.permute.xlu0 %2543 }
 0x4cc   : > { %v3019_v26 = vmul.f32 %v4278_v31, %v2591_v14  ;;  %v3021_v63 = vmul.f32 %v4280_v0, %v2592_v34  ;;  %v2577_v58 = vadd.f32 %v2542_v51, %v5888_v57  ;;  %v2578_v42 = vadd.f32 %v2544_v9, %v5885_v30 }
 0x4cd   : > { %v4282_v25 = vpop.eup %4281 }
 0x4ce   : > { %v2593_v39 = vadd.f32 75.0, %v2577_v58  ;;  %v2594_v49 = vadd.f32 75.0, %v2578_v42  ;;  %3066 = vrot.lane.b32.xlu1 %v3019_v26, %s4426_s8  ;;  %3068 = vrot.lane.b32.xlu0 %v3021_v63, %s4426_s8  ;;  %v4284_v53 = vpop.eup %4283 }
 0x4cf   : > { %v2546_v6 = vpop.permute.xlu1 %2545  ;;  %v2548_v56 = vpop.permute.xlu0 %2547 }
 0x4d0   : > { %v3023_v32 = vmul.f32 %v4282_v25, %v2593_v39  ;;  %v3025_v5 = vmul.f32 %v4284_v53, %v2594_v49  ;;  %v2579_v29 = vadd.f32 %v2546_v6, %v5900_v23  ;;  %v2580_v22 = vadd.f32 %v2548_v56, %v5897_v28 }
 0x4d1   : > { %v4286_v15 = vpop.eup %4285 }
 0x4d2   : > { %v2595_v2 = vadd.f32 75.0, %v2579_v29  ;;  %v2596_v59 = vadd.f32 75.0, %v2580_v22  ;;  %3070 = vrot.lane.b32.xlu1 %v3023_v32, %s4426_s8  ;;  %3072 = vrot.lane.b32.xlu0 %v3025_v5, %s4426_s8  ;;  %v4288_v48 = vpop.eup %4287 }
 0x4d4   : > { %v3027_v54 = vmul.f32 %v4286_v15, %v2595_v2  ;;  %v3029_v10 = vmul.f32 %v4288_v48, %v2596_v59 }
 0x4d6   : > { %3074 = vrot.lane.b32.xlu1 %v3027_v54, %s4426_s8  ;;  %3076 = vrot.lane.b32.xlu0 %v3029_v10, %s4426_s8 }
 0x526   : > { %v3049_v24 = vpop.permute.xlu0 %3048 }
 0x527   : > { %v6163_v27 = vmul.f32 %v3049_v24, %v5838_v12 }
 0x529   : > { %3128 = vrot.lane.b32.xlu0 %v6163_v27, %s4422_s20 }
 0x52a   : > { %v3047_v1 = vpop.permute.xlu1 %3046 }
 0x52b   : > { %v6168_v7 = vmul.f32 %v3047_v1, %v5828_v3 }
 0x52d   : > { %3126 = vrot.lane.b32.xlu1 %v6168_v7, %s4422_s20 }
 0x52e   : > { %v3051_v43 = vpop.permute.xlu1 %3050 }
 0x52f   : > { %v6173_v36 = vmul.f32 %v3051_v43, %v5825_v35  ;;  %v3053_v62 = vpop.permute.xlu0 %3052 }
 0x530   : > { %v6176_v46 = vmul.f32 %v3053_v62, %v5835_v45 }
 0x531   : > { %3130 = vrot.lane.b32.xlu1 %v6173_v36, %s4422_s20 }
 0x532   : > { %3132 = vrot.lane.b32.xlu0 %v6176_v46, %s4422_s20  ;;  %v3055_v12 = vpop.permute.xlu1 %3054 }
 0x533   : > { %v6183_v3 = vmul.f32 %v3055_v12, %v5848_v11  ;;  %v3057_v4 = vpop.permute.xlu0 %3056 }
 0x534   : > { %v6186_v60 = vmul.f32 %v3057_v4, %v5845_v37 }
 0x535   : > { %3134 = vrot.lane.b32.xlu1 %v6183_v3, %s4422_s20 }
 0x536   : > { %3136 = vrot.lane.b32.xlu0 %v6186_v60, %s4422_s20  ;;  %v3059_v35 = vpop.permute.xlu1 %3058 }
 0x537   : > { %v6193_v45 = vmul.f32 %v3059_v35, %v5858_v21  ;;  %v3061_v33 = vpop.permute.xlu0 %3060 }
 0x538   : > { %v6196_v16 = vmul.f32 %v3061_v33, %v5855_v41 }
 0x539   : > { %3138 = vrot.lane.b32.xlu1 %v6193_v45, %s4422_s20 }
 0x53a   : > { %3140 = vrot.lane.b32.xlu0 %v6196_v16, %s4422_s20  ;;  %v3063_v37 = vpop.permute.xlu1 %3062 }
 0x53b   : > { %v6203_v11 = vmul.f32 %v3063_v37, %v5868_v13  ;;  %v3065_v44 = vpop.permute.xlu0 %3064 }
 0x53c   : > { %v6206_v18 = vmul.f32 %v3065_v44, %v5865_v8 }
 0x53d   : > { %3142 = vrot.lane.b32.xlu1 %v6203_v11, %s4422_s20 }
 0x53e   : > { %3144 = vrot.lane.b32.xlu0 %v6206_v18, %s4422_s20 }
 0x540   : > { %v3067_v41 = vpop.permute.xlu1 %3066  ;;  %v3069_v21 = vpop.permute.xlu0 %3068 }
 0x541   : > { %v6213_v31 = vmul.f32 %v3067_v41, %v5878_v40  ;;  %v6216_v14 = vmul.f32 %v3069_v21, %v5875_v17 }
 0x543   : > { %3146 = vrot.lane.b32.xlu1 %v6213_v31, %s4422_s20  ;;  %3148 = vrot.lane.b32.xlu0 %v6216_v14, %s4422_s20 }
 0x544   : > { %v3071_v8 = vpop.permute.xlu1 %3070  ;;  %v3073_v13 = vpop.permute.xlu0 %3072 }
 0x545   : > { %v6223_v34 = vmul.f32 %v3071_v8, %v5888_v57  ;;  %v6226_v0 = vmul.f32 %v3073_v13, %v5885_v30 }
 0x547   : > { %3150 = vrot.lane.b32.xlu1 %v6223_v34, %s4422_s20  ;;  %3152 = vrot.lane.b32.xlu0 %v6226_v0, %s4422_s20 }
 0x548   : > { %v3075_v17 = vpop.permute.xlu1 %3074  ;;  %v3077_v40 = vpop.permute.xlu0 %3076 }
 0x549   : > { %v6233_v51 = vmul.f32 %v3075_v17, %v5900_v23  ;;  %v6236_v9 = vmul.f32 %v3077_v40, %v5897_v28 }
 0x54b   : > { %3154 = vrot.lane.b32.xlu1 %v6233_v51, %s4422_s20  ;;  %3156 = vrot.lane.b32.xlu0 %v6236_v9, %s4422_s20 }
 0x59b   : > { %v3129_v30 = vpop.permute.xlu0 %3128 }
 0x59c   : > { %v3177_v57 = vsel %vm2661_vm2, %v3129_v30, 0.0 }
 0x59d   : > { %3178 = vadd.xlane.f32.xlu0 %v3177_v57 }
 0x59f   : > { %v3127_v26 = vpop.permute.xlu1 %3126 }
 0x5a0   : > { %v3174_v63 = vsel %vm2661_vm2, %v3127_v26, 0.0 }
 0x5a1   : > { %3175 = vadd.xlane.f32.xlu1 %v3174_v63 }
 0x5a3   : > { %v3131_v58 = vpop.permute.xlu1 %3130 }
 0x5a4   : > { %v3180_v23 = vsel %vm2661_vm2, %v3131_v58, 0.0  ;;  %v3133_v42 = vpop.permute.xlu0 %3132 }
 0x5a5   : > { %v3183_v28 = vsel %vm2661_vm2, %v3133_v42, 0.0  ;;  %3181 = vadd.xlane.f32.xlu0 %v3180_v23 }
 0x5a6   : > { %3184 = vadd.xlane.f32.xlu1 %v3183_v28 }
 0x5a7   : > { %v3135_v25 = vpop.permute.xlu1 %3134 }
 0x5a8   : > { %v3186_v39 = vsel %vm2661_vm2, %v3135_v25, 0.0  ;;  %v3137_v49 = vpop.permute.xlu0 %3136 }
 0x5a9   : > { %v3189_v53 = vsel %vm2661_vm2, %v3137_v49, 0.0  ;;  %3187 = vadd.xlane.f32.xlu0 %v3186_v39 }
 0x5aa   : > { %3190 = vadd.xlane.f32.xlu1 %v3189_v53 }
 0x5ab   : > { %v3139_v6 = vpop.permute.xlu1 %3138 }
 0x5ac   : > { %v3192_v56 = vsel %vm2661_vm2, %v3139_v6, 0.0  ;;  %v3141_v32 = vpop.permute.xlu0 %3140 }
 0x5ad   : > { %v3195_v5 = vsel %vm2661_vm2, %v3141_v32, 0.0  ;;  %3193 = vadd.xlane.f32.xlu0 %v3192_v56 }
 0x5ae   : > { %3196 = vadd.xlane.f32.xlu1 %v3195_v5 }
 0x5af   : > { %v3143_v29 = vpop.permute.xlu1 %3142 }
 0x5b0   : > { %v3198_v22 = vsel %vm2661_vm2, %v3143_v29, 0.0  ;;  %v3145_v15 = vpop.permute.xlu0 %3144 }
 0x5b1   : > { %v3201_v2 = vsel %vm2661_vm2, %v3145_v15, 0.0  ;;  %3199 = vadd.xlane.f32.xlu0 %v3198_v22 }
 0x5b2   : > { %3202 = vadd.xlane.f32.xlu1 %v3201_v2 }
 0x5b5   : > { %v3147_v59 = vpop.permute.xlu1 %3146  ;;  %v3149_v48 = vpop.permute.xlu0 %3148 }
 0x5b6   : > { %v3204_v54 = vsel %vm2661_vm2, %v3147_v59, 0.0  ;;  %v3207_v10 = vsel %vm2661_vm2, %v3149_v48, 0.0 }
 0x5b7   : > { %3205 = vadd.xlane.f32.xlu0 %v3204_v54  ;;  %3208 = vadd.xlane.f32.xlu1 %v3207_v10 }
 0x5b9   : > { %v3151_v24 = vpop.permute.xlu1 %3150  ;;  %v3153_v1 = vpop.permute.xlu0 %3152 }
 0x5ba   : > { %v3210_v43 = vsel %vm2661_vm2, %v3151_v24, 0.0  ;;  %v3213_v62 = vsel %vm2661_vm2, %v3153_v1, 0.0 }
 0x5bb   : > { %3211 = vadd.xlane.f32.xlu0 %v3210_v43  ;;  %3214 = vadd.xlane.f32.xlu1 %v3213_v62 }
 0x5bd   : > { %v3155_v12 = vpop.permute.xlu1 %3154  ;;  %v3157_v4 = vpop.permute.xlu0 %3156 }
 0x5be   : > { %v3216_v35 = vsel %vm2661_vm2, %v3155_v12, 0.0  ;;  %v3219_v33 = vsel %vm2661_vm2, %v3157_v4, 0.0 }
 0x5bf   : > { %3217 = vadd.xlane.f32.xlu0 %v3216_v35  ;;  %3220 = vadd.xlane.f32.xlu1 %v3219_v33 }
 0x626   : > { %v3179_v37 = vpop.xlane.xlu0 %3178 }
 0x627   : > { %v3223_v44 = vadd.f32 1.1920929e-07, %v3179_v37 }
 0x629   : > { %4289 = vrcp.f32 %v3223_v44 }
 0x62a   : > { %v3176_v41 = vpop.xlane.xlu1 %3175 }
 0x62b   : > { %v3222_v21 = vadd.f32 1.1920929e-07, %v3176_v41 }
 0x62d   : > { %4291 = vrcp.f32 %v3222_v21 }
 0x62e   : > { %v3182_v8 = vpop.xlane.xlu0 %3181 }
 0x62f   : > { %v3185_v13 = vpop.xlane.xlu1 %3184  ;;  %v3224_v17 = vadd.f32 1.1920929e-07, %v3182_v8 }
 0x630   : > { %v3225_v40 = vadd.f32 1.1920929e-07, %v3185_v13 }
 0x631   : > { %4293 = vrcp.f32 %v3224_v17 }
 0x632   : > { %4295 = vrcp.f32 %v3225_v40  ;;  %v3188_v30 = vpop.xlane.xlu0 %3187 }
 0x633   : > { %v3191_v57 = vpop.xlane.xlu1 %3190  ;;  %v3226_v26 = vadd.f32 1.1920929e-07, %v3188_v30 }
 0x634   : > { %v3227_v63 = vadd.f32 1.1920929e-07, %v3191_v57 }
 0x635   : > { %4297 = vrcp.f32 %v3226_v26 }
 0x636   : > { %v4290_v58 = vpop.eup %4289  ;;  %4299 = vrcp.f32 %v3227_v63  ;;  %v3194_v23 = vpop.xlane.xlu0 %3193 }
 0x637   : > { %v3197_v42 = vpop.xlane.xlu1 %3196  ;;  %v3228_v28 = vadd.f32 1.1920929e-07, %v3194_v23  ;;  %v3241_v25 = vmul.f32 %v4290_v58, %v6163_v27  ;;  %v6761_v58 = vld [vmem:[#allocation65_spill] sm:$0xff]  ;;  %v6762_v23 = vld [vmem:[#allocation66_spill] sm:$0xff] }
 0x638   : > { %v3229_v39 = vadd.f32 1.1920929e-07, %v3197_v42  ;;  %v6763_v42 = vld [vmem:[#allocation68_spill] sm:$0xff] }
 0x639   : > { %4301 = vrcp.f32 %v3228_v28  ;;  %3288 = vrot.lane.b32.xlu1 %v3241_v25, %s4422_s20  ;;  %v6764_v28 = vld [vmem:[#allocation67_spill] sm:$0xff] }
 0x63a   : > { %v4292_v49 = vpop.eup %4291  ;;  %4303 = vrcp.f32 %v3229_v39  ;;  %v3200_v53 = vpop.xlane.xlu0 %3199 }
 0x63b   : > { %v3203_v6 = vpop.xlane.xlu1 %3202  ;;  %v3230_v56 = vadd.f32 1.1920929e-07, %v3200_v53  ;;  %v3239_v32 = vmul.f32 %v4292_v49, %v6168_v7  ;;  %v6765_v49 = vld [vmem:[#allocation70_spill] sm:$0xff]  ;;  %v6766_v53 = vld [vmem:[#allocation69_spill] sm:$0xff] }
 0x63c   : > { %v3231_v5 = vadd.f32 1.1920929e-07, %v3203_v6 }
 0x63d   : > { %4305 = vrcp.f32 %v3230_v56  ;;  %3286 = vrot.lane.b32.xlu0 %v3239_v32, %s4422_s20  ;;  %v6767_v32 = vld [vmem:[#allocation72_spill] sm:$0xff] }
 0x63e   : > { %v4294_v29 = vpop.eup %4293  ;;  %4307 = vrcp.f32 %v3231_v5  ;;  %v6768_v5 = vld [vmem:[#allocation71_spill] sm:$0xff] }
 0x63f   : > { %v4296_v22 = vpop.eup %4295  ;;  %v3243_v27 = vmul.f32 %v4294_v29, %v6173_v36 }
 0x640   : > { %v3209_v15 = vpop.xlane.xlu1 %3208  ;;  %v3206_v2 = vpop.xlane.xlu0 %3205  ;;  %v3245_v59 = vmul.f32 %v4296_v22, %v6176_v46 }
 0x641   : > { %v3233_v48 = vadd.f32 1.1920929e-07, %v3209_v15  ;;  %v3232_v54 = vadd.f32 1.1920929e-07, %v3206_v2  ;;  %3290 = vrot.lane.b32.xlu1 %v3243_v27, %s4422_s20 }
 0x642   : > { %v4298_v10 = vpop.eup %4297  ;;  %3292 = vrot.lane.b32.xlu0 %v3245_v59, %s4422_s20 }
 0x643   : > { %v4300_v7 = vpop.eup %4299  ;;  %4309 = vrcp.f32 %v3233_v48  ;;  %v3247_v24 = vmul.f32 %v4298_v10, %v6183_v3 }
 0x644   : > { %4311 = vrcp.f32 %v3232_v54  ;;  %v3215_v1 = vpop.xlane.xlu1 %3214  ;;  %v3212_v43 = vpop.xlane.xlu0 %3211  ;;  %v3249_v36 = vmul.f32 %v4300_v7, %v6186_v60 }
 0x645   : > { %v3235_v62 = vadd.f32 1.1920929e-07, %v3215_v1  ;;  %v3234_v12 = vadd.f32 1.1920929e-07, %v3212_v43  ;;  %3294 = vrot.lane.b32.xlu1 %v3247_v24, %s4422_s20 }
 0x646   : > { %v4302_v46 = vpop.eup %4301  ;;  %3296 = vrot.lane.b32.xlu0 %v3249_v36, %s4422_s20 }
 0x647   : > { %v4304_v4 = vpop.eup %4303  ;;  %4313 = vrcp.f32 %v3235_v62  ;;  %v3251_v35 = vmul.f32 %v4302_v46, %v6193_v45 }
 0x648   : > { %4315 = vrcp.f32 %v3234_v12  ;;  %v3221_v33 = vpop.xlane.xlu1 %3220  ;;  %v3218_v37 = vpop.xlane.xlu0 %3217  ;;  %v3253_v3 = vmul.f32 %v4304_v4, %v6196_v16 }
 0x649   : > { %v3237_v44 = vadd.f32 1.1920929e-07, %v3221_v33  ;;  %v3236_v41 = vadd.f32 1.1920929e-07, %v3218_v37  ;;  %3298 = vrot.lane.b32.xlu1 %v3251_v35, %s4422_s20 }
 0x64a   : > { %v4306_v60 = vpop.eup %4305  ;;  %3300 = vrot.lane.b32.xlu0 %v3253_v3, %s4422_s20 }
 0x64b   : > { %v4308_v21 = vpop.eup %4307  ;;  %4317 = vrcp.f32 %v3237_v44  ;;  %v3255_v8 = vmul.f32 %v4306_v60, %v6203_v11 }
 0x64c   : > { %4319 = vrcp.f32 %v3236_v41  ;;  %v3257_v13 = vmul.f32 %v4308_v21, %v6206_v18 }
 0x64d   : > { %3302 = vrot.lane.b32.xlu1 %v3255_v8, %s4422_s20 }
 0x64e   : > { %3304 = vrot.lane.b32.xlu0 %v3257_v13, %s4422_s20 }
 0x650   : > { %v4310_v45 = vpop.eup %4309 }
 0x651   : > { %v4312_v16 = vpop.eup %4311  ;;  %v3261_v17 = vmul.f32 %v4310_v45, %v6216_v14 }
 0x652   : > { %v3259_v40 = vmul.f32 %v4312_v16, %v6213_v31 }
 0x653   : > { %3308 = vrot.lane.b32.xlu0 %v3261_v17, %s4422_s20 }
 0x654   : > { %v4314_v30 = vpop.eup %4313  ;;  %3306 = vrot.lane.b32.xlu1 %v3259_v40, %s4422_s20 }
 0x655   : > { %v4316_v11 = vpop.eup %4315  ;;  %v3265_v18 = vmul.f32 %v4314_v30, %v6226_v0 }
 0x656   : > { %v3263_v57 = vmul.f32 %v4316_v11, %v6223_v34 }
 0x657   : > { %3312 = vrot.lane.b32.xlu0 %v3265_v18, %s4422_s20 }
 0x658   : > { %v4318_v14 = vpop.eup %4317  ;;  %3310 = vrot.lane.b32.xlu1 %v3263_v57, %s4422_s20 }
 0x659   : > { %v4320_v31 = vpop.eup %4319  ;;  %v3269_v26 = vmul.f32 %v4318_v14, %v6236_v9 }
 0x65a   : > { %v3267_v63 = vmul.f32 %v4320_v31, %v6233_v51 }
 0x65b   : > { %3316 = vrot.lane.b32.xlu0 %v3269_v26, %s4422_s20 }
 0x65c   : > { %3314 = vrot.lane.b32.xlu1 %v3267_v63, %s4422_s20 }
 0x6ab   : > { %v3289_v34 = vpop.permute.xlu1 %3288 }
 0x6ac   : > { %3335 = vst.msk [vmem:[%s4547_s25 + $0x8] sm:$0xff] %vm2661_vm2, %v3289_v34 }
 0x6ad   : > { %3352 = vst.msk [vmem:[%s4547_s25 + $0x8] sm:$0xff] %vm3350_vm3, %v5894_v20 }
 0x6af   : > { %v3287_v0 = vpop.permute.xlu0 %3286 }
 0x6b0   : > { %3334 = vst.msk [vmem:[%s4547_s25] sm:$0xff] %vm2661_vm2, %v3287_v0 }
 0x6b1   : > { %3351 = vst.msk [vmem:[%s4547_s25] sm:$0xff] %vm3350_vm3, %v5902_v19 }
 0x6b3   : > { %v3291_v51 = vpop.permute.xlu1 %3290 }
 0x6b4   : > { %3336 = vst.msk [vmem:[%s4547_s25 + $0x10] sm:$0xff] %vm2661_vm2, %v3291_v51  ;;  %v3293_v9 = vpop.permute.xlu0 %3292 }
 0x6b5   : > { %3353 = vst.msk [vmem:[%s4547_s25 + $0x10] sm:$0xff] %vm3350_vm3, %v5914_v61 }
 0x6b6   : > { %3337 = vst.msk [vmem:[%s4547_s25 + $0x18] sm:$0xff] %vm2661_vm2, %v3293_v9 }
 0x6b7   : > { %3354 = vst.msk [vmem:[%s4547_s25 + $0x18] sm:$0xff] %vm3350_vm3, %v5916_v52  ;;  %v3295_v20 = vpop.permute.xlu1 %3294 }
 0x6b8   : > { %3338 = vst.msk [vmem:[%s4547_s25 + $0x20] sm:$0xff] %vm2661_vm2, %v3295_v20  ;;  %v3297_v19 = vpop.permute.xlu0 %3296 }
 0x6b9   : > { %3355 = vst.msk [vmem:[%s4547_s25 + $0x20] sm:$0xff] %vm3350_vm3, %v5926_v47 }
 0x6ba   : > { %3339 = vst.msk [vmem:[%s4547_s25 + $0x28] sm:$0xff] %vm2661_vm2, %v3297_v19 }
 0x6bb   : > { %3356 = vst.msk [vmem:[%s4547_s25 + $0x28] sm:$0xff] %vm3350_vm3, %v5928_v55  ;;  %v3299_v61 = vpop.permute.xlu1 %3298 }
 0x6bc   : > { %3340 = vst.msk [vmem:[%s4547_s25 + $0x30] sm:$0xff] %vm2661_vm2, %v3299_v61  ;;  %v3301_v52 = vpop.permute.xlu0 %3300 }
 0x6bd   : > { %3357 = vst.msk [vmem:[%s4547_s25 + $0x30] sm:$0xff] %vm3350_vm3, %v5938_v38 }
 0x6be   : > { %3341 = vst.msk [vmem:[%s4547_s25 + $0x38] sm:$0xff] %vm2661_vm2, %v3301_v52 }
 0x6bf   : > { %3358 = vst.msk [vmem:[%s4547_s25 + $0x38] sm:$0xff] %vm3350_vm3, %v5940_v50  ;;  %v3303_v47 = vpop.permute.xlu1 %3302 }
 0x6c0   : > { %3342 = vst.msk [vmem:[%s4547_s25 + $0x40] sm:$0xff] %vm2661_vm2, %v3303_v47  ;;  %v3305_v55 = vpop.permute.xlu0 %3304 }
 0x6c1   : > { %3359 = vst.msk [vmem:[%s4547_s25 + $0x40] sm:$0xff] %vm3350_vm3, %v6761_v58 }
 0x6c2   : > { %3343 = vst.msk [vmem:[%s4547_s25 + $0x48] sm:$0xff] %vm2661_vm2, %v3305_v55 }
 0x6c3   : > { %3360 = vst.msk [vmem:[%s4547_s25 + $0x48] sm:$0xff] %vm3350_vm3, %v6762_v23 }
 0x6c5   : > { %v3309_v38 = vpop.permute.xlu0 %3308 }
 0x6c6   : > { %v3307_v50 = vpop.permute.xlu1 %3306  ;;  %3345 = vst.msk [vmem:[%s4547_s25 + $0x58] sm:$0xff] %vm2661_vm2, %v3309_v38 }
 0x6c7   : > { %3344 = vst.msk [vmem:[%s4547_s25 + $0x50] sm:$0xff] %vm2661_vm2, %v3307_v50 }
 0x6c8   : > { %3362 = vst.msk [vmem:[%s4547_s25 + $0x58] sm:$0xff] %vm3350_vm3, %v6763_v42  ;;  %3361 = vst.msk [vmem:[%s4547_s25 + $0x50] sm:$0xff] %vm3350_vm3, %v6764_v28 }
 0x6c9   : > { %v3313_v25 = vpop.permute.xlu0 %3312 }
 0x6ca   : > { %v3311_v39 = vpop.permute.xlu1 %3310  ;;  %3347 = vst.msk [vmem:[%s4547_s25 + $0x68] sm:$0xff] %vm2661_vm2, %v3313_v25 }
 0x6cb   : > { %3346 = vst.msk [vmem:[%s4547_s25 + $0x60] sm:$0xff] %vm2661_vm2, %v3311_v39 }
 0x6cc   : > { %3364 = vst.msk [vmem:[%s4547_s25 + $0x68] sm:$0xff] %vm3350_vm3, %v6765_v49  ;;  %3363 = vst.msk [vmem:[%s4547_s25 + $0x60] sm:$0xff] %vm3350_vm3, %v6766_v53 }
 0x6cd   : > { %v3317_v6 = vpop.permute.xlu0 %3316 }
 0x6ce   : > { %v3315_v56 = vpop.permute.xlu1 %3314  ;;  %3349 = vst.msk [vmem:[%s4547_s25 + $0x78] sm:$0xff] %vm2661_vm2, %v3317_v6 }
 0x6cf   : > { %3348 = vst.msk [vmem:[%s4547_s25 + $0x70] sm:$0xff] %vm2661_vm2, %v3315_v56 }
 0x6d0   : > { %3366 = vst.msk [vmem:[%s4547_s25 + $0x78] sm:$0xff] %vm3350_vm3, %v6767_v32  ;;  %3365 = vst.msk [vmem:[%s4547_s25 + $0x70] sm:$0xff] %vm3350_vm3, %v6768_v5 }
 0x6d1 PF: > { %s4067_s10 = smul.u32 48, %s4401_s19  ;;  %s3392_s11 = sshll.u32 %s4554_s23, 4  ;;  %s6373_s11 = int_to_ptr.vmem [resolvable:$true] %s3392_s11 }
 0x6d2   : > { %s6769_s25 = sand.u32 1, %s4389_s16   ;;  %s4321_s6 = scalar_lea.vmem %s6373_s11, 2048 }
 0x6d3   : > { %s3389_s12 = sadd.s32 %s4397_s18, %s4067_s10  ;;  %s6382_s5 = scalar_lea.sflag [#allocation4], %s6769_s25 }
 0x6d4   : > { %s3536_s13 = sshll.u32 %s3389_s12, 7  ;;  %p4322_p4 = scmp.ne.s32.totalorder %s6373_s11, %s4321_s6 }
 0x6d5   : > { %s6378_s30 = scalar_lea.hbm %s6437_s4, %s3536_s13  ;;  %s4427_s18 = smov [#allocation3]  }
 0x6d6   : > { %p4323_p5 = pnand %p4322_p4, %p4507_p3  ;;  %s4325_s19 = sshll.u32 %s4427_s18, 4  ;;  %s4326_s19 = int_to_ptr.vmem [resolvable:$false] %s4325_s19 }
 0x6d7   : > { %s4327_s9 = scalar_lea.vmem %s4326_s19, 4096  ;;  %p4328_p7 = scmp.lt.s32.totalorder %s6373_s11, %s4326_s19 }
 0x6d8   : > { %p4324_p6 = pneg %p4323_p5  ;;  %p4329_p9 = scmp.lt.s32.totalorder %s4327_s9, %s4321_s6 }
 0x6da   : > { %p4330_p10 = por %p4329_p9, %p4328_p7 }
 0x6dc   : > { %p4331_p11 = pnand %p4330_p10, %p4324_p6 }
 0x6de   : > { %4334 = shalt.err (!%p4331_p11)
}
 0x6df   : > { %s4335_s14 = scalar_lea.hbm %s6378_s30, 2048  ;;  %s4339_s21 = scalar_lea.hbm %s6437_s4, 18432 }
 0x6e0   : > { %p4336_p12 = scmp.ne.s32.totalorder %s6378_s30, %s4335_s14  ;;  %p4340_p1 = scmp.lt.s32.totalorder %s6378_s30, %s6437_s4 }
 0x6e1   : > { %p4341_p2 = scmp.lt.s32.totalorder %s4339_s21, %s4335_s14 }
 0x6e2   : > { %p4337_p13 = pnand %p4336_p12, %p4507_p3 }
 0x6e3   : > { %p4342_p4 = por %p4341_p2, %p4340_p1 }
 0x6e4   : > { %p4338_p0 = pneg %p4337_p13 }
 0x6e6   : > { %p4343_p5 = pnand %p4342_p4, %p4338_p0 }
 0x6e8   : > { %4346 = shalt.err (!%p4343_p5)
}
 0x6e9   : > { %s4428_s10 = smov 128   ;;  %s4429_s12 = smov 384  }
 0x6ea   : > { %s4430_s13 = smov 8  }
 0x6eb   : > { %4068 = dma.vmem_to_hbm [thread:$0]  (%p4507_p3), %s6373_s11, 2048, %s6378_s30, %s6382_s5, %s4428_s10, %s4429_s12, %s4430_s13  }
 0x6ec PF: > { %p4074_p6 = scmp.ge.s32.totalorder %s4413_s22, 2  ;;  %s3415_s24 = sand.u32 1, %s4385_s15  }
 0x6ed   : > { %s3416_s27 = scalar_lea.sflag [#allocation4], %s3415_s24 }
 0x6ee   : > { %p4071_p7 = pnand %p4074_p6, %p4516_p8 }
 0x6f0   : > { %p4072_p9 = pneg %p4071_p7 }
 0x6f2   : > { %4380 = dma.done.wait (%p4072_p9), %s3416_s27, 2048  }
 0x6f3   : > { %4382 = vsyncadd (%p4072_p9), %s3416_s27, 4294965248  ;;  %s18_s22 = sadd.s32 1, %s4413_s22   ;;  %s6770_s18 = sld [smem:[#allocation6_spill]] }
 0x6f4   : > { %p15_p10 = scmp.ge.s32.totalorder %s18_s22, 11   ;;  %s6771_s19 = sld [smem:[#allocation7_spill]] }
 0x6f5   : > { %s6772_s20 = sld [smem:[#allocation8_spill]]  ;;  %s6774_s15 = smov %s4389_s16 }
 0x6f6   : > { %s6773_s21 = sld [smem:[#allocation9_spill]]  ;;  %s6775_s16 = smov %s4393_s17 }
 0x6f7   : > { %s6776_s17 = smov %s4525_s7  ;;  %17 = sbr.rel (!%p15_p10) target bundleno = 5 (0x5), region = 93 }
 0x6fc   :  { %3421 = vsyncpa [#allocation4], 1 }
 0x6fd   :  { %3423 = vsyncpa [#allocation4 + $0x1], 1 }

</bundles_post_ra>
